<compile_context>
chip_gen: v7x
topology: tpu7x:2x2x1
jax: 0.10.0
libtpu: 0.0.40
codegen_flags: <defaults>
</compile_context>

<pallas_src>
import functools
import math

import jax
import jax.numpy as jnp
from jax import lax
from jax.experimental import pallas as pl
from jax.experimental.pallas import tpu as pltpu


def _layernorm(x, gamma, beta, eps=1e-5):
    """Fused single-pass LayerNorm: one sum + one sum-of-squares reduction."""
    inv_n = 1.0 / x.shape[-1]
    s = jnp.sum(x, axis=-1, keepdims=True)
    ss = jnp.sum(x * x, axis=-1, keepdims=True)
    mean = s * inv_n
    var = ss * inv_n - mean * mean
    return (x - mean) * lax.rsqrt(var + eps) * gamma + beta


def _encoder_kernel(x_full_ref, x_tile_ref,
                    wq_ref, wk_ref, wv_ref, bq_ref, bk_ref, bv_ref,
                    wo_ref, bo_ref, g1_ref, be1_ref,
                    w1_ref, b1_ref, w2_ref, b2_ref, g2_ref, be2_ref,
                    o_ref,
                    k_scr, v_scr, ctx_scr,
                    *, n_head: int):
    qi = pl.program_id(1)
    D = x_tile_ref.shape[-1]
    hd = D // n_head
    scale = 1.0 / math.sqrt(hd)
    bf16 = jnp.bfloat16
    f32 = jnp.float32

    # ---- K / V projection over the full sequence: once per batch element. ----
    @pl.when(qi == 0)
    def _():
        xf = x_full_ref[...].astype(bf16)                                    # (S, D)
        k = jnp.dot(xf, wk_ref[...], preferred_element_type=f32) + bk_ref[...]
        v = jnp.dot(xf, wv_ref[...], preferred_element_type=f32) + bv_ref[...]
        k_scr[...] = k.astype(bf16)
        v_scr[...] = v.astype(bf16)

    # ---- Q projection for this row tile (softmax scale folded into q). ----
    xt = x_tile_ref[...]                                                     # (TQ, D) f32
    q = jnp.dot(xt.astype(bf16), wq_ref[...], preferred_element_type=f32)
    q = ((q + bq_ref[...]) * scale).astype(bf16)                             # (TQ, D) bf16

    kk = k_scr[...]                                                          # (S, D) bf16
    vv = v_scr[...]                                                          # (S, D) bf16

    # ---- Per-head attention; each head writes its slice of the ctx scratch. ----
    for h in range(n_head):                                                  # static loop
        lo = h * hd
        qh = q[:, lo:lo + hd]                                                # (TQ, hd)
        kh = kk[:, lo:lo + hd]                                               # (S, hd)
        vh = vv[:, lo:lo + hd]                                               # (S, hd)
        s = lax.dot_general(qh, kh, (((1,), (1,)), ((), ())),
                            preferred_element_type=f32)                      # (TQ, S)
        s = s - jnp.max(s, axis=-1, keepdims=True)
        p = jnp.exp(s)
        p = p * pl.reciprocal(jnp.sum(p, axis=-1, keepdims=True), approx=True)
        ctx_scr[:, lo:lo + hd] = jnp.dot(
            p.astype(bf16), vh, preferred_element_type=f32).astype(bf16)

    # ---- Output projection + residual + LayerNorm (dropout1 = identity). ----
    attn = jnp.dot(ctx_scr[...], wo_ref[...], preferred_element_type=f32) + bo_ref[...]
    x1 = _layernorm(attn + xt, g1_ref[...], be1_ref[...])

    # ---- FFN (Linear -> ReLU -> Linear) + residual + LayerNorm (dropout2 = identity).
    h1 = jnp.dot(x1.astype(bf16), w1_ref[...], preferred_element_type=f32) + b1_ref[...]
    h1 = jnp.maximum(h1, 0.0)
    h2 = jnp.dot(h1.astype(bf16), w2_ref[...], preferred_element_type=f32) + b2_ref[...]
    out = _layernorm(h2 + x1, g2_ref[...], be2_ref[...])

    o_ref[...] = out.astype(o_ref.dtype)


def _vmem_limit_bytes(S, D, DF, TQ):
    bf, f4 = 2, 4
    weights = (3 * D * D + D * D + D * DF + DF * D) * bf * 2   # QKV + O + FFN (x2 buffers)
    vecs = 10 * max(D, DF) * f4                                 # biases + LN params
    io = (S * D + 2 * TQ * D) * f4 * 2                          # x_full / x_tile / out (dbl-buffered)
    scratch = (2 * S * D + TQ * D) * bf                         # K / V / ctx scratch
    temps = (TQ * S + TQ * DF + 8 * TQ * D) * f4                # scores, FFN hidden, misc f32 temps
    need = weights + vecs + io + scratch + temps + (8 << 20)
    return int(min(max(need, 32 << 20), 48 << 20))              # fits v7x (64 MiB) and v5e/v6e


def self_attention_layer(x, params, n_head, *, q_tile=256):
    """Fused encoder-layer forward (eval mode) as a single Pallas TPU kernel."""
    B, S, D = x.shape
    (wqkv, bqkv, wo, bo, g1, be1, w1, bf1, w2, bf2, g2, be2) = params
    assert D % n_head == 0
    DF = w1.shape[1]

    # Query-row tile size: full sequence if short, otherwise a divisor of S (mult. of 8).
    if S <= q_tile:
        TQ = S
    else:
        assert S % q_tile == 0 and q_tile % 8 == 0
        TQ = q_tile
    NQ = S // TQ

    # Split the packed in-proj (nn.MultiheadAttention layout) outside the kernel (free).
    wq, wk, wv = wqkv[:, :D], wqkv[:, D:2 * D], wqkv[:, 2 * D:]
    bq, bk, bv = bqkv[:, :D], bqkv[:, D:2 * D], bqkv[:, 2 * D:]

    # bf16 MXU operands; accumulation stays f32 inside the kernel.
    bf16 = jnp.bfloat16
    wq_b, wk_b, wv_b, wo_b, w1_b, w2_b = (w.astype(bf16) for w in (wq, wk, wv, wo, w1, w2))

    args = (x, x, wq_b, wk_b, wv_b, bq, bk, bv, wo_b, bo,
            g1, be1, w1_b, bf1, w2_b, bf2, g2, be2)

    flops = B * (2 * S * D * 3 * D      # QKV projection
                 + 4 * S * S * D        # scores + attn @ V (summed over heads)
                 + 2 * S * D * D        # output projection
                 + 4 * S * D * DF)      # FFN (two matmuls)
    transcendentals = B * (n_head * S * S + 4 * S)
    param_bytes = sum(int(a.size) * a.dtype.itemsize for a in args[2:])
    cost = pl.CostEstimate(flops=flops, transcendentals=transcendentals,
                           bytes_accessed=param_bytes + 2 * B * S * D * x.dtype.itemsize)

    kernel = functools.partial(_encoder_kernel, n_head=n_head)

    def _build(single_buffer_weights):
        def wspec(shape):
            idx = lambda b, qi: (0, 0)
            if single_buffer_weights:
                # Constant block index across the grid -> one resident copy is enough.
                return pl.BlockSpec(shape, idx, pipeline_mode=pl.Buffered(1))
            return pl.BlockSpec(shape, idx)

        grid_spec = pltpu.PrefetchScalarGridSpec(
            num_scalar_prefetch=0,
            grid=(B, NQ),
            in_specs=[
                # full sequence (for K/V projection; DMA'd only when b changes)
                pl.BlockSpec((None, S, D), lambda b, qi: (b, 0, 0)),
                # query row tile (+ residual stream)
                pl.BlockSpec((None, TQ, D), lambda b, qi: (b, qi, 0)),
                wspec((D, D)), wspec((D, D)), wspec((D, D)),      # Wq, Wk, Wv
                wspec((1, D)), wspec((1, D)), wspec((1, D)),      # bq, bk, bv
                wspec((D, D)), wspec((1, D)),                     # Wo, bo
                wspec((1, D)), wspec((1, D)),                     # ln1 gamma / beta
                wspec((D, DF)), wspec((1, DF)),                   # W1, b1
                wspec((DF, D)), wspec((1, D)),                    # W2, b2
                wspec((1, D)), wspec((1, D)),                     # ln2 gamma / beta
            ],
            out_specs=pl.BlockSpec((None, TQ, D), lambda b, qi: (b, qi, 0)),
            scratch_shapes=[
                pltpu.VMEM((S, D), bf16),     # K (whole sequence, per batch element)
                pltpu.VMEM((S, D), bf16),     # V
                pltpu.VMEM((TQ, D), bf16),    # per-tile multi-head context
            ],
        )
        return pl.pallas_call(
            kernel,
            out_shape=jax.ShapeDtypeStruct((B, S, D), x.dtype),
            grid_spec=grid_spec,
            compiler_params=pltpu.CompilerParams(
                dimension_semantics=("parallel", "arbitrary"),
                vmem_limit_bytes=_vmem_limit_bytes(S, D, DF, TQ)),
            cost_estimate=cost,
        )

    try:
        out = _build(True)(*args)
        jax.block_until_ready(out)
        return out
    except Exception:
        # pipeline_mode=pl.Buffered(1) unsupported on this jax/libtpu build:
        # fall back to default (double-buffered) weight specs.
        return _build(False)(*args)


def reference(x, params, n_head):
    """Pure-JAX (f32) reference of the same forward pass."""
    (wqkv, bqkv, wo, bo, g1, be1, w1, bf1, w2, bf2, g2, be2) = params
    B, S, D = x.shape
    hd = D // n_head
    qkv = x @ wqkv + bqkv[0]
    q, k, v = qkv[..., :D], qkv[..., D:2 * D], qkv[..., 2 * D:]
    q = q.reshape(B, S, n_head, hd).transpose(0, 2, 1, 3)
    k = k.reshape(B, S, n_head, hd).transpose(0, 2, 1, 3)
    v = v.reshape(B, S, n_head, hd).transpose(0, 2, 1, 3)
    s = jnp.einsum("bhqd,bhkd->bhqk", q, k) / math.sqrt(hd)
    p = jax.nn.softmax(s, axis=-1)
    ctx = jnp.einsum("bhqk,bhkd->bhqd", p, v).transpose(0, 2, 1, 3).reshape(B, S, D)
    attn_out = ctx @ wo + bo[0]

    def ln(z, g, b):
        m = jnp.mean(z, axis=-1, keepdims=True)
        var = jnp.mean((z - m) ** 2, axis=-1, keepdims=True)
        return (z - m) * jax.lax.rsqrt(var + 1e-5) * g[0] + b[0]

    x1 = ln(attn_out + x, g1, be1)
    h = jnp.maximum(x1 @ w1 + bf1[0], 0.0) @ w2 + bf2[0]
    return ln(h + x1, g2, be2)


if __name__ == "__main__":
    B, S, D, H = 2, 16, 32, 4   # batch, seq, d_model, n_head  (d_model % n_head == 0)

    key = jax.random.PRNGKey(0)
    ks = jax.random.split(key, 9)
    scale = 0.1
    params = (
        scale * jax.random.normal(ks[0], (D, 3 * D), jnp.float32),   # Wqkv (packed in_proj)
        scale * jax.random.normal(ks[1], (1, 3 * D), jnp.float32),   # bqkv
        scale * jax.random.normal(ks[2], (D, D), jnp.float32),       # Wo
        scale * jax.random.normal(ks[3], (1, D), jnp.float32),       # bo
        jnp.ones((1, D), jnp.float32),                               # ln1 gamma
        jnp.zeros((1, D), jnp.float32),                              # ln1 beta
        scale * jax.random.normal(ks[4], (D, 4 * D), jnp.float32),   # W1
        scale * jax.random.normal(ks[5], (1, 4 * D), jnp.float32),   # b1
        scale * jax.random.normal(ks[6], (4 * D, D), jnp.float32),   # W2
        scale * jax.random.normal(ks[7], (1, D), jnp.float32),       # b2
        jnp.ones((1, D), jnp.float32),                               # ln2 gamma
        jnp.zeros((1, D), jnp.float32),                              # ln2 beta
    )
    x = jax.random.normal(ks[8], (B, S, D), jnp.float32)

    # q_tile=8 forces two query-row tiles per sequence, exercising the persistent
    # K/V-scratch reuse path even at this toy size.
    out = self_attention_layer(x, params, H, q_tile=8)
    jax.block_until_ready(out)

    ref = reference(x, params, H)
    assert out.shape == (B, S, D)
    max_err = float(jnp.max(jnp.abs(out - ref)))
    # bf16 MXU operands (f32 accumulation) + approx reciprocal -> looser tolerance
    # than the pure-f32 reference.
    assert jnp.allclose(out, ref, atol=5e-2, rtol=5e-2), (
        f"mismatch vs. JAX reference (max abs err {max_err:.3e})")
    print("KERNEL_OK")
</pallas_src>

<mosaic_0001>
module attributes {stable_mosaic.version = 11 : i64} {
  func.func @_encoder_kernel(%arg0: i32, %arg1: i32, %arg2: memref<1x16x32xf32, #tpu.memory_space<vmem>>, %arg3: memref<1x8x32xf32, #tpu.memory_space<vmem>>, %arg4: memref<32x32xbf16, #tpu.memory_space<vmem>>, %arg5: memref<32x32xbf16, #tpu.memory_space<vmem>>, %arg6: memref<32x32xbf16, #tpu.memory_space<vmem>>, %arg7: memref<1x32xf32, #tpu.memory_space<vmem>>, %arg8: memref<1x32xf32, #tpu.memory_space<vmem>>, %arg9: memref<1x32xf32, #tpu.memory_space<vmem>>, %arg10: memref<32x32xbf16, #tpu.memory_space<vmem>>, %arg11: memref<1x32xf32, #tpu.memory_space<vmem>>, %arg12: memref<1x32xf32, #tpu.memory_space<vmem>>, %arg13: memref<1x32xf32, #tpu.memory_space<vmem>>, %arg14: memref<32x128xbf16, #tpu.memory_space<vmem>>, %arg15: memref<1x128xf32, #tpu.memory_space<vmem>>, %arg16: memref<128x32xbf16, #tpu.memory_space<vmem>>, %arg17: memref<1x32xf32, #tpu.memory_space<vmem>>, %arg18: memref<1x32xf32, #tpu.memory_space<vmem>>, %arg19: memref<1x32xf32, #tpu.memory_space<vmem>>, %arg20: memref<1x8x32xf32, #tpu.memory_space<vmem>>, %arg21: memref<16x32xbf16, #tpu.memory_space<vmem>>, %arg22: memref<16x32xbf16, #tpu.memory_space<vmem>>, %arg23: memref<8x32xbf16, #tpu.memory_space<vmem>>) attributes {dimension_semantics = [#tpu.dimension_semantics<parallel>, #tpu.dimension_semantics<arbitrary>], iteration_bounds = array<i64: 2, 2>, scalar_prefetch = 0 : i64, scratch_operands = 3 : i64, tpu.core_type = #tpu.core_type<tc>, window_params = [{transform_indices = @transform_0, window_bounds = array<i64: 1, 16, 32>}, {transform_indices = @transform_1, window_bounds = array<i64: 1, 8, 32>}, {pipeline_mode = #tpu.pipeline_mode<synchronous>, transform_indices = @transform_2, window_bounds = array<i64: 32, 32>}, {pipeline_mode = #tpu.pipeline_mode<synchronous>, transform_indices = @transform_3, window_bounds = array<i64: 32, 32>}, {pipeline_mode = #tpu.pipeline_mode<synchronous>, transform_indices = @transform_4, window_bounds = array<i64: 32, 32>}, {pipeline_mode = #tpu.pipeline_mode<synchronous>, transform_indices = @transform_5, window_bounds = array<i64: 1, 32>}, {pipeline_mode = #tpu.pipeline_mode<synchronous>, transform_indices = @transform_6, window_bounds = array<i64: 1, 32>}, {pipeline_mode = #tpu.pipeline_mode<synchronous>, transform_indices = @transform_7, window_bounds = array<i64: 1, 32>}, {pipeline_mode = #tpu.pipeline_mode<synchronous>, transform_indices = @transform_8, window_bounds = array<i64: 32, 32>}, {pipeline_mode = #tpu.pipeline_mode<synchronous>, transform_indices = @transform_9, window_bounds = array<i64: 1, 32>}, {pipeline_mode = #tpu.pipeline_mode<synchronous>, transform_indices = @transform_10, window_bounds = array<i64: 1, 32>}, {pipeline_mode = #tpu.pipeline_mode<synchronous>, transform_indices = @transform_11, window_bounds = array<i64: 1, 32>}, {pipeline_mode = #tpu.pipeline_mode<synchronous>, transform_indices = @transform_12, window_bounds = array<i64: 32, 128>}, {pipeline_mode = #tpu.pipeline_mode<synchronous>, transform_indices = @transform_13, window_bounds = array<i64: 1, 128>}, {pipeline_mode = #tpu.pipeline_mode<synchronous>, transform_indices = @transform_14, window_bounds = array<i64: 128, 32>}, {pipeline_mode = #tpu.pipeline_mode<synchronous>, transform_indices = @transform_15, window_bounds = array<i64: 1, 32>}, {pipeline_mode = #tpu.pipeline_mode<synchronous>, transform_indices = @transform_16, window_bounds = array<i64: 1, 32>}, {pipeline_mode = #tpu.pipeline_mode<synchronous>, transform_indices = @transform_17, window_bounds = array<i64: 1, 32>}, {transform_indices = @transform_18, window_bounds = array<i64: 1, 8, 32>}]} {
    %c0_i32 = arith.constant 0 : i32
    %0 = arith.cmpi eq, %arg1, %c0_i32 : i32
    %1 = arith.extui %0 : i1 to i32
    %c0_i32_0 = arith.constant 0 : i32
    %2 = arith.cmpi ne, %1, %c0_i32_0 : i32
    scf.if %2 {
      %c0_72 = arith.constant 0 : index
      %c0_73 = arith.constant 0 : index
      %c0_74 = arith.constant 0 : index
      %161 = vector.load %arg2[%c0_72, %c0_73, %c0_74] : memref<1x16x32xf32, #tpu.memory_space<vmem>>, vector<1x16x32xf32>
      %162 = vector.shape_cast %161 : vector<1x16x32xf32> to vector<16x32xf32>
      %163 = arith.truncf %162 : vector<16x32xf32> to vector<16x32xbf16>
      %c0_75 = arith.constant 0 : index
      %c0_76 = arith.constant 0 : index
      %164 = vector.load %arg5[%c0_75, %c0_76] : memref<32x32xbf16, #tpu.memory_space<vmem>>, vector<32x32xbf16>
      %cst_77 = arith.constant dense<0.000000e+00> : vector<16x32xf32>
      %165 = tpu.matmul %163, %164, %cst_77 {dimension_numbers = #tpu.dot_dimension_numbers<[1], [0], [0], [1], [0, 0, 1, 1], [], []>} : vector<16x32xbf16>, vector<32x32xbf16>, vector<16x32xf32> -> vector<16x32xf32>
      %c0_78 = arith.constant 0 : index
      %c0_79 = arith.constant 0 : index
      %166 = vector.load %arg8[%c0_78, %c0_79] : memref<1x32xf32, #tpu.memory_space<vmem>>, vector<1x32xf32>
      %167 = vector.broadcast %166 : vector<1x32xf32> to vector<16x32xf32>
      %168 = arith.addf %165, %167 : vector<16x32xf32>
      %c0_80 = arith.constant 0 : index
      %c0_81 = arith.constant 0 : index
      %169 = vector.load %arg6[%c0_80, %c0_81] : memref<32x32xbf16, #tpu.memory_space<vmem>>, vector<32x32xbf16>
      %cst_82 = arith.constant dense<0.000000e+00> : vector<16x32xf32>
      %170 = tpu.matmul %163, %169, %cst_82 {dimension_numbers = #tpu.dot_dimension_numbers<[1], [0], [0], [1], [0, 0, 1, 1], [], []>} : vector<16x32xbf16>, vector<32x32xbf16>, vector<16x32xf32> -> vector<16x32xf32>
      %c0_83 = arith.constant 0 : index
      %c0_84 = arith.constant 0 : index
      %171 = vector.load %arg9[%c0_83, %c0_84] : memref<1x32xf32, #tpu.memory_space<vmem>>, vector<1x32xf32>
      %172 = vector.broadcast %171 : vector<1x32xf32> to vector<16x32xf32>
      %173 = arith.addf %170, %172 : vector<16x32xf32>
      %174 = arith.truncf %168 : vector<16x32xf32> to vector<16x32xbf16>
      %c0_85 = arith.constant 0 : index
      %c0_86 = arith.constant 0 : index
      %175 = vector.load %arg21[%c0_85, %c0_86] : memref<16x32xbf16, #tpu.memory_space<vmem>>, vector<16x32xbf16>
      tpu.vector_store %arg21[%c0_85, %c0_86], %174 {strides = array<i32>} : memref<16x32xbf16, #tpu.memory_space<vmem>>, vector<16x32xbf16>,
      %176 = arith.truncf %173 : vector<16x32xf32> to vector<16x32xbf16>
      %c0_87 = arith.constant 0 : index
      %c0_88 = arith.constant 0 : index
      %177 = vector.load %arg22[%c0_87, %c0_88] : memref<16x32xbf16, #tpu.memory_space<vmem>>, vector<16x32xbf16>
      tpu.vector_store %arg22[%c0_87, %c0_88], %176 {strides = array<i32>} : memref<16x32xbf16, #tpu.memory_space<vmem>>, vector<16x32xbf16>,
    } else {
    }
    %c0 = arith.constant 0 : index
    %c0_1 = arith.constant 0 : index
    %c0_2 = arith.constant 0 : index
    %3 = vector.load %arg3[%c0, %c0_1, %c0_2] : memref<1x8x32xf32, #tpu.memory_space<vmem>>, vector<1x8x32xf32>
    %4 = vector.shape_cast %3 : vector<1x8x32xf32> to vector<8x32xf32>
    %5 = arith.truncf %4 : vector<8x32xf32> to vector<8x32xbf16>
    %c0_3 = arith.constant 0 : index
    %c0_4 = arith.constant 0 : index
    %6 = vector.load %arg4[%c0_3, %c0_4] : memref<32x32xbf16, #tpu.memory_space<vmem>>, vector<32x32xbf16>
    %cst = arith.constant dense<0.000000e+00> : vector<8x32xf32>
    %7 = tpu.matmul %5, %6, %cst {dimension_numbers = #tpu.dot_dimension_numbers<[1], [0], [0], [1], [0, 0, 1, 1], [], []>} : vector<8x32xbf16>, vector<32x32xbf16>, vector<8x32xf32> -> vector<8x32xf32>
    %c0_5 = arith.constant 0 : index
    %c0_6 = arith.constant 0 : index
    %8 = vector.load %arg7[%c0_5, %c0_6] : memref<1x32xf32, #tpu.memory_space<vmem>>, vector<1x32xf32>
    %9 = vector.broadcast %8 : vector<1x32xf32> to vector<8x32xf32>
    %10 = arith.addf %7, %9 : vector<8x32xf32>
    %cst_7 = arith.constant 0.353553385 : f32
    %11 = vector.broadcast %cst_7 : f32 to vector<8x32xf32>
    %12 = arith.mulf %10, %11 : vector<8x32xf32>
    %13 = arith.truncf %12 : vector<8x32xf32> to vector<8x32xbf16>
    %c0_8 = arith.constant 0 : index
    %c0_9 = arith.constant 0 : index
    %14 = vector.load %arg21[%c0_8, %c0_9] : memref<16x32xbf16, #tpu.memory_space<vmem>>, vector<16x32xbf16>
    %c0_10 = arith.constant 0 : index
    %c0_11 = arith.constant 0 : index
    %15 = vector.load %arg22[%c0_10, %c0_11] : memref<16x32xbf16, #tpu.memory_space<vmem>>, vector<16x32xbf16>
    %16 = vector.extract_strided_slice %13 {offsets = [0, 0], sizes = [8, 8], strides = [1, 1]} : vector<8x32xbf16> to vector<8x8xbf16>
    %17 = vector.extract_strided_slice %14 {offsets = [0, 0], sizes = [16, 8], strides = [1, 1]} : vector<16x32xbf16> to vector<16x8xbf16>
    %18 = vector.extract_strided_slice %15 {offsets = [0, 0], sizes = [16, 8], strides = [1, 1]} : vector<16x32xbf16> to vector<16x8xbf16>
    %cst_12 = arith.constant dense<0.000000e+00> : vector<8x16xf32>
    %19 = tpu.matmul %16, %17, %cst_12 {dimension_numbers = #tpu.dot_dimension_numbers<[1], [1], [0], [0], [0, 0, 1, 0], [], []>} : vector<8x8xbf16>, vector<16x8xbf16>, vector<8x16xf32> -> vector<8x16xf32>
    %cst_13 = arith.constant dense<0xFF800000> : vector<8xf32>
    %20 = vector.multi_reduction <maximumf>, %19, %cst_13 [1] : vector<8x16xf32> to vector<8xf32>
    %21 = vector.shape_cast %20 : vector<8xf32> to vector<8x1xf32>
    %22 = vector.broadcast %21 : vector<8x1xf32> to vector<8x16xf32>
    %23 = arith.subf %19, %22 : vector<8x16xf32>
    %24 = math.exp %23 : vector<8x16xf32>
    %cst_14 = arith.constant dense<0.000000e+00> : vector<8xf32>
    %25 = vector.multi_reduction <add>, %24, %cst_14 [1] : vector<8x16xf32> to vector<8xf32>
    %26 = vector.shape_cast %25 : vector<8xf32> to vector<8x1xf32>
    %27 = tpu.reciprocal %26 {approx = true} : vector<8x1xf32> -> vector<8x1xf32>
    %28 = vector.broadcast %27 : vector<8x1xf32> to vector<8x16xf32>
    %29 = arith.mulf %24, %28 : vector<8x16xf32>
    %30 = arith.truncf %29 : vector<8x16xf32> to vector<8x16xbf16>
    %cst_15 = arith.constant dense<0.000000e+00> : vector<8x8xf32>
    %31 = tpu.matmul %30, %18, %cst_15 {dimension_numbers = #tpu.dot_dimension_numbers<[1], [0], [0], [1], [0, 0, 1, 1], [], []>} : vector<8x16xbf16>, vector<16x8xbf16>, vector<8x8xf32> -> vector<8x8xf32>
    %32 = arith.truncf %31 : vector<8x8xf32> to vector<8x8xbf16>
    %c0_16 = arith.constant 0 : index
    %c0_17 = arith.constant 0 : index
    %33 = vector.load %arg23[%c0_16, %c0_17] : memref<8x32xbf16, #tpu.memory_space<vmem>>, vector<8x8xbf16>
    tpu.vector_store %arg23[%c0_16, %c0_17], %32 {strides = array<i32>} : memref<8x32xbf16, #tpu.memory_space<vmem>>, vector<8x8xbf16>,
    %34 = vector.extract_strided_slice %13 {offsets = [0, 8], sizes = [8, 8], strides = [1, 1]} : vector<8x32xbf16> to vector<8x8xbf16>
    %35 = vector.extract_strided_slice %14 {offsets = [0, 8], sizes = [16, 8], strides = [1, 1]} : vector<16x32xbf16> to vector<16x8xbf16>
    %36 = vector.extract_strided_slice %15 {offsets = [0, 8], sizes = [16, 8], strides = [1, 1]} : vector<16x32xbf16> to vector<16x8xbf16>
    %cst_18 = arith.constant dense<0.000000e+00> : vector<8x16xf32>
    %37 = tpu.matmul %34, %35, %cst_18 {dimension_numbers = #tpu.dot_dimension_numbers<[1], [1], [0], [0], [0, 0, 1, 0], [], []>} : vector<8x8xbf16>, vector<16x8xbf16>, vector<8x16xf32> -> vector<8x16xf32>
    %cst_19 = arith.constant dense<0xFF800000> : vector<8xf32>
    %38 = vector.multi_reduction <maximumf>, %37, %cst_19 [1] : vector<8x16xf32> to vector<8xf32>
    %39 = vector.shape_cast %38 : vector<8xf32> to vector<8x1xf32>
    %40 = vector.broadcast %39 : vector<8x1xf32> to vector<8x16xf32>
    %41 = arith.subf %37, %40 : vector<8x16xf32>
    %42 = math.exp %41 : vector<8x16xf32>
    %cst_20 = arith.constant dense<0.000000e+00> : vector<8xf32>
    %43 = vector.multi_reduction <add>, %42, %cst_20 [1] : vector<8x16xf32> to vector<8xf32>
    %44 = vector.shape_cast %43 : vector<8xf32> to vector<8x1xf32>
    %45 = tpu.reciprocal %44 {approx = true} : vector<8x1xf32> -> vector<8x1xf32>
    %46 = vector.broadcast %45 : vector<8x1xf32> to vector<8x16xf32>
    %47 = arith.mulf %42, %46 : vector<8x16xf32>
    %48 = arith.truncf %47 : vector<8x16xf32> to vector<8x16xbf16>
    %cst_21 = arith.constant dense<0.000000e+00> : vector<8x8xf32>
    %49 = tpu.matmul %48, %36, %cst_21 {dimension_numbers = #tpu.dot_dimension_numbers<[1], [0], [0], [1], [0, 0, 1, 1], [], []>} : vector<8x16xbf16>, vector<16x8xbf16>, vector<8x8xf32> -> vector<8x8xf32>
    %50 = arith.truncf %49 : vector<8x8xf32> to vector<8x8xbf16>
    %c0_22 = arith.constant 0 : index
    %c8 = arith.constant 8 : index
    %51 = vector.load %arg23[%c0_22, %c8] : memref<8x32xbf16, #tpu.memory_space<vmem>>, vector<8x8xbf16>
    tpu.vector_store %arg23[%c0_22, %c8], %50 {strides = array<i32>} : memref<8x32xbf16, #tpu.memory_space<vmem>>, vector<8x8xbf16>,
    %52 = vector.extract_strided_slice %13 {offsets = [0, 16], sizes = [8, 8], strides = [1, 1]} : vector<8x32xbf16> to vector<8x8xbf16>
    %53 = vector.extract_strided_slice %14 {offsets = [0, 16], sizes = [16, 8], strides = [1, 1]} : vector<16x32xbf16> to vector<16x8xbf16>
    %54 = vector.extract_strided_slice %15 {offsets = [0, 16], sizes = [16, 8], strides = [1, 1]} : vector<16x32xbf16> to vector<16x8xbf16>
    %cst_23 = arith.constant dense<0.000000e+00> : vector<8x16xf32>
    %55 = tpu.matmul %52, %53, %cst_23 {dimension_numbers = #tpu.dot_dimension_numbers<[1], [1], [0], [0], [0, 0, 1, 0], [], []>} : vector<8x8xbf16>, vector<16x8xbf16>, vector<8x16xf32> -> vector<8x16xf32>
    %cst_24 = arith.constant dense<0xFF800000> : vector<8xf32>
    %56 = vector.multi_reduction <maximumf>, %55, %cst_24 [1] : vector<8x16xf32> to vector<8xf32>
    %57 = vector.shape_cast %56 : vector<8xf32> to vector<8x1xf32>
    %58 = vector.broadcast %57 : vector<8x1xf32> to vector<8x16xf32>
    %59 = arith.subf %55, %58 : vector<8x16xf32>
    %60 = math.exp %59 : vector<8x16xf32>
    %cst_25 = arith.constant dense<0.000000e+00> : vector<8xf32>
    %61 = vector.multi_reduction <add>, %60, %cst_25 [1] : vector<8x16xf32> to vector<8xf32>
    %62 = vector.shape_cast %61 : vector<8xf32> to vector<8x1xf32>
    %63 = tpu.reciprocal %62 {approx = true} : vector<8x1xf32> -> vector<8x1xf32>
    %64 = vector.broadcast %63 : vector<8x1xf32> to vector<8x16xf32>
    %65 = arith.mulf %60, %64 : vector<8x16xf32>
    %66 = arith.truncf %65 : vector<8x16xf32> to vector<8x16xbf16>
    %cst_26 = arith.constant dense<0.000000e+00> : vector<8x8xf32>
    %67 = tpu.matmul %66, %54, %cst_26 {dimension_numbers = #tpu.dot_dimension_numbers<[1], [0], [0], [1], [0, 0, 1, 1], [], []>} : vector<8x16xbf16>, vector<16x8xbf16>, vector<8x8xf32> -> vector<8x8xf32>
    %68 = arith.truncf %67 : vector<8x8xf32> to vector<8x8xbf16>
    %c0_27 = arith.constant 0 : index
    %c16 = arith.constant 16 : index
    %69 = vector.load %arg23[%c0_27, %c16] : memref<8x32xbf16, #tpu.memory_space<vmem>>, vector<8x8xbf16>
    tpu.vector_store %arg23[%c0_27, %c16], %68 {strides = array<i32>} : memref<8x32xbf16, #tpu.memory_space<vmem>>, vector<8x8xbf16>,
    %70 = vector.extract_strided_slice %13 {offsets = [0, 24], sizes = [8, 8], strides = [1, 1]} : vector<8x32xbf16> to vector<8x8xbf16>
    %71 = vector.extract_strided_slice %14 {offsets = [0, 24], sizes = [16, 8], strides = [1, 1]} : vector<16x32xbf16> to vector<16x8xbf16>
    %72 = vector.extract_strided_slice %15 {offsets = [0, 24], sizes = [16, 8], strides = [1, 1]} : vector<16x32xbf16> to vector<16x8xbf16>
    %cst_28 = arith.constant dense<0.000000e+00> : vector<8x16xf32>
    %73 = tpu.matmul %70, %71, %cst_28 {dimension_numbers = #tpu.dot_dimension_numbers<[1], [1], [0], [0], [0, 0, 1, 0], [], []>} : vector<8x8xbf16>, vector<16x8xbf16>, vector<8x16xf32> -> vector<8x16xf32>
    %cst_29 = arith.constant dense<0xFF800000> : vector<8xf32>
    %74 = vector.multi_reduction <maximumf>, %73, %cst_29 [1] : vector<8x16xf32> to vector<8xf32>
    %75 = vector.shape_cast %74 : vector<8xf32> to vector<8x1xf32>
    %76 = vector.broadcast %75 : vector<8x1xf32> to vector<8x16xf32>
    %77 = arith.subf %73, %76 : vector<8x16xf32>
    %78 = math.exp %77 : vector<8x16xf32>
    %cst_30 = arith.constant dense<0.000000e+00> : vector<8xf32>
    %79 = vector.multi_reduction <add>, %78, %cst_30 [1] : vector<8x16xf32> to vector<8xf32>
    %80 = vector.shape_cast %79 : vector<8xf32> to vector<8x1xf32>
    %81 = tpu.reciprocal %80 {approx = true} : vector<8x1xf32> -> vector<8x1xf32>
    %82 = vector.broadcast %81 : vector<8x1xf32> to vector<8x16xf32>
    %83 = arith.mulf %78, %82 : vector<8x16xf32>
    %84 = arith.truncf %83 : vector<8x16xf32> to vector<8x16xbf16>
    %cst_31 = arith.constant dense<0.000000e+00> : vector<8x8xf32>
    %85 = tpu.matmul %84, %72, %cst_31 {dimension_numbers = #tpu.dot_dimension_numbers<[1], [0], [0], [1], [0, 0, 1, 1], [], []>} : vector<8x16xbf16>, vector<16x8xbf16>, vector<8x8xf32> -> vector<8x8xf32>
    %86 = arith.truncf %85 : vector<8x8xf32> to vector<8x8xbf16>
    %c0_32 = arith.constant 0 : index
    %c24 = arith.constant 24 : index
    %87 = vector.load %arg23[%c0_32, %c24] : memref<8x32xbf16, #tpu.memory_space<vmem>>, vector<8x8xbf16>
    tpu.vector_store %arg23[%c0_32, %c24], %86 {strides = array<i32>} : memref<8x32xbf16, #tpu.memory_space<vmem>>, vector<8x8xbf16>,
    %c0_33 = arith.constant 0 : index
    %c0_34 = arith.constant 0 : index
    %88 = vector.load %arg23[%c0_33, %c0_34] : memref<8x32xbf16, #tpu.memory_space<vmem>>, vector<8x32xbf16>
    %c0_35 = arith.constant 0 : index
    %c0_36 = arith.constant 0 : index
    %89 = vector.load %arg10[%c0_35, %c0_36] : memref<32x32xbf16, #tpu.memory_space<vmem>>, vector<32x32xbf16>
    %cst_37 = arith.constant dense<0.000000e+00> : vector<8x32xf32>
    %90 = tpu.matmul %88, %89, %cst_37 {dimension_numbers = #tpu.dot_dimension_numbers<[1], [0], [0], [1], [0, 0, 1, 1], [], []>} : vector<8x32xbf16>, vector<32x32xbf16>, vector<8x32xf32> -> vector<8x32xf32>
    %c0_38 = arith.constant 0 : index
    %c0_39 = arith.constant 0 : index
    %91 = vector.load %arg11[%c0_38, %c0_39] : memref<1x32xf32, #tpu.memory_space<vmem>>, vector<1x32xf32>
    %92 = vector.broadcast %91 : vector<1x32xf32> to vector<8x32xf32>
    %93 = arith.addf %90, %92 : vector<8x32xf32>
    %94 = arith.addf %93, %4 : vector<8x32xf32>
    %c0_40 = arith.constant 0 : index
    %c0_41 = arith.constant 0 : index
    %95 = vector.load %arg12[%c0_40, %c0_41] : memref<1x32xf32, #tpu.memory_space<vmem>>, vector<1x32xf32>
    %c0_42 = arith.constant 0 : index
    %c0_43 = arith.constant 0 : index
    %96 = vector.load %arg13[%c0_42, %c0_43] : memref<1x32xf32, #tpu.memory_space<vmem>>, vector<1x32xf32>
    %cst_44 = arith.constant dense<0.000000e+00> : vector<8xf32>
    %97 = vector.multi_reduction <add>, %94, %cst_44 [1] : vector<8x32xf32> to vector<8xf32>
    %98 = vector.shape_cast %97 : vector<8xf32> to vector<8x1xf32>
    %99 = arith.mulf %94, %94 : vector<8x32xf32>
    %cst_45 = arith.constant dense<0.000000e+00> : vector<8xf32>
    %100 = vector.multi_reduction <add>, %99, %cst_45 [1] : vector<8x32xf32> to vector<8xf32>
    %101 = vector.shape_cast %100 : vector<8xf32> to vector<8x1xf32>
    %cst_46 = arith.constant 3.125000e-02 : f32
    %102 = vector.broadcast %cst_46 : f32 to vector<8x1xf32>
    %103 = arith.mulf %98, %102 : vector<8x1xf32>
    %cst_47 = arith.constant 3.125000e-02 : f32
    %104 = vector.broadcast %cst_47 : f32 to vector<8x1xf32>
    %105 = arith.mulf %101, %104 : vector<8x1xf32>
    %106 = arith.mulf %103, %103 : vector<8x1xf32>
    %107 = arith.subf %105, %106 : vector<8x1xf32>
    %108 = vector.broadcast %103 : vector<8x1xf32> to vector<8x32xf32>
    %109 = arith.subf %94, %108 : vector<8x32xf32>
    %cst_48 = arith.constant 9.99999974E-6 : f32
    %110 = vector.broadcast %cst_48 : f32 to vector<8x1xf32>
    %111 = arith.addf %107, %110 : vector<8x1xf32>
    %112 = math.rsqrt %111 : vector<8x1xf32>
    %113 = vector.broadcast %112 : vector<8x1xf32> to vector<8x32xf32>
    %114 = arith.mulf %109, %113 : vector<8x32xf32>
    %115 = vector.broadcast %95 : vector<1x32xf32> to vector<8x32xf32>
    %116 = arith.mulf %114, %115 : vector<8x32xf32>
    %117 = vector.broadcast %96 : vector<1x32xf32> to vector<8x32xf32>
    %118 = arith.addf %116, %117 : vector<8x32xf32>
    %119 = arith.truncf %118 : vector<8x32xf32> to vector<8x32xbf16>
    %c0_49 = arith.constant 0 : index
    %c0_50 = arith.constant 0 : index
    %120 = vector.load %arg14[%c0_49, %c0_50] : memref<32x128xbf16, #tpu.memory_space<vmem>>, vector<32x128xbf16>
    %cst_51 = arith.constant dense<0.000000e+00> : vector<8x128xf32>
    %121 = tpu.matmul %119, %120, %cst_51 {dimension_numbers = #tpu.dot_dimension_numbers<[1], [0], [0], [1], [0, 0, 1, 1], [], []>} : vector<8x32xbf16>, vector<32x128xbf16>, vector<8x128xf32> -> vector<8x128xf32>
    %c0_52 = arith.constant 0 : index
    %c0_53 = arith.constant 0 : index
    %122 = vector.load %arg15[%c0_52, %c0_53] : memref<1x128xf32, #tpu.memory_space<vmem>>, vector<1x128xf32>
    %123 = vector.broadcast %122 : vector<1x128xf32> to vector<8x128xf32>
    %124 = arith.addf %121, %123 : vector<8x128xf32>
    %cst_54 = arith.constant 0.000000e+00 : f32
    %125 = vector.broadcast %cst_54 : f32 to vector<8x128xf32>
    %126 = arith.maximumf %124, %125 : vector<8x128xf32>
    %127 = arith.truncf %126 : vector<8x128xf32> to vector<8x128xbf16>
    %c0_55 = arith.constant 0 : index
    %c0_56 = arith.constant 0 : index
    %128 = vector.load %arg16[%c0_55, %c0_56] : memref<128x32xbf16, #tpu.memory_space<vmem>>, vector<128x32xbf16>
    %cst_57 = arith.constant dense<0.000000e+00> : vector<8x32xf32>
    %129 = tpu.matmul %127, %128, %cst_57 {dimension_numbers = #tpu.dot_dimension_numbers<[1], [0], [0], [1], [0, 0, 1, 1], [], []>} : vector<8x128xbf16>, vector<128x32xbf16>, vector<8x32xf32> -> vector<8x32xf32>
    %c0_58 = arith.constant 0 : index
    %c0_59 = arith.constant 0 : index
    %130 = vector.load %arg17[%c0_58, %c0_59] : memref<1x32xf32, #tpu.memory_space<vmem>>, vector<1x32xf32>
    %131 = vector.broadcast %130 : vector<1x32xf32> to vector<8x32xf32>
    %132 = arith.addf %129, %131 : vector<8x32xf32>
    %133 = arith.addf %132, %118 : vector<8x32xf32>
    %c0_60 = arith.constant 0 : index
    %c0_61 = arith.constant 0 : index
    %134 = vector.load %arg18[%c0_60, %c0_61] : memref<1x32xf32, #tpu.memory_space<vmem>>, vector<1x32xf32>
    %c0_62 = arith.constant 0 : index
    %c0_63 = arith.constant 0 : index
    %135 = vector.load %arg19[%c0_62, %c0_63] : memref<1x32xf32, #tpu.memory_space<vmem>>, vector<1x32xf32>
    %cst_64 = arith.constant dense<0.000000e+00> : vector<8xf32>
    %136 = vector.multi_reduction <add>, %133, %cst_64 [1] : vector<8x32xf32> to vector<8xf32>
    %137 = vector.shape_cast %136 : vector<8xf32> to vector<8x1xf32>
    %138 = arith.mulf %133, %133 : vector<8x32xf32>
    %cst_65 = arith.constant dense<0.000000e+00> : vector<8xf32>
    %139 = vector.multi_reduction <add>, %138, %cst_65 [1] : vector<8x32xf32> to vector<8xf32>
    %140 = vector.shape_cast %139 : vector<8xf32> to vector<8x1xf32>
    %cst_66 = arith.constant 3.125000e-02 : f32
    %141 = vector.broadcast %cst_66 : f32 to vector<8x1xf32>
    %142 = arith.mulf %137, %141 : vector<8x1xf32>
    %cst_67 = arith.constant 3.125000e-02 : f32
    %143 = vector.broadcast %cst_67 : f32 to vector<8x1xf32>
    %144 = arith.mulf %140, %143 : vector<8x1xf32>
    %145 = arith.mulf %142, %142 : vector<8x1xf32>
    %146 = arith.subf %144, %145 : vector<8x1xf32>
    %147 = vector.broadcast %142 : vector<8x1xf32> to vector<8x32xf32>
    %148 = arith.subf %133, %147 : vector<8x32xf32>
    %cst_68 = arith.constant 9.99999974E-6 : f32
    %149 = vector.broadcast %cst_68 : f32 to vector<8x1xf32>
    %150 = arith.addf %146, %149 : vector<8x1xf32>
    %151 = math.rsqrt %150 : vector<8x1xf32>
    %152 = vector.broadcast %151 : vector<8x1xf32> to vector<8x32xf32>
    %153 = arith.mulf %148, %152 : vector<8x32xf32>
    %154 = vector.broadcast %134 : vector<1x32xf32> to vector<8x32xf32>
    %155 = arith.mulf %153, %154 : vector<8x32xf32>
    %156 = vector.broadcast %135 : vector<1x32xf32> to vector<8x32xf32>
    %157 = arith.addf %155, %156 : vector<8x32xf32>
    %c0_69 = arith.constant 0 : index
    %c0_70 = arith.constant 0 : index
    %c0_71 = arith.constant 0 : index
    %158 = vector.load %arg20[%c0_69, %c0_70, %c0_71] : memref<1x8x32xf32, #tpu.memory_space<vmem>>, vector<1x8x32xf32>
    %159 = vector.shape_cast %158 : vector<1x8x32xf32> to vector<8x32xf32>
    %160 = vector.shape_cast %157 : vector<8x32xf32> to vector<1x8x32xf32>
    tpu.vector_store %arg20[%c0_69, %c0_70, %c0_71], %160 {strides = array<i32>} : memref<1x8x32xf32, #tpu.memory_space<vmem>>, vector<1x8x32xf32>,
    return
  }
  func.func @transform_0(%arg0: i32, %arg1: i32) -> (i32, i32, i32) {
    %c0_i32 = arith.constant 0 : i32
    %c0_i32_0 = arith.constant 0 : i32
    %c0_i32_1 = arith.constant 0 : i32
    return %arg0, %c0_i32, %c0_i32_0 : i32, i32, i32
  }
  func.func @transform_1(%arg0: i32, %arg1: i32) -> (i32, i32, i32) {
    %c0_i32 = arith.constant 0 : i32
    %c0_i32_0 = arith.constant 0 : i32
    return %arg0, %arg1, %c0_i32 : i32, i32, i32
  }
  func.func @transform_2(%arg0: i32, %arg1: i32) -> (i32, i32) {
    %c0_i32 = arith.constant 0 : i32
    %c0_i32_0 = arith.constant 0 : i32
    %c0_i32_1 = arith.constant 0 : i32
    return %c0_i32, %c0_i32_0 : i32, i32
  }
  func.func @transform_3(%arg0: i32, %arg1: i32) -> (i32, i32) {
    %c0_i32 = arith.constant 0 : i32
    %c0_i32_0 = arith.constant 0 : i32
    %c0_i32_1 = arith.constant 0 : i32
    return %c0_i32, %c0_i32_0 : i32, i32
  }
  func.func @transform_4(%arg0: i32, %arg1: i32) -> (i32, i32) {
    %c0_i32 = arith.constant 0 : i32
    %c0_i32_0 = arith.constant 0 : i32
    %c0_i32_1 = arith.constant 0 : i32
    return %c0_i32, %c0_i32_0 : i32, i32
  }
  func.func @transform_5(%arg0: i32, %arg1: i32) -> (i32, i32) {
    %c0_i32 = arith.constant 0 : i32
    %c0_i32_0 = arith.constant 0 : i32
    %c0_i32_1 = arith.constant 0 : i32
    return %c0_i32, %c0_i32_0 : i32, i32
  }
  func.func @transform_6(%arg0: i32, %arg1: i32) -> (i32, i32) {
    %c0_i32 = arith.constant 0 : i32
    %c0_i32_0 = arith.constant 0 : i32
    %c0_i32_1 = arith.constant 0 : i32
    return %c0_i32, %c0_i32_0 : i32, i32
  }
  func.func @transform_7(%arg0: i32, %arg1: i32) -> (i32, i32) {
    %c0_i32 = arith.constant 0 : i32
    %c0_i32_0 = arith.constant 0 : i32
    %c0_i32_1 = arith.constant 0 : i32
    return %c0_i32, %c0_i32_0 : i32, i32
  }
  func.func @transform_8(%arg0: i32, %arg1: i32) -> (i32, i32) {
    %c0_i32 = arith.constant 0 : i32
    %c0_i32_0 = arith.constant 0 : i32
    %c0_i32_1 = arith.constant 0 : i32
    return %c0_i32, %c0_i32_0 : i32, i32
  }
  func.func @transform_9(%arg0: i32, %arg1: i32) -> (i32, i32) {
    %c0_i32 = arith.constant 0 : i32
    %c0_i32_0 = arith.constant 0 : i32
    %c0_i32_1 = arith.constant 0 : i32
    return %c0_i32, %c0_i32_0 : i32, i32
  }
  func.func @transform_10(%arg0: i32, %arg1: i32) -> (i32, i32) {
    %c0_i32 = arith.constant 0 : i32
    %c0_i32_0 = arith.constant 0 : i32
    %c0_i32_1 = arith.constant 0 : i32
    return %c0_i32, %c0_i32_0 : i32, i32
  }
  func.func @transform_11(%arg0: i32, %arg1: i32) -> (i32, i32) {
    %c0_i32 = arith.constant 0 : i32
    %c0_i32_0 = arith.constant 0 : i32
    %c0_i32_1 = arith.constant 0 : i32
    return %c0_i32, %c0_i32_0 : i32, i32
  }
  func.func @transform_12(%arg0: i32, %arg1: i32) -> (i32, i32) {
    %c0_i32 = arith.constant 0 : i32
    %c0_i32_0 = arith.constant 0 : i32
    %c0_i32_1 = arith.constant 0 : i32
    return %c0_i32, %c0_i32_0 : i32, i32
  }
  func.func @transform_13(%arg0: i32, %arg1: i32) -> (i32, i32) {
    %c0_i32 = arith.constant 0 : i32
    %c0_i32_0 = arith.constant 0 : i32
    %c0_i32_1 = arith.constant 0 : i32
    return %c0_i32, %c0_i32_0 : i32, i32
  }
  func.func @transform_14(%arg0: i32, %arg1: i32) -> (i32, i32) {
    %c0_i32 = arith.constant 0 : i32
    %c0_i32_0 = arith.constant 0 : i32
    %c0_i32_1 = arith.constant 0 : i32
    return %c0_i32, %c0_i32_0 : i32, i32
  }
  func.func @transform_15(%arg0: i32, %arg1: i32) -> (i32, i32) {
    %c0_i32 = arith.constant 0 : i32
    %c0_i32_0 = arith.constant 0 : i32
    %c0_i32_1 = arith.constant 0 : i32
    return %c0_i32, %c0_i32_0 : i32, i32
  }
  func.func @transform_16(%arg0: i32, %arg1: i32) -> (i32, i32) {
    %c0_i32 = arith.constant 0 : i32
    %c0_i32_0 = arith.constant 0 : i32
    %c0_i32_1 = arith.constant 0 : i32
    return %c0_i32, %c0_i32_0 : i32, i32
  }
  func.func @transform_17(%arg0: i32, %arg1: i32) -> (i32, i32) {
    %c0_i32 = arith.constant 0 : i32
    %c0_i32_0 = arith.constant 0 : i32
    %c0_i32_1 = arith.constant 0 : i32
    return %c0_i32, %c0_i32_0 : i32, i32
  }
  func.func @transform_18(%arg0: i32, %arg1: i32) -> (i32, i32, i32) {
    %c0_i32 = arith.constant 0 : i32
    %c0_i32_0 = arith.constant 0 : i32
    return %arg0, %arg1, %c0_i32 : i32, i32, i32
  }
}

module attributes {stable_mosaic.version = 11 : i64} {
  func.func @_encoder_kernel(%arg0: i32, %arg1: i32, %arg2: memref<1x16x32xf32, #tpu.memory_space<vmem>>, %arg3: memref<1x8x32xf32, #tpu.memory_space<vmem>>, %arg4: memref<32x32xbf16, #tpu.memory_space<vmem>>, %arg5: memref<32x32xbf16, #tpu.memory_space<vmem>>, %arg6: memref<32x32xbf16, #tpu.memory_space<vmem>>, %arg7: memref<1x32xf32, #tpu.memory_space<vmem>>, %arg8: memref<1x32xf32, #tpu.memory_space<vmem>>, %arg9: memref<1x32xf32, #tpu.memory_space<vmem>>, %arg10: memref<32x32xbf16, #tpu.memory_space<vmem>>, %arg11: memref<1x32xf32, #tpu.memory_space<vmem>>, %arg12: memref<1x32xf32, #tpu.memory_space<vmem>>, %arg13: memref<1x32xf32, #tpu.memory_space<vmem>>, %arg14: memref<32x128xbf16, #tpu.memory_space<vmem>>, %arg15: memref<1x128xf32, #tpu.memory_space<vmem>>, %arg16: memref<128x32xbf16, #tpu.memory_space<vmem>>, %arg17: memref<1x32xf32, #tpu.memory_space<vmem>>, %arg18: memref<1x32xf32, #tpu.memory_space<vmem>>, %arg19: memref<1x32xf32, #tpu.memory_space<vmem>>, %arg20: memref<1x8x32xf32, #tpu.memory_space<vmem>>, %arg21: memref<16x32xbf16, #tpu.memory_space<vmem>>, %arg22: memref<16x32xbf16, #tpu.memory_space<vmem>>, %arg23: memref<8x32xbf16, #tpu.memory_space<vmem>>) attributes {dimension_semantics = [#tpu.dimension_semantics<parallel>, #tpu.dimension_semantics<arbitrary>], iteration_bounds = array<i64: 2, 2>, scalar_prefetch = 0 : i64, scratch_operands = 3 : i64, tpu.core_type = #tpu.core_type<tc>, window_params = [{transform_indices = @transform_0, window_bounds = array<i64: 1, 16, 32>}, {transform_indices = @transform_1, window_bounds = array<i64: 1, 8, 32>}, {pipeline_mode = #tpu.pipeline_mode<synchronous>, transform_indices = @transform_2, window_bounds = array<i64: 32, 32>}, {pipeline_mode = #tpu.pipeline_mode<synchronous>, transform_indices = @transform_3, window_bounds = array<i64: 32, 32>}, {pipeline_mode = #tpu.pipeline_mode<synchronous>, transform_indices = @transform_4, window_bounds = array<i64: 32, 32>}, {pipeline_mode = #tpu.pipeline_mode<synchronous>, transform_indices = @transform_5, window_bounds = array<i64: 1, 32>}, {pipeline_mode = #tpu.pipeline_mode<synchronous>, transform_indices = @transform_6, window_bounds = array<i64: 1, 32>}, {pipeline_mode = #tpu.pipeline_mode<synchronous>, transform_indices = @transform_7, window_bounds = array<i64: 1, 32>}, {pipeline_mode = #tpu.pipeline_mode<synchronous>, transform_indices = @transform_8, window_bounds = array<i64: 32, 32>}, {pipeline_mode = #tpu.pipeline_mode<synchronous>, transform_indices = @transform_9, window_bounds = array<i64: 1, 32>}, {pipeline_mode = #tpu.pipeline_mode<synchronous>, transform_indices = @transform_10, window_bounds = array<i64: 1, 32>}, {pipeline_mode = #tpu.pipeline_mode<synchronous>, transform_indices = @transform_11, window_bounds = array<i64: 1, 32>}, {pipeline_mode = #tpu.pipeline_mode<synchronous>, transform_indices = @transform_12, window_bounds = array<i64: 32, 128>}, {pipeline_mode = #tpu.pipeline_mode<synchronous>, transform_indices = @transform_13, window_bounds = array<i64: 1, 128>}, {pipeline_mode = #tpu.pipeline_mode<synchronous>, transform_indices = @transform_14, window_bounds = array<i64: 128, 32>}, {pipeline_mode = #tpu.pipeline_mode<synchronous>, transform_indices = @transform_15, window_bounds = array<i64: 1, 32>}, {pipeline_mode = #tpu.pipeline_mode<synchronous>, transform_indices = @transform_16, window_bounds = array<i64: 1, 32>}, {pipeline_mode = #tpu.pipeline_mode<synchronous>, transform_indices = @transform_17, window_bounds = array<i64: 1, 32>}, {transform_indices = @transform_18, window_bounds = array<i64: 1, 8, 32>}]} {
    %c0_i32 = arith.constant 0 : i32
    %0 = arith.cmpi eq, %arg1, %c0_i32 : i32
    %1 = arith.extui %0 : i1 to i32
    %c0_i32_0 = arith.constant 0 : i32
    %2 = arith.cmpi ne, %1, %c0_i32_0 : i32
    scf.if %2 {
      %c0_72 = arith.constant 0 : index
      %c0_73 = arith.constant 0 : index
      %c0_74 = arith.constant 0 : index
      %161 = vector.load %arg2[%c0_72, %c0_73, %c0_74] : memref<1x16x32xf32, #tpu.memory_space<vmem>>, vector<1x16x32xf32>
      %162 = vector.shape_cast %161 : vector<1x16x32xf32> to vector<16x32xf32>
      %163 = arith.truncf %162 : vector<16x32xf32> to vector<16x32xbf16>
      %c0_75 = arith.constant 0 : index
      %c0_76 = arith.constant 0 : index
      %164 = vector.load %arg5[%c0_75, %c0_76] : memref<32x32xbf16, #tpu.memory_space<vmem>>, vector<32x32xbf16>
      %cst_77 = arith.constant dense<0.000000e+00> : vector<16x32xf32>
      %165 = tpu.matmul %163, %164, %cst_77 {dimension_numbers = #tpu.dot_dimension_numbers<[1], [0], [0], [1], [0, 0, 1, 1], [], []>} : vector<16x32xbf16>, vector<32x32xbf16>, vector<16x32xf32> -> vector<16x32xf32>
      %c0_78 = arith.constant 0 : index
      %c0_79 = arith.constant 0 : index
      %166 = vector.load %arg8[%c0_78, %c0_79] : memref<1x32xf32, #tpu.memory_space<vmem>>, vector<1x32xf32>
      %167 = vector.broadcast %166 : vector<1x32xf32> to vector<16x32xf32>
      %168 = arith.addf %165, %167 : vector<16x32xf32>
      %c0_80 = arith.constant 0 : index
      %c0_81 = arith.constant 0 : index
      %169 = vector.load %arg6[%c0_80, %c0_81] : memref<32x32xbf16, #tpu.memory_space<vmem>>, vector<32x32xbf16>
      %cst_82 = arith.constant dense<0.000000e+00> : vector<16x32xf32>
      %170 = tpu.matmul %163, %169, %cst_82 {dimension_numbers = #tpu.dot_dimension_numbers<[1], [0], [0], [1], [0, 0, 1, 1], [], []>} : vector<16x32xbf16>, vector<32x32xbf16>, vector<16x32xf32> -> vector<16x32xf32>
      %c0_83 = arith.constant 0 : index
      %c0_84 = arith.constant 0 : index
      %171 = vector.load %arg9[%c0_83, %c0_84] : memref<1x32xf32, #tpu.memory_space<vmem>>, vector<1x32xf32>
      %172 = vector.broadcast %171 : vector<1x32xf32> to vector<16x32xf32>
      %173 = arith.addf %170, %172 : vector<16x32xf32>
      %174 = arith.truncf %168 : vector<16x32xf32> to vector<16x32xbf16>
      %c0_85 = arith.constant 0 : index
      %c0_86 = arith.constant 0 : index
      %175 = vector.load %arg21[%c0_85, %c0_86] : memref<16x32xbf16, #tpu.memory_space<vmem>>, vector<16x32xbf16>
      tpu.vector_store %arg21[%c0_85, %c0_86], %174 {strides = array<i32>} : memref<16x32xbf16, #tpu.memory_space<vmem>>, vector<16x32xbf16>,
      %176 = arith.truncf %173 : vector<16x32xf32> to vector<16x32xbf16>
      %c0_87 = arith.constant 0 : index
      %c0_88 = arith.constant 0 : index
      %177 = vector.load %arg22[%c0_87, %c0_88] : memref<16x32xbf16, #tpu.memory_space<vmem>>, vector<16x32xbf16>
      tpu.vector_store %arg22[%c0_87, %c0_88], %176 {strides = array<i32>} : memref<16x32xbf16, #tpu.memory_space<vmem>>, vector<16x32xbf16>,
    } else {
    }
    %c0 = arith.constant 0 : index
    %c0_1 = arith.constant 0 : index
    %c0_2 = arith.constant 0 : index
    %3 = vector.load %arg3[%c0, %c0_1, %c0_2] : memref<1x8x32xf32, #tpu.memory_space<vmem>>, vector<1x8x32xf32>
    %4 = vector.shape_cast %3 : vector<1x8x32xf32> to vector<8x32xf32>
    %5 = arith.truncf %4 : vector<8x32xf32> to vector<8x32xbf16>
    %c0_3 = arith.constant 0 : index
    %c0_4 = arith.constant 0 : index
    %6 = vector.load %arg4[%c0_3, %c0_4] : memref<32x32xbf16, #tpu.memory_space<vmem>>, vector<32x32xbf16>
    %cst = arith.constant dense<0.000000e+00> : vector<8x32xf32>
    %7 = tpu.matmul %5, %6, %cst {dimension_numbers = #tpu.dot_dimension_numbers<[1], [0], [0], [1], [0, 0, 1, 1], [], []>} : vector<8x32xbf16>, vector<32x32xbf16>, vector<8x32xf32> -> vector<8x32xf32>
    %c0_5 = arith.constant 0 : index
    %c0_6 = arith.constant 0 : index
    %8 = vector.load %arg7[%c0_5, %c0_6] : memref<1x32xf32, #tpu.memory_space<vmem>>, vector<1x32xf32>
    %9 = vector.broadcast %8 : vector<1x32xf32> to vector<8x32xf32>
    %10 = arith.addf %7, %9 : vector<8x32xf32>
    %cst_7 = arith.constant 0.353553385 : f32
    %11 = vector.broadcast %cst_7 : f32 to vector<8x32xf32>
    %12 = arith.mulf %10, %11 : vector<8x32xf32>
    %13 = arith.truncf %12 : vector<8x32xf32> to vector<8x32xbf16>
    %c0_8 = arith.constant 0 : index
    %c0_9 = arith.constant 0 : index
    %14 = vector.load %arg21[%c0_8, %c0_9] : memref<16x32xbf16, #tpu.memory_space<vmem>>, vector<16x32xbf16>
    %c0_10 = arith.constant 0 : index
    %c0_11 = arith.constant 0 : index
    %15 = vector.load %arg22[%c0_10, %c0_11] : memref<16x32xbf16, #tpu.memory_space<vmem>>, vector<16x32xbf16>
    %16 = vector.extract_strided_slice %13 {offsets = [0, 0], sizes = [8, 8], strides = [1, 1]} : vector<8x32xbf16> to vector<8x8xbf16>
    %17 = vector.extract_strided_slice %14 {offsets = [0, 0], sizes = [16, 8], strides = [1, 1]} : vector<16x32xbf16> to vector<16x8xbf16>
    %18 = vector.extract_strided_slice %15 {offsets = [0, 0], sizes = [16, 8], strides = [1, 1]} : vector<16x32xbf16> to vector<16x8xbf16>
    %cst_12 = arith.constant dense<0.000000e+00> : vector<8x16xf32>
    %19 = tpu.matmul %16, %17, %cst_12 {dimension_numbers = #tpu.dot_dimension_numbers<[1], [1], [0], [0], [0, 0, 1, 0], [], []>} : vector<8x8xbf16>, vector<16x8xbf16>, vector<8x16xf32> -> vector<8x16xf32>
    %cst_13 = arith.constant dense<0xFF800000> : vector<8xf32>
    %20 = vector.multi_reduction <maximumf>, %19, %cst_13 [1] : vector<8x16xf32> to vector<8xf32>
    %21 = vector.shape_cast %20 : vector<8xf32> to vector<8x1xf32>
    %22 = vector.broadcast %21 : vector<8x1xf32> to vector<8x16xf32>
    %23 = arith.subf %19, %22 : vector<8x16xf32>
    %24 = math.exp %23 : vector<8x16xf32>
    %cst_14 = arith.constant dense<0.000000e+00> : vector<8xf32>
    %25 = vector.multi_reduction <add>, %24, %cst_14 [1] : vector<8x16xf32> to vector<8xf32>
    %26 = vector.shape_cast %25 : vector<8xf32> to vector<8x1xf32>
    %27 = tpu.reciprocal %26 {approx = true} : vector<8x1xf32> -> vector<8x1xf32>
    %28 = vector.broadcast %27 : vector<8x1xf32> to vector<8x16xf32>
    %29 = arith.mulf %24, %28 : vector<8x16xf32>
    %30 = arith.truncf %29 : vector<8x16xf32> to vector<8x16xbf16>
    %cst_15 = arith.constant dense<0.000000e+00> : vector<8x8xf32>
    %31 = tpu.matmul %30, %18, %cst_15 {dimension_numbers = #tpu.dot_dimension_numbers<[1], [0], [0], [1], [0, 0, 1, 1], [], []>} : vector<8x16xbf16>, vector<16x8xbf16>, vector<8x8xf32> -> vector<8x8xf32>
    %32 = arith.truncf %31 : vector<8x8xf32> to vector<8x8xbf16>
    %c0_16 = arith.constant 0 : index
    %c0_17 = arith.constant 0 : index
    %33 = vector.load %arg23[%c0_16, %c0_17] : memref<8x32xbf16, #tpu.memory_space<vmem>>, vector<8x8xbf16>
    tpu.vector_store %arg23[%c0_16, %c0_17], %32 {strides = array<i32>} : memref<8x32xbf16, #tpu.memory_space<vmem>>, vector<8x8xbf16>,
    %34 = vector.extract_strided_slice %13 {offsets = [0, 8], sizes = [8, 8], strides = [1, 1]} : vector<8x32xbf16> to vector<8x8xbf16>
    %35 = vector.extract_strided_slice %14 {offsets = [0, 8], sizes = [16, 8], strides = [1, 1]} : vector<16x32xbf16> to vector<16x8xbf16>
    %36 = vector.extract_strided_slice %15 {offsets = [0, 8], sizes = [16, 8], strides = [1, 1]} : vector<16x32xbf16> to vector<16x8xbf16>
    %cst_18 = arith.constant dense<0.000000e+00> : vector<8x16xf32>
    %37 = tpu.matmul %34, %35, %cst_18 {dimension_numbers = #tpu.dot_dimension_numbers<[1], [1], [0], [0], [0, 0, 1, 0], [], []>} : vector<8x8xbf16>, vector<16x8xbf16>, vector<8x16xf32> -> vector<8x16xf32>
    %cst_19 = arith.constant dense<0xFF800000> : vector<8xf32>
    %38 = vector.multi_reduction <maximumf>, %37, %cst_19 [1] : vector<8x16xf32> to vector<8xf32>
    %39 = vector.shape_cast %38 : vector<8xf32> to vector<8x1xf32>
    %40 = vector.broadcast %39 : vector<8x1xf32> to vector<8x16xf32>
    %41 = arith.subf %37, %40 : vector<8x16xf32>
    %42 = math.exp %41 : vector<8x16xf32>
    %cst_20 = arith.constant dense<0.000000e+00> : vector<8xf32>
    %43 = vector.multi_reduction <add>, %42, %cst_20 [1] : vector<8x16xf32> to vector<8xf32>
    %44 = vector.shape_cast %43 : vector<8xf32> to vector<8x1xf32>
    %45 = tpu.reciprocal %44 {approx = true} : vector<8x1xf32> -> vector<8x1xf32>
    %46 = vector.broadcast %45 : vector<8x1xf32> to vector<8x16xf32>
    %47 = arith.mulf %42, %46 : vector<8x16xf32>
    %48 = arith.truncf %47 : vector<8x16xf32> to vector<8x16xbf16>
    %cst_21 = arith.constant dense<0.000000e+00> : vector<8x8xf32>
    %49 = tpu.matmul %48, %36, %cst_21 {dimension_numbers = #tpu.dot_dimension_numbers<[1], [0], [0], [1], [0, 0, 1, 1], [], []>} : vector<8x16xbf16>, vector<16x8xbf16>, vector<8x8xf32> -> vector<8x8xf32>
    %50 = arith.truncf %49 : vector<8x8xf32> to vector<8x8xbf16>
    %c0_22 = arith.constant 0 : index
    %c8 = arith.constant 8 : index
    %51 = vector.load %arg23[%c0_22, %c8] : memref<8x32xbf16, #tpu.memory_space<vmem>>, vector<8x8xbf16>
    tpu.vector_store %arg23[%c0_22, %c8], %50 {strides = array<i32>} : memref<8x32xbf16, #tpu.memory_space<vmem>>, vector<8x8xbf16>,
    %52 = vector.extract_strided_slice %13 {offsets = [0, 16], sizes = [8, 8], strides = [1, 1]} : vector<8x32xbf16> to vector<8x8xbf16>
    %53 = vector.extract_strided_slice %14 {offsets = [0, 16], sizes = [16, 8], strides = [1, 1]} : vector<16x32xbf16> to vector<16x8xbf16>
    %54 = vector.extract_strided_slice %15 {offsets = [0, 16], sizes = [16, 8], strides = [1, 1]} : vector<16x32xbf16> to vector<16x8xbf16>
    %cst_23 = arith.constant dense<0.000000e+00> : vector<8x16xf32>
    %55 = tpu.matmul %52, %53, %cst_23 {dimension_numbers = #tpu.dot_dimension_numbers<[1], [1], [0], [0], [0, 0, 1, 0], [], []>} : vector<8x8xbf16>, vector<16x8xbf16>, vector<8x16xf32> -> vector<8x16xf32>
    %cst_24 = arith.constant dense<0xFF800000> : vector<8xf32>
    %56 = vector.multi_reduction <maximumf>, %55, %cst_24 [1] : vector<8x16xf32> to vector<8xf32>
    %57 = vector.shape_cast %56 : vector<8xf32> to vector<8x1xf32>
    %58 = vector.broadcast %57 : vector<8x1xf32> to vector<8x16xf32>
    %59 = arith.subf %55, %58 : vector<8x16xf32>
    %60 = math.exp %59 : vector<8x16xf32>
    %cst_25 = arith.constant dense<0.000000e+00> : vector<8xf32>
    %61 = vector.multi_reduction <add>, %60, %cst_25 [1] : vector<8x16xf32> to vector<8xf32>
    %62 = vector.shape_cast %61 : vector<8xf32> to vector<8x1xf32>
    %63 = tpu.reciprocal %62 {approx = true} : vector<8x1xf32> -> vector<8x1xf32>
    %64 = vector.broadcast %63 : vector<8x1xf32> to vector<8x16xf32>
    %65 = arith.mulf %60, %64 : vector<8x16xf32>
    %66 = arith.truncf %65 : vector<8x16xf32> to vector<8x16xbf16>
    %cst_26 = arith.constant dense<0.000000e+00> : vector<8x8xf32>
    %67 = tpu.matmul %66, %54, %cst_26 {dimension_numbers = #tpu.dot_dimension_numbers<[1], [0], [0], [1], [0, 0, 1, 1], [], []>} : vector<8x16xbf16>, vector<16x8xbf16>, vector<8x8xf32> -> vector<8x8xf32>
    %68 = arith.truncf %67 : vector<8x8xf32> to vector<8x8xbf16>
    %c0_27 = arith.constant 0 : index
    %c16 = arith.constant 16 : index
    %69 = vector.load %arg23[%c0_27, %c16] : memref<8x32xbf16, #tpu.memory_space<vmem>>, vector<8x8xbf16>
    tpu.vector_store %arg23[%c0_27, %c16], %68 {strides = array<i32>} : memref<8x32xbf16, #tpu.memory_space<vmem>>, vector<8x8xbf16>,
    %70 = vector.extract_strided_slice %13 {offsets = [0, 24], sizes = [8, 8], strides = [1, 1]} : vector<8x32xbf16> to vector<8x8xbf16>
    %71 = vector.extract_strided_slice %14 {offsets = [0, 24], sizes = [16, 8], strides = [1, 1]} : vector<16x32xbf16> to vector<16x8xbf16>
    %72 = vector.extract_strided_slice %15 {offsets = [0, 24], sizes = [16, 8], strides = [1, 1]} : vector<16x32xbf16> to vector<16x8xbf16>
    %cst_28 = arith.constant dense<0.000000e+00> : vector<8x16xf32>
    %73 = tpu.matmul %70, %71, %cst_28 {dimension_numbers = #tpu.dot_dimension_numbers<[1], [1], [0], [0], [0, 0, 1, 0], [], []>} : vector<8x8xbf16>, vector<16x8xbf16>, vector<8x16xf32> -> vector<8x16xf32>
    %cst_29 = arith.constant dense<0xFF800000> : vector<8xf32>
    %74 = vector.multi_reduction <maximumf>, %73, %cst_29 [1] : vector<8x16xf32> to vector<8xf32>
    %75 = vector.shape_cast %74 : vector<8xf32> to vector<8x1xf32>
    %76 = vector.broadcast %75 : vector<8x1xf32> to vector<8x16xf32>
    %77 = arith.subf %73, %76 : vector<8x16xf32>
    %78 = math.exp %77 : vector<8x16xf32>
    %cst_30 = arith.constant dense<0.000000e+00> : vector<8xf32>
    %79 = vector.multi_reduction <add>, %78, %cst_30 [1] : vector<8x16xf32> to vector<8xf32>
    %80 = vector.shape_cast %79 : vector<8xf32> to vector<8x1xf32>
    %81 = tpu.reciprocal %80 {approx = true} : vector<8x1xf32> -> vector<8x1xf32>
    %82 = vector.broadcast %81 : vector<8x1xf32> to vector<8x16xf32>
    %83 = arith.mulf %78, %82 : vector<8x16xf32>
    %84 = arith.truncf %83 : vector<8x16xf32> to vector<8x16xbf16>
    %cst_31 = arith.constant dense<0.000000e+00> : vector<8x8xf32>
    %85 = tpu.matmul %84, %72, %cst_31 {dimension_numbers = #tpu.dot_dimension_numbers<[1], [0], [0], [1], [0, 0, 1, 1], [], []>} : vector<8x16xbf16>, vector<16x8xbf16>, vector<8x8xf32> -> vector<8x8xf32>
    %86 = arith.truncf %85 : vector<8x8xf32> to vector<8x8xbf16>
    %c0_32 = arith.constant 0 : index
    %c24 = arith.constant 24 : index
    %87 = vector.load %arg23[%c0_32, %c24] : memref<8x32xbf16, #tpu.memory_space<vmem>>, vector<8x8xbf16>
    tpu.vector_store %arg23[%c0_32, %c24], %86 {strides = array<i32>} : memref<8x32xbf16, #tpu.memory_space<vmem>>, vector<8x8xbf16>,
    %c0_33 = arith.constant 0 : index
    %c0_34 = arith.constant 0 : index
    %88 = vector.load %arg23[%c0_33, %c0_34] : memref<8x32xbf16, #tpu.memory_space<vmem>>, vector<8x32xbf16>
    %c0_35 = arith.constant 0 : index
    %c0_36 = arith.constant 0 : index
    %89 = vector.load %arg10[%c0_35, %c0_36] : memref<32x32xbf16, #tpu.memory_space<vmem>>, vector<32x32xbf16>
    %cst_37 = arith.constant dense<0.000000e+00> : vector<8x32xf32>
    %90 = tpu.matmul %88, %89, %cst_37 {dimension_numbers = #tpu.dot_dimension_numbers<[1], [0], [0], [1], [0, 0, 1, 1], [], []>} : vector<8x32xbf16>, vector<32x32xbf16>, vector<8x32xf32> -> vector<8x32xf32>
    %c0_38 = arith.constant 0 : index
    %c0_39 = arith.constant 0 : index
    %91 = vector.load %arg11[%c0_38, %c0_39] : memref<1x32xf32, #tpu.memory_space<vmem>>, vector<1x32xf32>
    %92 = vector.broadcast %91 : vector<1x32xf32> to vector<8x32xf32>
    %93 = arith.addf %90, %92 : vector<8x32xf32>
    %94 = arith.addf %93, %4 : vector<8x32xf32>
    %c0_40 = arith.constant 0 : index
    %c0_41 = arith.constant 0 : index
    %95 = vector.load %arg12[%c0_40, %c0_41] : memref<1x32xf32, #tpu.memory_space<vmem>>, vector<1x32xf32>
    %c0_42 = arith.constant 0 : index
    %c0_43 = arith.constant 0 : index
    %96 = vector.load %arg13[%c0_42, %c0_43] : memref<1x32xf32, #tpu.memory_space<vmem>>, vector<1x32xf32>
    %cst_44 = arith.constant dense<0.000000e+00> : vector<8xf32>
    %97 = vector.multi_reduction <add>, %94, %cst_44 [1] : vector<8x32xf32> to vector<8xf32>
    %98 = vector.shape_cast %97 : vector<8xf32> to vector<8x1xf32>
    %99 = arith.mulf %94, %94 : vector<8x32xf32>
    %cst_45 = arith.constant dense<0.000000e+00> : vector<8xf32>
    %100 = vector.multi_reduction <add>, %99, %cst_45 [1] : vector<8x32xf32> to vector<8xf32>
    %101 = vector.shape_cast %100 : vector<8xf32> to vector<8x1xf32>
    %cst_46 = arith.constant 3.125000e-02 : f32
    %102 = vector.broadcast %cst_46 : f32 to vector<8x1xf32>
    %103 = arith.mulf %98, %102 : vector<8x1xf32>
    %cst_47 = arith.constant 3.125000e-02 : f32
    %104 = vector.broadcast %cst_47 : f32 to vector<8x1xf32>
    %105 = arith.mulf %101, %104 : vector<8x1xf32>
    %106 = arith.mulf %103, %103 : vector<8x1xf32>
    %107 = arith.subf %105, %106 : vector<8x1xf32>
    %108 = vector.broadcast %103 : vector<8x1xf32> to vector<8x32xf32>
    %109 = arith.subf %94, %108 : vector<8x32xf32>
    %cst_48 = arith.constant 9.99999974E-6 : f32
    %110 = vector.broadcast %cst_48 : f32 to vector<8x1xf32>
    %111 = arith.addf %107, %110 : vector<8x1xf32>
    %112 = math.rsqrt %111 : vector<8x1xf32>
    %113 = vector.broadcast %112 : vector<8x1xf32> to vector<8x32xf32>
    %114 = arith.mulf %109, %113 : vector<8x32xf32>
    %115 = vector.broadcast %95 : vector<1x32xf32> to vector<8x32xf32>
    %116 = arith.mulf %114, %115 : vector<8x32xf32>
    %117 = vector.broadcast %96 : vector<1x32xf32> to vector<8x32xf32>
    %118 = arith.addf %116, %117 : vector<8x32xf32>
    %119 = arith.truncf %118 : vector<8x32xf32> to vector<8x32xbf16>
    %c0_49 = arith.constant 0 : index
    %c0_50 = arith.constant 0 : index
    %120 = vector.load %arg14[%c0_49, %c0_50] : memref<32x128xbf16, #tpu.memory_space<vmem>>, vector<32x128xbf16>
    %cst_51 = arith.constant dense<0.000000e+00> : vector<8x128xf32>
    %121 = tpu.matmul %119, %120, %cst_51 {dimension_numbers = #tpu.dot_dimension_numbers<[1], [0], [0], [1], [0, 0, 1, 1], [], []>} : vector<8x32xbf16>, vector<32x128xbf16>, vector<8x128xf32> -> vector<8x128xf32>
    %c0_52 = arith.constant 0 : index
    %c0_53 = arith.constant 0 : index
    %122 = vector.load %arg15[%c0_52, %c0_53] : memref<1x128xf32, #tpu.memory_space<vmem>>, vector<1x128xf32>
    %123 = vector.broadcast %122 : vector<1x128xf32> to vector<8x128xf32>
    %124 = arith.addf %121, %123 : vector<8x128xf32>
    %cst_54 = arith.constant 0.000000e+00 : f32
    %125 = vector.broadcast %cst_54 : f32 to vector<8x128xf32>
    %126 = arith.maximumf %124, %125 : vector<8x128xf32>
    %127 = arith.truncf %126 : vector<8x128xf32> to vector<8x128xbf16>
    %c0_55 = arith.constant 0 : index
    %c0_56 = arith.constant 0 : index
    %128 = vector.load %arg16[%c0_55, %c0_56] : memref<128x32xbf16, #tpu.memory_space<vmem>>, vector<128x32xbf16>
    %cst_57 = arith.constant dense<0.000000e+00> : vector<8x32xf32>
    %129 = tpu.matmul %127, %128, %cst_57 {dimension_numbers = #tpu.dot_dimension_numbers<[1], [0], [0], [1], [0, 0, 1, 1], [], []>} : vector<8x128xbf16>, vector<128x32xbf16>, vector<8x32xf32> -> vector<8x32xf32>
    %c0_58 = arith.constant 0 : index
    %c0_59 = arith.constant 0 : index
    %130 = vector.load %arg17[%c0_58, %c0_59] : memref<1x32xf32, #tpu.memory_space<vmem>>, vector<1x32xf32>
    %131 = vector.broadcast %130 : vector<1x32xf32> to vector<8x32xf32>
    %132 = arith.addf %129, %131 : vector<8x32xf32>
    %133 = arith.addf %132, %118 : vector<8x32xf32>
    %c0_60 = arith.constant 0 : index
    %c0_61 = arith.constant 0 : index
    %134 = vector.load %arg18[%c0_60, %c0_61] : memref<1x32xf32, #tpu.memory_space<vmem>>, vector<1x32xf32>
    %c0_62 = arith.constant 0 : index
    %c0_63 = arith.constant 0 : index
    %135 = vector.load %arg19[%c0_62, %c0_63] : memref<1x32xf32, #tpu.memory_space<vmem>>, vector<1x32xf32>
    %cst_64 = arith.constant dense<0.000000e+00> : vector<8xf32>
    %136 = vector.multi_reduction <add>, %133, %cst_64 [1] : vector<8x32xf32> to vector<8xf32>
    %137 = vector.shape_cast %136 : vector<8xf32> to vector<8x1xf32>
    %138 = arith.mulf %133, %133 : vector<8x32xf32>
    %cst_65 = arith.constant dense<0.000000e+00> : vector<8xf32>
    %139 = vector.multi_reduction <add>, %138, %cst_65 [1] : vector<8x32xf32> to vector<8xf32>
    %140 = vector.shape_cast %139 : vector<8xf32> to vector<8x1xf32>
    %cst_66 = arith.constant 3.125000e-02 : f32
    %141 = vector.broadcast %cst_66 : f32 to vector<8x1xf32>
    %142 = arith.mulf %137, %141 : vector<8x1xf32>
    %cst_67 = arith.constant 3.125000e-02 : f32
    %143 = vector.broadcast %cst_67 : f32 to vector<8x1xf32>
    %144 = arith.mulf %140, %143 : vector<8x1xf32>
    %145 = arith.mulf %142, %142 : vector<8x1xf32>
    %146 = arith.subf %144, %145 : vector<8x1xf32>
    %147 = vector.broadcast %142 : vector<8x1xf32> to vector<8x32xf32>
    %148 = arith.subf %133, %147 : vector<8x32xf32>
    %cst_68 = arith.constant 9.99999974E-6 : f32
    %149 = vector.broadcast %cst_68 : f32 to vector<8x1xf32>
    %150 = arith.addf %146, %149 : vector<8x1xf32>
    %151 = math.rsqrt %150 : vector<8x1xf32>
    %152 = vector.broadcast %151 : vector<8x1xf32> to vector<8x32xf32>
    %153 = arith.mulf %148, %152 : vector<8x32xf32>
    %154 = vector.broadcast %134 : vector<1x32xf32> to vector<8x32xf32>
    %155 = arith.mulf %153, %154 : vector<8x32xf32>
    %156 = vector.broadcast %135 : vector<1x32xf32> to vector<8x32xf32>
    %157 = arith.addf %155, %156 : vector<8x32xf32>
    %c0_69 = arith.constant 0 : index
    %c0_70 = arith.constant 0 : index
    %c0_71 = arith.constant 0 : index
    %158 = vector.load %arg20[%c0_69, %c0_70, %c0_71] : memref<1x8x32xf32, #tpu.memory_space<vmem>>, vector<1x8x32xf32>
    %159 = vector.shape_cast %158 : vector<1x8x32xf32> to vector<8x32xf32>
    %160 = vector.shape_cast %157 : vector<8x32xf32> to vector<1x8x32xf32>
    tpu.vector_store %arg20[%c0_69, %c0_70, %c0_71], %160 {strides = array<i32>} : memref<1x8x32xf32, #tpu.memory_space<vmem>>, vector<1x8x32xf32>,
    return
  }
  func.func @transform_0(%arg0: i32, %arg1: i32) -> (i32, i32, i32) {
    %c0_i32 = arith.constant 0 : i32
    %c0_i32_0 = arith.constant 0 : i32
    %c0_i32_1 = arith.constant 0 : i32
    return %arg0, %c0_i32, %c0_i32_0 : i32, i32, i32
  }
  func.func @transform_1(%arg0: i32, %arg1: i32) -> (i32, i32, i32) {
    %c0_i32 = arith.constant 0 : i32
    %c0_i32_0 = arith.constant 0 : i32
    return %arg0, %arg1, %c0_i32 : i32, i32, i32
  }
  func.func @transform_2(%arg0: i32, %arg1: i32) -> (i32, i32) {
    %c0_i32 = arith.constant 0 : i32
    %c0_i32_0 = arith.constant 0 : i32
    %c0_i32_1 = arith.constant 0 : i32
    return %c0_i32, %c0_i32_0 : i32, i32
  }
  func.func @transform_3(%arg0: i32, %arg1: i32) -> (i32, i32) {
    %c0_i32 = arith.constant 0 : i32
    %c0_i32_0 = arith.constant 0 : i32
    %c0_i32_1 = arith.constant 0 : i32
    return %c0_i32, %c0_i32_0 : i32, i32
  }
  func.func @transform_4(%arg0: i32, %arg1: i32) -> (i32, i32) {
    %c0_i32 = arith.constant 0 : i32
    %c0_i32_0 = arith.constant 0 : i32
    %c0_i32_1 = arith.constant 0 : i32
    return %c0_i32, %c0_i32_0 : i32, i32
  }
  func.func @transform_5(%arg0: i32, %arg1: i32) -> (i32, i32) {
    %c0_i32 = arith.constant 0 : i32
    %c0_i32_0 = arith.constant 0 : i32
    %c0_i32_1 = arith.constant 0 : i32
    return %c0_i32, %c0_i32_0 : i32, i32
  }
  func.func @transform_6(%arg0: i32, %arg1: i32) -> (i32, i32) {
    %c0_i32 = arith.constant 0 : i32
    %c0_i32_0 = arith.constant 0 : i32
    %c0_i32_1 = arith.constant 0 : i32
    return %c0_i32, %c0_i32_0 : i32, i32
  }
  func.func @transform_7(%arg0: i32, %arg1: i32) -> (i32, i32) {
    %c0_i32 = arith.constant 0 : i32
    %c0_i32_0 = arith.constant 0 : i32
    %c0_i32_1 = arith.constant 0 : i32
    return %c0_i32, %c0_i32_0 : i32, i32
  }
  func.func @transform_8(%arg0: i32, %arg1: i32) -> (i32, i32) {
    %c0_i32 = arith.constant 0 : i32
    %c0_i32_0 = arith.constant 0 : i32
    %c0_i32_1 = arith.constant 0 : i32
    return %c0_i32, %c0_i32_0 : i32, i32
  }
  func.func @transform_9(%arg0: i32, %arg1: i32) -> (i32, i32) {
    %c0_i32 = arith.constant 0 : i32
    %c0_i32_0 = arith.constant 0 : i32
    %c0_i32_1 = arith.constant 0 : i32
    return %c0_i32, %c0_i32_0 : i32, i32
  }
  func.func @transform_10(%arg0: i32, %arg1: i32) -> (i32, i32) {
    %c0_i32 = arith.constant 0 : i32
    %c0_i32_0 = arith.constant 0 : i32
    %c0_i32_1 = arith.constant 0 : i32
    return %c0_i32, %c0_i32_0 : i32, i32
  }
  func.func @transform_11(%arg0: i32, %arg1: i32) -> (i32, i32) {
    %c0_i32 = arith.constant 0 : i32
    %c0_i32_0 = arith.constant 0 : i32
    %c0_i32_1 = arith.constant 0 : i32
    return %c0_i32, %c0_i32_0 : i32, i32
  }
  func.func @transform_12(%arg0: i32, %arg1: i32) -> (i32, i32) {
    %c0_i32 = arith.constant 0 : i32
    %c0_i32_0 = arith.constant 0 : i32
    %c0_i32_1 = arith.constant 0 : i32
    return %c0_i32, %c0_i32_0 : i32, i32
  }
  func.func @transform_13(%arg0: i32, %arg1: i32) -> (i32, i32) {
    %c0_i32 = arith.constant 0 : i32
    %c0_i32_0 = arith.constant 0 : i32
    %c0_i32_1 = arith.constant 0 : i32
    return %c0_i32, %c0_i32_0 : i32, i32
  }
  func.func @transform_14(%arg0: i32, %arg1: i32) -> (i32, i32) {
    %c0_i32 = arith.constant 0 : i32
    %c0_i32_0 = arith.constant 0 : i32
    %c0_i32_1 = arith.constant 0 : i32
    return %c0_i32, %c0_i32_0 : i32, i32
  }
  func.func @transform_15(%arg0: i32, %arg1: i32) -> (i32, i32) {
    %c0_i32 = arith.constant 0 : i32
    %c0_i32_0 = arith.constant 0 : i32
    %c0_i32_1 = arith.constant 0 : i32
    return %c0_i32, %c0_i32_0 : i32, i32
  }
  func.func @transform_16(%arg0: i32, %arg1: i32) -> (i32, i32) {
    %c0_i32 = arith.constant 0 : i32
    %c0_i32_0 = arith.constant 0 : i32
    %c0_i32_1 = arith.constant 0 : i32
    return %c0_i32, %c0_i32_0 : i32, i32
  }
  func.func @transform_17(%arg0: i32, %arg1: i32) -> (i32, i32) {
    %c0_i32 = arith.constant 0 : i32
    %c0_i32_0 = arith.constant 0 : i32
    %c0_i32_1 = arith.constant 0 : i32
    return %c0_i32, %c0_i32_0 : i32, i32
  }
  func.func @transform_18(%arg0: i32, %arg1: i32) -> (i32, i32, i32) {
    %c0_i32 = arith.constant 0 : i32
    %c0_i32_0 = arith.constant 0 : i32
    return %arg0, %arg1, %c0_i32 : i32, i32, i32
  }
}

</mosaic_0001>

<bundles_post_ra>
// kernel: tpu_custom_call.1
= control target key start
LH: loop header
LB: loop body
LE: loop exit
PB: predicated region body
PF: predicated region fallthrough
CT: control target
= control target key end

     0   :  { %s3030_s0 = inlined_call_operand.vmem [shape: f32[2,16,32], index: 0, kind: input, shape index: {}]   ;;  %s3031_s1 = inlined_call_operand.vmem [shape: f32[2,16,32], index: 1, kind: input, shape index: {}]   ;;  %s3032_s2 = inlined_call_operand.vmem [shape: bf16[32,32], index: 2, kind: input, shape index: {}]   ;;  %s3033_s3 = inlined_call_operand.hbm [shape: bf16[32,32], index: 3, kind: input, shape index: {}]   ;;  %s3034_s4 = inlined_call_operand.hbm [shape: bf16[32,32], index: 4, kind: input, shape index: {}]   ;;  %s3035_s5 = inlined_call_operand.vmem [shape: f32[1,32], index: 5, kind: input, shape index: {}]   ;;  %s3036_s6 = inlined_call_operand.vmem [shape: f32[1,32], index: 6, kind: input, shape index: {}]   ;;  %s3037_s7 = inlined_call_operand.hbm [shape: f32[1,32], index: 7, kind: input, shape index: {}]   ;;  %s3038_s8 = inlined_call_operand.hbm [shape: bf16[32,32], index: 8, kind: input, shape index: {}]   ;;  %s3039_s9 = inlined_call_operand.hbm [shape: f32[1,32], index: 9, kind: input, shape index: {}]   ;;  %s3040_s10 = inlined_call_operand.vmem [shape: f32[1,32], index: 10, kind: input, shape index: {}]   ;;  %s3041_s11 = inlined_call_operand.vmem [shape: f32[1,32], index: 11, kind: input, shape index: {}]   ;;  %s3042_s12 = inlined_call_operand.vmem [shape: bf16[32,128], index: 12, kind: input, shape index: {}]   ;;  %s3043_s13 = inlined_call_operand.vmem [shape: f32[1,128], index: 13, kind: input, shape index: {}]   ;;  %s3044_s14 = inlined_call_operand.vmem [shape: bf16[128,32], index: 14, kind: input, shape index: {}]   ;;  %s3045_s15 = inlined_call_operand.vmem [shape: f32[1,32], index: 15, kind: input, shape index: {}]   ;;  %s3046_s16 = inlined_call_operand.vmem [shape: f32[1,32], index: 16, kind: input, shape index: {}]   ;;  %s3047_s17 = inlined_call_operand.vmem [shape: f32[1,32], index: 17, kind: input, shape index: {}]   ;;  %s3048_s18 = inlined_call_operand.hbm [shape: f32[2,16,32], index: 18, kind: output, shape index: {}]  }
   0x1   :  { %3066 = sst [smem:[#allocation29_spill]] %s3030_s0 }
   0x2   :  { %3067 = sst [smem:[#allocation30_spill]] %s3031_s1 }
   0x3   :  { %3068 = sst [smem:[#allocation31_spill]] %s3032_s2 }
   0x4   :  { %3069 = sst [smem:[#allocation32_spill]] %s3034_s4 }
   0x5   :  { %3070 = sst [smem:[#allocation33_spill]] %s3041_s11 }
   0x6   :  { %3071 = sst [smem:[#allocation34_spill]] %s3043_s13 }
   0x7   :  { %3072 = sst [smem:[#allocation35_spill]] %s3045_s15 }
   0x8   :  { %3073 = sst [smem:[#allocation36_spill]] %s3046_s16 }
   0x9   :  { %3074 = sst [smem:[#allocation37_spill]] %s3047_s17 }
   0xa   :  { %3075 = sst [smem:[#allocation38_spill]] %s3048_s18 }
   0xb   :  { %23 = vsyncpa [#allocation6], 0 }
   0xc   :  { %24 = vsyncpa [#allocation9], 0 }
   0xd   :  { %25 = vsyncpa [#allocation12], 0 }
   0xe   :  { %26 = vsyncpa [#allocation7], 0 }
   0xf   :  { %28 = vsyncpa [#allocation7 + $0x1], 0  ;;  %s2588_s27 = smov 0   ;;  %s2590_s28 = smov 0  }
  0x10   :  { %s2592_s29 = smov 0   ;;  %s2594_s30 = smov 0  }
  0x11   :  { %s2596_s0 = smov 0   ;;  %s2598_s19 = smov 0  }
  0x12   :  { %s2600_s1 = smov 0   ;;  %s2602_s20 = smov 0  }
  0x13 LB: > { %3076 = sst [smem:[#allocation19_spill]] %s2445_s27  ;;  %s1833_s21 = sadd.s32 4294967295, %s2473_s20   ;;  %s2473_s20 = sphi %s2602_s20, %s34_s20   ;;  %s2469_s1 = sphi %s2600_s1, %s3115_s1   ;;  %s2465_s19 = sphi %s2598_s19, %s3114_s19   ;;  %s2461_s0 = sphi %s2596_s0, %s3113_s0   ;;  %s2457_s30 = sphi %s2594_s30, %s3112_s30   ;;  %s2453_s29 = sphi %s2592_s29, %s3111_s29   ;;  %s2449_s28 = sphi %s2590_s28, %s3117_s28   ;;  %s2445_s27 = sphi %s2588_s27, %s3116_s27  }
  0x14   : > { %3077 = sst [smem:[#allocation20_spill]] %s2453_s29  ;;  %s1834_s22 = sadd.s32 4294967294, %s2473_s20  }
  0x15   : > { %3078 = sst [smem:[#allocation21_spill]] %s2465_s19  ;;  %s43_s2 = sadd.s32 1, %s2465_s19 }
  0x16   : > { %3079 = sst [smem:[#allocation22_spill]] %s2469_s1  ;;  %s46_s23 = sadd.s32 1, %s2469_s1 }
  0x17   : > { %3080 = sst [smem:[#allocation23_spill]] %s2473_s20  ;;  %p44_p0 = scmp.ge.s32.totalorder %s43_s2, 2 }
  0x18   : > { %s445_s24 = sadd.s32 1, %s2453_s29  ;;  %p455_p1 = scmp.ne.s32.totalorder %s2453_s29, %s2449_s28 }
  0x19   : > { %p456_p2 = scmp.eq.s32.totalorder %s1833_s21, 3  ;;  %s3119_s2 = smov (%p44_p0, %s43_s2), 0 }
  0x1a   : > { %3081 = sst [smem:[#allocation24_spill]] %s3119_s2  ;;  %s3121_s23 = smov (!%p44_p0, %s46_s23), %s2469_s1 }
  0x1b   : > { %s441_s25 = ssub.s32 %s2465_s19, %s3119_s2  ;;  %p2640_p3 = por %p456_p2, %p455_p1 }
  0x1c   : > { %p48_p4 = scmp.ge.s32.totalorder %s3121_s23, 2  ;;  %p461_p5 = scmp.ne.s32.totalorder %s2449_s28, %s2445_s27 }
  0x1d   : > { %s3082_s26 = scalar_select %p2640_p3, 1, 0 }
  0x1e   : > { %p462_p6 = scmp.eq.s32.totalorder %s1834_s22, 3  ;;  %p1835_p7 = scmp.ge.s32.totalorder %s2473_s20, 1 }
  0x1f   : > { %3083 = sst [smem:[#allocation25_spill]] %s3082_s26  ;;  %s3123_s23 = smov (%p48_p4, %s3121_s23), 0 }
  0x20   : > { %3084 = sst [smem:[#allocation26_spill]] %s3123_s23  ;;  %p2649_p8 = por %p462_p6, %p461_p5 }
  0x21   : > { %p469_p9 = scmp.lt.s32.totalorder %s2473_s20, 5  ;;  %s440_s17 = ssub.s32 %s2469_s1, %s3123_s23 }
  0x22   : > { %s3085_s18 = scalar_select %p2649_p8, 1, 0 }
  0x23   : > { %s442_s16 = sor.u32 %s441_s25, %s440_s17  ;;  %p2656_p10 = pnand %p1835_p7, %p469_p9 }
  0x24   : > { %3086 = sst [smem:[#allocation27_spill]] %s3085_s18  ;;  %p443_p11 = scmp.eq.s32.totalorder %s442_s16, 0 }
  0x25   : > { %s3087_s2 = scalar_select %p2656_p10, 1, 0 }
  0x26   : > { %p2660_p12 = scmp.eq.s32.totalorder %s1833_s21, 0  ;;  %p2077_p13 = pneg %p2656_p10 }
  0x27   : > { %s2667_s22 = scalar_select %p443_p11, %s2453_s29, %s445_s24  }
  0x28   : > { %s3088_s19 = scalar_select %p2660_p12, 1, 0 }
  0x29   : > { %3089 = sst [smem:[#allocation28_spill]] %s2667_s22  ;;  %p2671_p0 = pnand %p2660_p12, %p2077_p13 }
  0x2a   : > { %s2475_s17 = smov [#allocation8]   ;;  %s2476_s23 = smov [#allocation11]  }
  0x2b   : > { %s497_s25 = sshll.u32 %s2475_s17, 4  ;;  %s527_s16 = sshll.u32 %s2476_s23, 4  ;;  %s498_s25 = int_to_ptr.vmem [resolvable:$true] %s497_s25  ;;  %s528_s16 = int_to_ptr.vmem [resolvable:$true] %s527_s16 }
  0x2c   : > { %s3091_s4 = sld [smem:[#allocation32_spill]]  ;;  %p2683_p2 = pneg %p2671_p0 }
  0x32   : > { %s2227_s27 = scalar_lea.hbm %s3091_s4, 256 }
  0x33   : > { %p2228_p1 = scmp.ne.s32.totalorder %s3091_s4, %s2227_s27  ;;  %p2234_p6 = scmp.lt.u32.totalorder %s2227_s27, %s3091_s4 }
  0x35   : > { %p2230_p4 = pnand %p2683_p2, %p2228_p1 }
  0x37   : > { %p2231_p5 = pneg %p2230_p4 }
  0x39   : > { %p2236_p7 = pnand %p2234_p6, %p2231_p5 }
  0x3b   : > { %2239 = shalt.err (!%p2236_p7)
}
  0x3c   : > { %s2240_s1 = scalar_lea.vmem %s498_s25, 256  ;;  %p2248_p8 = scmp.lt.s32.totalorder %s498_s25, %s498_s25 }
  0x3d   : > { %p2241_p9 = scmp.ne.s32.totalorder %s498_s25, %s2240_s1  ;;  %p2249_p3 = scmp.lt.s32.totalorder %s2240_s1, %s2240_s1 }
  0x3f   : > { %p2243_p11 = pnand %p2241_p9, %p2683_p2  ;;  %p2250_p12 = por %p2249_p3, %p2248_p8 }
  0x41   : > { %p2244_p13 = pneg %p2243_p11 }
  0x43   : > { %p2251_p10 = pnand %p2250_p12, %p2244_p13 }
  0x45   : > { %2254 = shalt.err (!%p2251_p10)
}
  0x46   : > { %s2477_s20 = smov 64   ;;  %s2478_s23 = smov 4  }
  0x47   : > { %2083 = dma.hbm_to_vmem [thread:$0]  (!%p2671_p0), %s3091_s4, 256, %s498_s25, [#allocation9], %s2477_s20, %s2477_s20, %s2478_s23  }
  0x48   : > { %s2255_s17 = scalar_lea.hbm %s3038_s8, 256 }
  0x49   : > { %p2256_p3 = scmp.ne.s32.totalorder %s3038_s8, %s2255_s17  ;;  %p2262_p12 = scmp.lt.u32.totalorder %s2255_s17, %s3038_s8 }
  0x4b   : > { %p2258_p8 = pnand %p2256_p3, %p2683_p2 }
  0x4d   : > { %p2259_p10 = pneg %p2258_p8 }
  0x4f   : > { %p2264_p1 = pnand %p2262_p12, %p2259_p10 }
  0x51   : > { %2267 = shalt.err (!%p2264_p1)
}
  0x52   : > { %s2268_s27 = scalar_lea.vmem %s528_s16, 256  ;;  %p2276_p7 = scmp.lt.s32.totalorder %s528_s16, %s528_s16 }
  0x53   : > { %p2269_p4 = scmp.ne.s32.totalorder %s528_s16, %s2268_s27  ;;  %p2277_p9 = scmp.lt.s32.totalorder %s2268_s27, %s2268_s27 }
  0x55   : > { %p2271_p5 = pnand %p2269_p4, %p2683_p2  ;;  %p2278_p11 = por %p2277_p9, %p2276_p7 }
  0x57   : > { %p2272_p6 = pneg %p2271_p5 }
  0x59   : > { %p2279_p13 = pnand %p2278_p11, %p2272_p6 }
  0x5b   : > { %2282 = shalt.err (!%p2279_p13)
}
  0x5c   : > { %2089 = dma.hbm_to_vmem [thread:$0]  (!%p2671_p0), %s3038_s8, 256, %s528_s16, [#allocation12], %s2477_s20, %s2477_s20, %s2478_s23  }
  0x5d   : > { %s2479_s29 = smov [#allocation5]   ;;  %s2480_s26 = smov [#allocation10]  }
  0x5e   : > { %s484_s25 = sshll.u32 %s2479_s29, 4  ;;  %s517_s22 = sshll.u32 %s2480_s26, 4  ;;  %s485_s25 = int_to_ptr.vmem [resolvable:$true] %s484_s25  ;;  %s518_s22 = int_to_ptr.vmem [resolvable:$true] %s517_s22 }
  0x5f   : > { %s2283_s1 = scalar_lea.hbm %s3033_s3, 256 }
  0x60   : > { %p2284_p3 = scmp.ne.s32.totalorder %s3033_s3, %s2283_s1  ;;  %p2290_p12 = scmp.lt.u32.totalorder %s2283_s1, %s3033_s3 }
  0x62   : > { %p2286_p8 = pnand %p2284_p3, %p2683_p2 }
  0x64   : > { %p2287_p10 = pneg %p2286_p8 }
  0x66   : > { %p2292_p1 = pnand %p2290_p12, %p2287_p10 }
  0x68   : > { %2295 = shalt.err (!%p2292_p1)
}
  0x69   : > { %s2296_s16 = scalar_lea.vmem %s485_s25, 256  ;;  %p2304_p7 = scmp.lt.s32.totalorder %s485_s25, %s485_s25 }
  0x6a   : > { %p2297_p4 = scmp.ne.s32.totalorder %s485_s25, %s2296_s16  ;;  %p2305_p9 = scmp.lt.s32.totalorder %s2296_s16, %s2296_s16 }
  0x6c   : > { %p2299_p5 = pnand %p2297_p4, %p2683_p2  ;;  %p2306_p11 = por %p2305_p9, %p2304_p7 }
  0x6e   : > { %p2300_p6 = pneg %p2299_p5 }
  0x70   : > { %p2307_p13 = pnand %p2306_p11, %p2300_p6 }
  0x72   : > { %2310 = shalt.err (!%p2307_p13)
}
  0x73   : > { %2080 = dma.hbm_to_vmem [thread:$0]  (!%p2671_p0), %s3033_s3, 256, %s485_s25, [#allocation6], %s2477_s20, %s2477_s20, %s2478_s23  }
  0x74   : > { %s2311_s26 = scalar_lea.hbm %s3037_s7, 16 }
  0x75   : > { %p2312_p3 = scmp.ne.s32.totalorder %s3037_s7, %s2311_s26  ;;  %p2318_p12 = scmp.lt.u32.totalorder %s2311_s26, %s3037_s7 }
  0x77   : > { %p2314_p8 = pnand %p2312_p3, %p2683_p2 }
  0x79   : > { %p2315_p10 = pneg %p2314_p8 }
  0x7b   : > { %p2320_p1 = pnand %p2318_p12, %p2315_p10 }
  0x7d   : > { %2323 = shalt.err (!%p2320_p1)
}
  0x7e   : > { %s2324_s13 = scalar_lea.vmem %s518_s22, 16  ;;  %s2331_s20 = scalar_lea.vmem %s518_s22, 32 }
  0x7f   : > { %p2325_p4 = scmp.ne.s32.totalorder %s518_s22, %s2324_s13  ;;  %p2332_p7 = scmp.lt.s32.totalorder %s518_s22, %s518_s22 }
  0x80   : > { %p2333_p9 = scmp.lt.s32.totalorder %s2331_s20, %s2324_s13 }
  0x81   : > { %p2327_p5 = pnand %p2325_p4, %p2683_p2 }
  0x82   : > { %p2334_p11 = por %p2333_p9, %p2332_p7 }
  0x83   : > { %p2328_p6 = pneg %p2327_p5 }
  0x85   : > { %p2335_p13 = pnand %p2334_p11, %p2328_p6 }
  0x87   : > { %2338 = shalt.err (!%p2335_p13)
}
  0x88   : > { %2086 = dma.hbm_to_vmem [thread:$0]  (!%p2671_p0), %s3037_s7, 16, %s518_s22, [#allocation9]  }
  0x89   : > { %s2481_s16 = smov [#allocation13]   ;;  %s2339_s29 = scalar_lea.hbm %s3039_s9, 16 }
  0x8a   : > { %s541_s4 = sshll.u32 %s2481_s16, 4  ;;  %p2340_p3 = scmp.ne.s32.totalorder %s3039_s9, %s2339_s29  ;;  %s542_s4 = int_to_ptr.vmem [resolvable:$true] %s541_s4 }
  0x8b   : > { %p2346_p12 = scmp.lt.u32.totalorder %s2339_s29, %s3039_s9 }
  0x8c   : > { %p2342_p8 = pnand %p2340_p3, %p2683_p2 }
  0x8e   : > { %p2343_p10 = pneg %p2342_p8 }
  0x90   : > { %p2348_p1 = pnand %p2346_p12, %p2343_p10 }
  0x92   : > { %2351 = shalt.err (!%p2348_p1)
}
  0x93   : > { %s2352_s22 = scalar_lea.vmem %s542_s4, 16  ;;  %s2359_s27 = scalar_lea.vmem %s542_s4, 32 }
  0x94   : > { %p2353_p4 = scmp.ne.s32.totalorder %s542_s4, %s2352_s22  ;;  %p2360_p7 = scmp.lt.s32.totalorder %s542_s4, %s542_s4 }
  0x95   : > { %p2361_p9 = scmp.lt.s32.totalorder %s2359_s27, %s2352_s22 }
  0x96   : > { %p2355_p5 = pnand %p2353_p4, %p2683_p2 }
  0x97   : > { %p2362_p11 = por %p2361_p9, %p2360_p7 }
  0x98   : > { %p2356_p6 = pneg %p2355_p5 }
  0x9a   : > { %p2363_p13 = pnand %p2362_p11, %p2356_p6 }
  0x9c   : > { %2366 = shalt.err (!%p2363_p13)
}
  0x9d   : > { %2092 = dma.hbm_to_vmem [thread:$0]  (!%p2671_p0), %s3039_s9, 16, %s542_s4, [#allocation12]  }
  0x9e   : > { %p3093_p3 = scmp.ne.s32.totalorder %s3087_s2, 0 }
  0x9f   : > { %p3094_p8 = scmp.ne.s32.totalorder (!%p3093_p3), %s3088_s19, 0 }
  0xa0   : > { %597 = sbr.rel (%p3093_p3) target bundleno = 2641 (0xa51), region = 92 }
  0xa7   : > { %2428 = dma.done.wait (%p3094_p8), [#allocation6], 256  }
  0xa8   : > { %2430 = vsyncadd (%p3094_p8), [#allocation6], 4294967040 }
  0xa9   : > { %2432 = dma.done.wait (%p3094_p8), [#allocation9], 272  }
  0xaa   : > { %2434 = vsyncadd (%p3094_p8), [#allocation9], 4294967024 }
  0xab   : > { %2436 = dma.done.wait (%p3094_p8), [#allocation12], 272  }
  0xac   : > { %2438 = vsyncadd (%p3094_p8), [#allocation12], 4294967024  ;;  %s672_s18 = sand.u32 1, %s2449_s28   ;;  %p675_p0 = scmp.lt.s32.totalorder %s2461_s0, 1 }
  0xad   : > { %s2798_s2 = sshll.u32 %s672_s18, 3  ;;  %p682_p2 = scmp.lt.s32.totalorder %s2457_s30, 1 }
  0xae   : > { %s676_s24 = scalar_select %p675_p0, %s2461_s0, 1 }
  0xaf   : > { %s683_s23 = scalar_select %p682_p2, %s2457_s30, 1 }
  0xb0   : > { %s1903_s25 = sshll.u32 %s676_s24, 4  ;;  %s1851_s16 = sshll.u32 %s676_s24, 1 }
  0xb1   : > { %s3095_s11 = sld [smem:[#allocation29_spill]]  ;;  %s685_s29 = sadd.s32 %s1851_s16, %s683_s23 }
  0xb2   : > { %s1852_s26 = sshll.u32 %s685_s29, 3  ;;  %s3096_s1 = sld [smem:[#allocation30_spill]] }
  0xb3   : > { %s674_s27 = scalar_lea.vmem [#allocation14], %s2798_s2  ;;  %p1853_p10 = scmp.ne.s32.totalorder %s2457_s30, 0 }
  0xb4   : > { %v2189_v0 = vld [vmem:[#allocation5] sm:$0xff] (!%p1853_p10)   ;;  %v2482_v1 = vmov (!%p1853_p10), 0.0   ;;  %v2190_v2 = vld [vmem:[#allocation8] sm:$0xff] (!%p1853_p10)   ;;  %v2191_v3 = vld [vmem:[#allocation5 + $0x8] sm:$0xff] (!%p1853_p10)   ;;  %vm2483_vm0 = vmmov (!%p1853_p10), 0   ;;  %vm719_vm1 = vcmask (!%p1853_p10), 261120  }
  0xb5   : > { %692 = sbr.rel (%p1853_p10) target bundleno = 409 (0x199), region = 116  ;;  %1947 = vmatprep.subr.bf16.mxu0 (!%p1853_p10), %v2482_v1  ;;  %1955 = vmatprep.subr.bf16.mxu1 (!%p1853_p10), %v2482_v1  ;;  %v2192_v4 = vld [vmem:[#allocation8 + $0x8] sm:$0xff] (!%p1853_p10)   ;;  %v1854_v8 = vld [vmem:[%s3036_s6] ss:$0 sm:$0xff] (!%p1853_p10)  ;;  %v1858_v10 = vld [vmem:[#allocation10] ss:$0 sm:$0xff] (!%p1853_p10) }
  0xb6   : > { %1948 = vmatpush3.bf16.msra.mxu0 (!%p1853_p10), %v2189_v0  ;;  %1951 = vmatprep.mubr.msk.bf16.mxu0 (!%p1853_p10), %vm2483_vm0, %v2482_v1 }
  0xb7   : > { %s679_s15 = scalar_lea.vmem %s3095_s11, %s1903_s25  ;;  %1956 = vmatpush3.bf16.msra.mxu1 (!%p1853_p10), %v2190_v2  ;;  %1949 = vmatprep.subr.bf16.mxu0 (!%p1853_p10), %v2482_v1 }
  0xb8   : > { %s2809_s22 = scalar_lea.vmem %s3096_s1, %s1852_s26  ;;  %1957 = vmatprep.subr.bf16.mxu1 (!%p1853_p10), %v2482_v1  ;;  %1959 = vmatprep.mubr.msk.bf16.mxu1 (!%p1853_p10), %vm2483_vm0, %v2482_v1  ;;  %v693_v5 = vld [vmem:[%s679_s15] sm:$0xff] (!%p1853_p10)  ;;  %v694_v6 = vld [vmem:[%s679_s15 + $0x8] sm:$0xff] (!%p1853_p10) }
  0xb9   : > { %v695_v7 = vpack.c.bf16 (!%p1853_p10), %v694_v6, %v693_v5 }
  0xba   : > { %1950 = vmatpush3.bf16.msra.mxu0 (!%p1853_p10), %v2191_v3 }
  0xbb   : > { %1958 = vmatpush3.bf16.msra.mxu1 (!%p1853_p10), %v2192_v4 }
  0xbd   : > { %1952 = vmatmul.mubr.msk.bf16.vlgmr.msra.gmra.mrb[0].mxu0 %vm719_vm1, %v695_v7 }
  0xbe   : > { %1960 = vmatmul.mubr.msk.bf16.vlgmr.msra.gmra.mrb[0].mxu1 %vm719_vm1, %v695_v7 }
 0x190   : > { %v757_v9 = vpop.f32.mrb[0].mxu0 }
 0x191   : > { %v821_v11 = vpop.f32.mrb[0].mxu1  ;;  %v1953_v12 = vpop.f32.mrb[1].mxu0  ;;  %v758_v15 = vadd.f32 %v1854_v8, %v757_v9 }
 0x192   : > { %v1961_v13 = vpop.f32.mrb[1].mxu1  ;;  %v760_v14 = vpop.f32.mrb[2].mxu0  ;;  %v822_v19 = vadd.f32 %v1858_v10, %v821_v11 }
 0x193   : > { %v761_v16 = vadd.f32 %v1854_v8, %v760_v14  ;;  %v824_v17 = vpop.f32.mrb[2].mxu1  ;;  %v1954_v18 = vpop.f32.mrb[3].mxu0 }
 0x194   : > { %v825_v20 = vadd.f32 %v1858_v10, %v824_v17  ;;  %v1962_v21 = vpop.f32.mrb[3].mxu1 }
 0x195   : > { %v828_v22 = vpack.c.bf16 %v761_v16, %v758_v15 }
 0x196   : > { %v830_v23 = vpack.c.bf16 %v825_v20, %v822_v19 }
 0x197   : > { %829 = vst.msk [vmem:[#allocation2] sm:$0xff] %vm719_vm1, %v828_v22 }
 0x198   : > { %831 = vst.msk [vmem:[#allocation3] sm:$0xff] %vm719_vm1, %v830_v23 }
 0x199 PF: > { %s3097_s25 = sld [smem:[#allocation31_spill]]  ;;  %v2484_v25 = vmov 0.0   ;;  %vm2485_vm2 = vmmov 0   ;;  %v2831_v27 = vld [vmem:[%s2809_s22] sm:$0xff]  ;;  %vm857_vm3 = vcmask 261120   ;;  %s2486_s19 = smov 120  }
 0x19a   : > { %1963 = vmatprep.subr.bf16.mxu0 %v2484_v25  ;;  %1983 = vmatprep.subr.bf16.mxu1 %v2484_v25  ;;  %v833_v29 = vpack.c.bf16 %v2831_v27, %v2831_v27  ;;  %vm905_vm4 = vcmask 64512   ;;  %s2487_s11 = smov 112   ;;  %v1862_v33 = vld [vmem:[%s3035_s5] ss:$0 sm:$0xff]  ;;  %s2488_s26 = smov 104   ;;  %vm952_vm5 = vcmask 130048  }
 0x19b   : > { %1967 = vmatprep.mubr.msk.bf16.mxu0 %vm2485_vm2, %v2484_v25  ;;  %1985 = vmatprep.mubr.msk.bf16.mxu1 %vm2485_vm2, %v2484_v25  ;;  %vm1009_vm6 = vcmask 60416   ;;  %s2489_s21 = smov 8   ;;  %s2490_s17 = smov 16   ;;  %vm1129_vm7 = vcmask 126016   ;;  %vm1246_vm8 = vcmask 191616   ;;  %vm1363_vm9 = vcmask 257216  }
 0x19c   : > { %s2491_s1 = smov 24   ;;  %s3098_s16 = sld [smem:[#allocation33_spill]] }
 0x19d   : > { %s3100_s22 = sld [smem:[#allocation35_spill]]  ;;  %s1899_s13 = sshll.u32 %s2461_s0, 1 }
 0x19e   : > { %v903_v28 = vld [vmem:[#allocation2] sm:$0xff]  ;;  %s3101_s20 = sld [smem:[#allocation25_spill]]  ;;  %s1689_s24 = sadd.s32 %s2457_s30, %s1899_s13 }
 0x19f   : > { %v2193_v24 = vld [vmem:[%s3097_s25] sm:$0xff]   ;;  %v2194_v26 = vld [vmem:[%s3097_s25 + $0x8] sm:$0xff]   ;;  %1015 = vrot.lane.b32.xlu0 %v903_v28, %s2486_s19  ;;  %v910_v30 = vsel %vm905_vm4, %v903_v28, 0  ;;  %1133 = vrot.lane.b32.xlu1 %v903_v28, %s2487_s11  ;;  %s3102_s4 = sld [smem:[#allocation36_spill]]  ;;  %s3103_s15 = sld [smem:[#allocation37_spill]] }
 0x1a0   : > { %1964 = vmatpush3.bf16.msra.mxu0 %v2193_v24  ;;  %v904_v53 = vld [vmem:[#allocation3] sm:$0xff]  ;;  %s1900_s29 = sshll.u32 %s1689_s24, 7  ;;  %s1678_s30 = scalar_lea.sflag [#allocation7], %s672_s18 }
 0x1a1   : > { %1965 = vmatprep.subr.bf16.mxu0 %v2484_v25  ;;  %s2492_s13 = smov [#allocation14]  }
 0x1a2   : > { %s2371_s24 = sshll.u32 %s2492_s13, 4  ;;  %s2372_s24 = int_to_ptr.vmem [resolvable:$false] %s2371_s24 }
 0x1a3   : > { %s2373_s23 = scalar_lea.vmem %s2372_s24, 256 }
 0x1a4   : > { %1966 = vmatpush3.bf16.msra.mxu0 %v2194_v26  ;;  %p3105_p1 = scmp.ne.s32.totalorder %s3101_s20, 0 }
 0x1a5   : > { %1971 = vmatprep.subr.bf16.mxu0 %v2484_v25 }
 0x1a7   : > { %1968 = vmatmul.mubr.msk.bf16.vlgmr.msra.gmra.mrb[0].mxu0 %vm857_vm3, %v833_v29 }
 0x1a8   : > { %1973 = vmatprep.mubr.msk.bf16.mxu0 %vm2485_vm2, %v2484_v25 }
 0x1ad   : > { %1972 = vmatpush3.bf16.xpose.msra.mxu0 %v910_v30 }
 0x1ae   : > { %1977 = vmatprep.subr.bf16.mxu0 %v2484_v25 }
 0x211   : > { %v1016_v31 = vpop.permute.xlu0 %1015  ;;  %v1134_v41 = vpop.permute.xlu1 %1133 }
 0x212   : > { %v1021_v32 = vsel %vm905_vm4, %v1016_v31, 0  ;;  %v1139_v42 = vsel %vm905_vm4, %v1134_v41, 0 }
 0x213   : > { %1984 = vmatpush3.bf16.xpose.msra.mxu1 %v1021_v32 }
 0x214   : > { %1995 = vmatprep.subr.bf16.mxu1 %v2484_v25 }
 0x27a   : > { %v895_v34 = vpop.f32.mrb[0].mxu0 }
 0x27b   : > { %v896_v35 = vadd.f32 %v1862_v33, %v895_v34  ;;  %v1969_v36 = vpop.f32.mrb[1].mxu0 }
 0x27c   : > { %v898_v37 = vpop.f32.mrb[2].mxu0 }
 0x27d   : > { %v901_v38 = vmul.f32 0.35355338, %v896_v35  ;;  %v1970_v39 = vpop.f32.mrb[3].mxu0 }
 0x27f   : > { %v902_v40 = vpack.c.bf16 %v901_v38, %v901_v38 }
 0x281   : > { %1131 = vrot.lane.b32.xlu1 %v902_v40, %s2487_s11  ;;  %1012 = vrot.lane.b32.xlu0 %v902_v40, %s2486_s19 }
 0x282   : > { %1974 = vmatmul.mubr.msk.bf16.vlgmr.msra.gmra.mrb[4].mxu0 %vm905_vm4, %v902_v40 }
 0x283   : > { %1979 = vmatprep.mubr.msk.bf16.mxu0 %vm2485_vm2, %v2484_v25  ;;  %1978 = vmatpush3.bf16.msra.mxu0 %v904_v53 }
 0x284   : > { %1989 = vmatprep.subr.bf16.mxu0 %v2484_v25 }
 0x285   : > { %1248 = vrot.lane.b32.xlu1 %v902_v40, %s2488_s26  ;;  %1250 = vrot.lane.b32.xlu0 %v903_v28, %s2488_s26 }
 0x2f3   : > { %v1013_v43 = vpop.permute.xlu0 %1012  ;;  %v1132_v46 = vpop.permute.xlu1 %1131 }
 0x2f4   : > { %1986 = vmatmul.mubr.msk.bf16.vlgmr.msra.gmra.mrb[0].mxu1 %vm905_vm4, %v1013_v43 }
 0x2f5   : > { %1996 = vmatpush3.bf16.xpose.msra.mxu1 %v1139_v42  ;;  %1997 = vmatprep.mubr.msk.bf16.mxu1 %vm2485_vm2, %v2484_v25 }
 0x2f6   : > { %2007 = vmatprep.subr.bf16.mxu1 %v2484_v25 }
 0x2f7   : > { %v1251_v44 = vpop.permute.xlu0 %1250  ;;  %v1249_v47 = vpop.permute.xlu1 %1248 }
 0x2f8   : > { %v1256_v45 = vsel %vm905_vm4, %v1251_v44, 0 }
 0x2fc   : > { %1998 = vmatmul.mubr.msk.bf16.vlgmr.msra.gmra.mrb[4].mxu1 %vm905_vm4, %v1132_v46 }
 0x2fd   : > { %2008 = vmatpush3.bf16.xpose.msra.mxu1 %v1256_v45  ;;  %2009 = vmatprep.mubr.msk.bf16.mxu1 %vm2485_vm2, %v2484_v25 }
 0x2fe   : > { %2019 = vmatprep.subr.bf16.mxu1 %v2484_v25 }
 0x304   : > { %2010 = vmatmul.mubr.msk.bf16.vlgmr.msra.gmra.mrb[8].mxu1 %vm905_vm4, %v1249_v47 }
 0x305   : > { %2023 = vmatprep.mubr.msk.bf16.mxu1 %vm2485_vm2, %v2484_v25 }
 0x355   : > { %v946_v48 = vpop.f32.mrb[4].mxu0 }
 0x356   : > { %v1975_v49 = vpop.f32.mrb[5].mxu0  ;;  %v953_v50 = vsel %vm952_vm5, %v946_v48, -inf }
 0x357   : > { %954 = vmax.xlane.f32.xlu0 %v953_v50  ;;  %v949_v51 = vpop.f32.mrb[6].mxu0 }
 0x358   : > { %v1976_v52 = vpop.f32.mrb[7].mxu0 }
 0x3c7   : > { %v1057_v54 = vpop.f32.mrb[0].mxu1 }
 0x3c8   : > { %v1987_v55 = vpop.f32.mrb[1].mxu1  ;;  %v1063_v56 = vsel %vm952_vm5, %v1057_v54, -inf }
 0x3c9   : > { %1064 = vmax.xlane.f32.xlu1 %v1063_v56  ;;  %v1060_v57 = vpop.f32.mrb[2].mxu1  ;;  %v2195_v56 = vld [vmem:[#allocation11] sm:$0xff]  }
 0x3ca   : > { %v1988_v58 = vpop.f32.mrb[3].mxu1  ;;  %2020 = vmatpush3.bf16.msra.mxu1 %v2195_v56 }
 0x3cb   : > { %v2196_v58 = vld [vmem:[#allocation11 + $0x8] sm:$0xff]   ;;  %2021 = vmatprep.subr.bf16.mxu1 %v2484_v25 }
 0x3ce   : > { %2022 = vmatpush3.bf16.msra.mxu1 %v2196_v58 }
 0x3cf   : > { %v1175_v59 = vpop.f32.mrb[4].mxu1  ;;  %2035 = vmatprep.subr.bf16.mxu1 %v2484_v25 }
 0x3d0   : > { %v1999_v60 = vpop.f32.mrb[5].mxu1  ;;  %v1181_v61 = vsel %vm952_vm5, %v1175_v59, -inf }
 0x3d1   : > { %v1178_v62 = vpop.f32.mrb[6].mxu1  ;;  %1182 = vmax.xlane.f32.xlu0 %v1181_v61 }
 0x3d2   : > { %v2000_v63 = vpop.f32.mrb[7].mxu1 }
 0x3d7   : > { %v1292_v0 = vpop.f32.mrb[8].mxu1 }
 0x3d8   : > { %v2011_v1 = vpop.f32.mrb[9].mxu1  ;;  %v1298_v2 = vsel %vm952_vm5, %v1292_v0, -inf }
 0x3d9   : > { %v1295_v3 = vpop.f32.mrb[10].mxu1  ;;  %1299 = vmax.xlane.f32.xlu0 %v1298_v2 }
 0x3da   : > { %v2012_v4 = vpop.f32.mrb[11].mxu1 }
 0x3e4   : > { %v955_v5 = vpop.xlane.xlu0 %954 }
 0x3e5   : > { %v956_v6 = vsub.f32 %v946_v48, %v955_v5 }
 0x3e7   : > { %v957_v7 = vmul.f32 1.442695, %v956_v6 }
 0x3e9   : > { %2207 = vpow2.f32 %v957_v7 }
 0x3f3   : > { %v2208_v8 = vpop.eup %2207 }
 0x3f4   : > { %v959_v9 = vsel %vm952_vm5, %v2208_v8, 0.0 }
 0x3f5   : > { %960 = vadd.xlane.f32.xlu1 %v959_v9 }
 0x406   : > { %1076 = vrot.lane.b32.xlu1 %v904_v53, %s2486_s19 }
 0x456   : > { %v1065_v10 = vpop.xlane.xlu1 %1064 }
 0x457   : > { %v1066_v11 = vsub.f32 %v1057_v54, %v1065_v10 }
 0x459   : > { %v1067_v12 = vmul.f32 1.442695, %v1066_v11 }
 0x45b   : > { %2209 = vpow2.f32 %v1067_v12 }
 0x45e   : > { %v1183_v13 = vpop.xlane.xlu0 %1182 }
 0x45f   : > { %v1184_v14 = vsub.f32 %v1175_v59, %v1183_v13 }
 0x461   : > { %v1185_v15 = vmul.f32 1.442695, %v1184_v14 }
 0x463   : > { %2211 = vpow2.f32 %v1185_v15 }
 0x465   : > { %v2210_v16 = vpop.eup %2209 }
 0x466   : > { %v1300_v17 = vpop.xlane.xlu0 %1299  ;;  %v1069_v18 = vsel %vm952_vm5, %v2210_v16, 0.0 }
 0x467   : > { %v1301_v19 = vsub.f32 %v1292_v0, %v1300_v17  ;;  %1070 = vadd.xlane.f32.xlu0 %v1069_v18  ;;  %v2197_v18 = vld [vmem:[%s3042_s12] sm:$0xff]  }
 0x469   : > { %v1302_v20 = vmul.f32 1.442695, %v1301_v19  ;;  %v2198_v19 = vld [vmem:[%s3042_s12 + $0x8] sm:$0xff]  }
 0x46b   : > { %2213 = vpow2.f32 %v1302_v20  ;;  %v2200_v20 = vld [vmem:[%s3044_s14 + $0x8] sm:$0xff]  }
 0x46d   : > { %v2212_v21 = vpop.eup %2211 }
 0x46e   : > { %v1187_v22 = vsel %vm952_vm5, %v2212_v21, 0.0 }
 0x46f   : > { %1188 = vadd.xlane.f32.xlu1 %v1187_v22  ;;  %v2202_v22 = vld [vmem:[%s3044_s14 + $0x18] sm:$0xff]  }
 0x475   : > { %v2214_v23 = vpop.eup %2213 }
 0x476   : > { %v1304_v24 = vsel %vm952_vm5, %v2214_v23, 0.0 }
 0x477   : > { %1305 = vadd.xlane.f32.xlu0 %v1304_v24  ;;  %v2204_v24 = vld [vmem:[%s3044_s14 + $0x28] sm:$0xff]  }
 0x480   : > { %1310 = vrot.lane.b32.xlu1 %v904_v53, %s2488_s26  ;;  %s1693_s26 = sshll.u32 %s674_s27, 4  ;;  %s2974_s26 = int_to_ptr.vmem [resolvable:$true] %s1693_s26 }
 0x481   : > { %p2374_p6 = scmp.lt.s32.totalorder %s2974_s26, %s2372_s24 }
 0x482   : > { %v961_v26 = vpop.xlane.xlu1 %960 }
 0x483   : > { %2215 = vrcp.f32 %v961_v26 }
 0x486   : > { %v1077_v31 = vpop.permute.xlu1 %1076 }
 0x48d   : > { %v2216_v28 = vpop.eup %2215  ;;  %1193 = vrot.lane.b32.xlu0 %v904_v53, %s2487_s11 }
 0x48e   : > { %v963_v29 = vmul.f32 %v2216_v28, %v2208_v8  ;;  %v1877_v8 = vld [vmem:[#allocation13] ss:$0 sm:$0xff] }
 0x490   : > { %v964_v30 = vpack.c.bf16 %v963_v29, %v963_v29 }
 0x492   : > { %1980 = vmatmul.mubr.msk.bf16.vlgmr.msra.gmra.mrb[8].mxu0 %vm952_vm5, %v964_v30 }
 0x493   : > { %1990 = vmatpush3.bf16.msra.mxu0 %v1077_v31  ;;  %1991 = vmatprep.mubr.msk.bf16.mxu0 %vm2485_vm2, %v2484_v25 }
 0x494   : > { %2001 = vmatprep.subr.bf16.mxu0 %v2484_v25 }
 0x4f4   : > { %v1071_v32 = vpop.xlane.xlu0 %1070 }
 0x4f5   : > { %2217 = vrcp.f32 %v1071_v32 }
 0x4fc   : > { %v1189_v33 = vpop.xlane.xlu1 %1188 }
 0x4fd   : > { %2219 = vrcp.f32 %v1189_v33 }
 0x4ff   : > { %v2218_v34 = vpop.eup %2217 }
 0x500   : > { %v1073_v35 = vmul.f32 %v2218_v34, %v2210_v16  ;;  %v1311_v42 = vpop.permute.xlu1 %1310 }
 0x502   : > { %v1074_v36 = vpack.c.bf16 %v1073_v35, %v1073_v35 }
 0x504   : > { %1992 = vmatmul.mubr.msk.bf16.vlgmr.msra.gmra.mrb[12].mxu0 %vm952_vm5, %v1074_v36  ;;  %v1306_v37 = vpop.xlane.xlu0 %1305  ;;  %v1881_v36 = vld [vmem:[%s3040_s10] ss:$0 sm:$0xff] }
 0x505   : > { %2221 = vrcp.f32 %v1306_v37  ;;  %2003 = vmatprep.mubr.msk.bf16.mxu0 %vm2485_vm2, %v2484_v25 }
 0x507   : > { %v2220_v38 = vpop.eup %2219 }
 0x508   : > { %v1191_v39 = vmul.f32 %v2220_v38, %v2212_v21  ;;  %v1194_v40 = vpop.permute.xlu0 %1193  ;;  %v2201_v21 = vld [vmem:[%s3044_s14 + $0x10] sm:$0xff]   ;;  %v1882_v38 = vld [vmem:[%s3098_s16] ss:$0 sm:$0xff] }
 0x509   : > { %2002 = vmatpush3.bf16.msra.mxu0 %v1194_v40 }
 0x50a   : > { %v1192_v41 = vpack.c.bf16 %v1191_v39, %v1191_v39  ;;  %2013 = vmatprep.subr.bf16.mxu0 %v2484_v25 }
 0x50c   : > { %2004 = vmatmul.mubr.msk.bf16.vlgmr.msra.gmra.mrb[16].mxu0 %vm952_vm5, %v1192_v41 }
 0x50d   : > { %2014 = vmatpush3.bf16.msra.mxu0 %v1311_v42  ;;  %2015 = vmatprep.mubr.msk.bf16.mxu0 %vm2485_vm2, %v2484_v25  ;;  %v2205_v42 = vld [vmem:[%s3044_s14 + $0x30] sm:$0xff]  }
 0x50e   : > { %2027 = vmatprep.subr.bf16.mxu0 %v2484_v25 }
 0x50f   : > { %v2222_v43 = vpop.eup %2221 }
 0x510   : > { %v1308_v44 = vmul.f32 %v2222_v43, %v2214_v23  ;;  %v2203_v23 = vld [vmem:[%s3044_s14 + $0x20] sm:$0xff]   ;;  %v2206_v43 = vld [vmem:[%s3044_s14 + $0x38] sm:$0xff]  }
 0x512   : > { %v1309_v45 = vpack.c.bf16 %v1308_v44, %v1308_v44 }
 0x514   : > { %2016 = vmatmul.mubr.msk.bf16.vlgmr.msra.gmra.mrb[20].mxu0 %vm952_vm5, %v1309_v45 }
 0x515   : > { %2031 = vmatprep.mubr.msk.bf16.mxu0 %vm2485_vm2, %v2484_v25  ;;  %2028 = vmatpush3.bf16.msra.mxu0 %v2197_v18 }
 0x516   : > { %2029 = vmatprep.subr.bf16.mxu0 %v2484_v25 }
 0x519   : > { %2030 = vmatpush3.bf16.msra.mxu0 %v2198_v19 }
 0x565   : > { %v1002_v46 = vpop.f32.mrb[8].mxu0 }
 0x566   : > { %v1008_v47 = vpack.c.bf16 %v1002_v46, %v1002_v46  ;;  %v1981_v48 = vpop.f32.mrb[9].mxu0 }
 0x567   : > { %v1005_v49 = vpop.f32.mrb[10].mxu0 }
 0x568   : > { %1010 = vst.msk [vmem:[#allocation4] sm:$0xf] %vm1009_vm6, %v1008_v47  ;;  %v1982_v50 = vpop.f32.mrb[11].mxu0 }
 0x5d7   : > { %v1116_v51 = vpop.f32.mrb[12].mxu0 }
 0x5d8   : > { %v1904_v52 = vpack.c.bf16 %v1116_v51, %v1116_v51  ;;  %v1993_v53 = vpop.f32.mrb[13].mxu0 }
 0x5d9   : > { %v1119_v54 = vpop.f32.mrb[14].mxu0 }
 0x5da   : > { %1126 = vrot.lane.b32.xlu1 %v1904_v52, %s2489_s21  ;;  %v1994_v55 = vpop.f32.mrb[15].mxu0  ;;  %s3099_s21 = sld [smem:[#allocation34_spill]] }
 0x5df   : > { %v1233_v57 = vpop.f32.mrb[16].mxu0 }
 0x5e0   : > { %v1905_v59 = vpack.c.bf16 %v1233_v57, %v1233_v57  ;;  %v2005_v60 = vpop.f32.mrb[17].mxu0  ;;  %v1883_v44 = vld [vmem:[%s3099_s21] ss:$0 sm:$0xff] }
 0x5e1   : > { %v1236_v61 = vpop.f32.mrb[18].mxu0 }
 0x5e2   : > { %1243 = vrot.lane.b32.xlu0 %v1905_v59, %s2490_s17  ;;  %v2006_v62 = vpop.f32.mrb[19].mxu0  ;;  %s3104_s17 = sld [smem:[#allocation38_spill]] }
 0x5e7   : > { %v1350_v63 = vpop.f32.mrb[20].mxu0 }
 0x5e8   : > { %v1906_v0 = vpack.c.bf16 %v1350_v63, %v1350_v63  ;;  %v2017_v1 = vpop.f32.mrb[21].mxu0 }
 0x5e9   : > { %v1353_v2 = vpop.f32.mrb[22].mxu0 }
 0x5ea   : > { %1360 = vrot.lane.b32.xlu1 %v1906_v0, %s2491_s1  ;;  %v2018_v3 = vpop.f32.mrb[23].mxu0  ;;  %s2972_s1 = scalar_lea.hbm %s3104_s17, %s1900_s29 }
 0x64c   : > { %v1127_v4 = vpop.permute.xlu1 %1126 }
 0x64d   : > { %1130 = vst.msk [vmem:[#allocation4] sm:$0xf] %vm1129_vm7, %v1127_v4 }
 0x654   : > { %v1244_v5 = vpop.permute.xlu0 %1243 }
 0x655   : > { %1247 = vst.msk [vmem:[#allocation4] sm:$0xf] %vm1246_vm8, %v1244_v5 }
 0x65c   : > { %v1361_v6 = vpop.permute.xlu1 %1360 }
 0x65d   : > { %1364 = vst.msk [vmem:[#allocation4] sm:$0xf] %vm1363_vm9, %v1361_v6  ;;  %v1896_v6 = vld [vmem:[%s3102_s4] ss:$0 sm:$0xff] }
 0x664   : > { %v1365_v7 = vld [vmem:[#allocation4] sm:$0xf] }
 0x665   : > { %2024 = vmatmul.mubr.msk.bf16.vlgmr.msra.gmra.mrb[12].mxu1 %vm857_vm3, %v1365_v7 }
 0x666   : > { %2051 = vmatprep.mubr.msk.bf16.mxu1 %vm2485_vm2, %v2484_v25 }
 0x738   : > { %v1426_v9 = vpop.f32.mrb[12].mxu1 }
 0x739   : > { %v1427_v10 = vadd.f32 %v1877_v8, %v1426_v9  ;;  %v2025_v11 = vpop.f32.mrb[13].mxu1  ;;  %v1897_v8 = vld [vmem:[%s3103_s15] ss:$0 sm:$0xff] }
 0x73a   : > { %v1429_v12 = vpop.f32.mrb[14].mxu1 }
 0x73b   : > { %v1432_v13 = vadd.f32 %v1427_v10, %v2831_v27  ;;  %v2026_v14 = vpop.f32.mrb[15].mxu1  ;;  %v2199_v27 = vld [vmem:[%s3044_s14] sm:$0xff]  }
 0x73c   : > { %2036 = vmatpush3.bf16.msra.mxu1 %v2199_v27 }
 0x73d   : > { %v1435_v15 = vsel %vm857_vm3, %v1432_v13, 0.0  ;;  %v1438_v16 = vmul.f32 %v1432_v13, %v1432_v13  ;;  %2037 = vmatprep.subr.bf16.mxu1 %v2484_v25 }
 0x73e   : > { %1436 = vadd.xlane.f32.xlu0 %v1435_v15 }
 0x73f   : > { %v1439_v17 = vsel %vm857_vm3, %v1438_v16, 0.0 }
 0x740   : > { %1440 = vadd.xlane.f32.xlu1 %v1439_v17  ;;  %2038 = vmatpush3.bf16.msra.mxu1 %v2200_v20 }
 0x741   : > { %2039 = vmatprep.subr.bf16.mxu1 %v2484_v25 }
 0x744   : > { %2040 = vmatpush3.bf16.msra.mxu1 %v2201_v21 }
 0x745   : > { %2041 = vmatprep.subr.bf16.mxu1 %v2484_v25 }
 0x748   : > { %2042 = vmatpush3.bf16.msra.mxu1 %v2202_v22 }
 0x749   : > { %2043 = vmatprep.subr.bf16.mxu1 %v2484_v25 }
 0x74c   : > { %2044 = vmatpush3.bf16.msra.mxu1 %v2203_v23 }
 0x74d   : > { %2045 = vmatprep.subr.bf16.mxu1 %v2484_v25 }
 0x750   : > { %2046 = vmatpush3.bf16.msra.mxu1 %v2204_v24 }
 0x751   : > { %2047 = vmatprep.subr.bf16.mxu1 %v2484_v25 }
 0x754   : > { %2048 = vmatpush3.bf16.msra.mxu1 %v2205_v42 }
 0x755   : > { %2049 = vmatprep.subr.bf16.mxu1 %v2484_v25  ;;  %v1887_v25 = vld [vmem:[%s3100_s22] ss:$0 sm:$0xff]  ;;  %s2367_s22 = scalar_lea.vmem %s2974_s26, 128 }
 0x756   : > { %p2368_p12 = scmp.ne.s32.totalorder %s2974_s26, %s2367_s22  ;;  %p2375_p7 = scmp.lt.s32.totalorder %s2373_s23, %s2367_s22 }
 0x758   : > { %2050 = vmatpush3.bf16.msra.mxu1 %v2206_v43  ;;  %p2369_p4 = pnand %p2368_p12, %p3105_p1  ;;  %p2376_p9 = por %p2375_p7, %p2374_p6 }
 0x75a   : > { %p2370_p5 = pneg %p2369_p4 }
 0x75c   : > { %p2377_p11 = pnand %p2376_p9, %p2370_p5 }
 0x7cb   : > { %v1437_v26 = vpop.xlane.xlu0 %1436 }
 0x7cc   : > { %v1442_v28 = vmul.f32 0.03125, %v1437_v26 }
 0x7cd   : > { %v1441_v29 = vpop.xlane.xlu1 %1440 }
 0x7ce   : > { %v1444_v30 = vmul.f32 %v1442_v28, %v1442_v28  ;;  %v1443_v31 = vmul.f32 0.03125, %v1441_v29  ;;  %v1446_v34 = vsub.f32 %v1432_v13, %v1442_v28 }
 0x7d0   : > { %v1445_v32 = vsub.f32 %v1443_v31, %v1444_v30 }
 0x7d2   : > { %v1447_v33 = vadd.f32 1e-05, %v1445_v32 }
 0x7d4   : > { %2223 = vrsqrt.f32 %v1447_v33 }
 0x7de   : > { %v2224_v35 = vpop.eup %2223 }
 0x7df   : > { %v1449_v37 = vmul.f32 %v2224_v35, %v1446_v34 }
 0x7e1   : > { %v1456_v39 = vmul.f32 %v1881_v36, %v1449_v37 }
 0x7e3   : > { %v1463_v40 = vadd.f32 %v1882_v38, %v1456_v39 }
 0x7e5   : > { %v1464_v41 = vpack.c.bf16 %v1463_v40, %v1463_v40 }
 0x7e7   : > { %2032 = vmatmul.mubr.msk.bf16.vlgmr.msra.gmra.mrb[24].mxu0 %vm857_vm3, %v1464_v41 }
 0x8ba   : > { %v1525_v45 = vpop.f32.mrb[24].mxu0 }
 0x8bb   : > { %v1526_v46 = vadd.f32 %v1883_v44, %v1525_v45  ;;  %v2033_v47 = vpop.f32.mrb[25].mxu0 }
 0x8bc   : > { %v1528_v48 = vpop.f32.mrb[26].mxu0 }
 0x8bd   : > { %v1531_v49 = vmax.f32 %v1526_v46, 0.0  ;;  %v2034_v50 = vpop.f32.mrb[27].mxu0 }
 0x8bf   : > { %v1532_v51 = vpack.c.bf16 %v1531_v49, %v1531_v49 }
 0x8c1   : > { %2052 = vmatmul.mubr.bf16.vlgmr.msra.gmra.mrb[16].mxu1 %v1532_v51 }
 0x994   : > { %v1638_v52 = vpop.f32.mrb[16].mxu1 }
 0x995   : > { %v1639_v53 = vadd.f32 %v1887_v25, %v1638_v52  ;;  %v2053_v54 = vpop.f32.mrb[17].mxu1 }
 0x996   : > { %v1641_v55 = vpop.f32.mrb[18].mxu1 }
 0x997   : > { %v1644_v56 = vadd.f32 %v1639_v53, %v1463_v40  ;;  %v2054_v57 = vpop.f32.mrb[19].mxu1 }
 0x999   : > { %v1647_v58 = vsel %vm857_vm3, %v1644_v56, 0.0  ;;  %v1650_v59 = vmul.f32 %v1644_v56, %v1644_v56 }
 0x99a   : > { %1648 = vadd.xlane.f32.xlu0 %v1647_v58 }
 0x99b   : > { %v1651_v60 = vsel %vm857_vm3, %v1650_v59, 0.0 }
 0x99e   : > { %1652 = vadd.xlane.f32.xlu0 %v1651_v60 }
 0xa27   : > { %v1649_v61 = vpop.xlane.xlu0 %1648 }
 0xa28   : > { %v1654_v62 = vmul.f32 0.03125, %v1649_v61 }
 0xa2a   : > { %v1656_v0 = vmul.f32 %v1654_v62, %v1654_v62  ;;  %v1658_v4 = vsub.f32 %v1644_v56, %v1654_v62 }
 0xa2b   : > { %v1653_v63 = vpop.xlane.xlu0 %1652 }
 0xa2c   : > { %v1655_v1 = vmul.f32 0.03125, %v1653_v63 }
 0xa2e   : > { %v1657_v2 = vsub.f32 %v1655_v1, %v1656_v0 }
 0xa30   : > { %v1659_v3 = vadd.f32 1e-05, %v1657_v2 }
 0xa32   : > { %2225 = vrsqrt.f32 %v1659_v3 }
 0xa3c   : > { %v2226_v5 = vpop.eup %2225 }
 0xa3d   : > { %v1661_v7 = vmul.f32 %v2226_v5, %v1658_v4 }
 0xa3f   : > { %v1668_v9 = vmul.f32 %v1896_v6, %v1661_v7 }
 0xa41   : > { %v1675_v10 = vadd.f32 %v1897_v8, %v1668_v9 }
 0xa43   : > { %1676 = vst.msk [vmem:[%s674_s27] sm:$0xff] %vm857_vm3, %v1675_v10 }
 0xa44   : > { %2380 = shalt.err (!%p2377_p11)
}
 0xa45   : > { %s2381_s18 = scalar_lea.hbm %s2972_s1, 128  ;;  %s2385_s16 = scalar_lea.hbm %s3104_s17, 512 }
 0xa46   : > { %p2382_p13 = scmp.ne.s32.totalorder %s2972_s1, %s2381_s18  ;;  %p2386_p0 = scmp.lt.u32.totalorder %s2972_s1, %s3104_s17 }
 0xa47   : > { %p2387_p2 = scmp.lt.u32.totalorder %s2385_s16, %s2381_s18  ;;  %p2389_p12 = scmp.lt.u32.totalorder %s2381_s18, %s2972_s1 }
 0xa48   : > { %p2383_p3 = pnand %p2382_p13, %p3105_p1 }
 0xa49   : > { %p2388_p10 = por %p2387_p2, %p2386_p0 }
 0xa4a   : > { %p2384_p8 = pneg %p2383_p3 }
 0xa4b   : > { %p2390_p4 = por %p2389_p12, %p2388_p10 }
 0xa4d   : > { %p2391_p5 = pnand %p2390_p4, %p2384_p8 }
 0xa4f   : > { %2394 = shalt.err (!%p2391_p5)
}
 0xa50   : > { %2075 = dma.vmem_to_hbm [thread:$0]  (%p3105_p1), %s2974_s26, 128, %s2972_s1, %s1678_s30  }
 0xa51 PF: > { %s3106_s11 = sld [smem:[#allocation23_spill]]  ;;  %s3107_s15 = sld [smem:[#allocation19_spill]] }
 0xa52   : > { %s3108_s29 = sld [smem:[#allocation27_spill]] }
 0xa57   : > { %p2107_p6 = scmp.ge.s32.totalorder %s3106_s11, 2  ;;  %s1705_s21 = sand.u32 1, %s3107_s15  }
 0xa58   : > { %p3109_p7 = scmp.ne.s32.totalorder %s3108_s29, 0  ;;  %s1706_s0 = scalar_lea.sflag [#allocation7], %s1705_s21 }
 0xa5a   : > { %p2094_p9 = pnand %p2107_p6, %p3109_p7 }
 0xa5c   : > { %2440 = dma.done.wait (!%p2094_p9), %s1706_s0, 128  }
 0xa5d   : > { %2442 = vsyncadd (!%p2094_p9), %s1706_s0, 4294967168  ;;  %s34_s20 = sadd.s32 1, %s3106_s11   ;;  %s3110_s22 = sld [smem:[#allocation20_spill]] }
 0xa5e   : > { %p31_p11 = scmp.ge.s32.totalorder %s34_s20, 6   ;;  %s3111_s29 = sld [smem:[#allocation28_spill]] }
 0xa5f   : > { %s3112_s30 = sld [smem:[#allocation21_spill]]  ;;  %s3113_s0 = sld [smem:[#allocation22_spill]] }
 0xa60   : > { %s3114_s19 = sld [smem:[#allocation24_spill]]  ;;  %s3115_s1 = sld [smem:[#allocation26_spill]] }
 0xa61   : > { %s3116_s27 = smov %s2449_s28  ;;  %33 = sbr.rel (!%p31_p11) target bundleno = 19 (0x13), region = 155 }
 0xa63   : > { %s3117_s28 = smov %s3110_s22 }
 0xa68   :  { %1711 = vsyncpa [#allocation6], 1 }
 0xa69   :  { %1713 = vsyncpa [#allocation6 + $0x1], 1 }
 0xa6a   :  { %1714 = vsyncpa [#allocation9], 1 }
 0xa6b   :  { %1715 = vsyncpa [#allocation12], 1 }
 0xa6c   :  { %1716 = vsyncpa [#allocation7], 1 }
 0xa6d   :  { %1718 = vsyncpa [#allocation7 + $0x1], 1 }

// kernel: tpu_custom_call.1
= control target key start
LH: loop header
LB: loop body
LE: loop exit
PB: predicated region body
PF: predicated region fallthrough
CT: control target
= control target key end

     0   :  { %s3030_s0 = inlined_call_operand.vmem [shape: f32[2,16,32], index: 0, kind: input, shape index: {}]   ;;  %s3031_s1 = inlined_call_operand.vmem [shape: f32[2,16,32], index: 1, kind: input, shape index: {}]   ;;  %s3032_s2 = inlined_call_operand.vmem [shape: bf16[32,32], index: 2, kind: input, shape index: {}]   ;;  %s3033_s3 = inlined_call_operand.hbm [shape: bf16[32,32], index: 3, kind: input, shape index: {}]   ;;  %s3034_s4 = inlined_call_operand.hbm [shape: bf16[32,32], index: 4, kind: input, shape index: {}]   ;;  %s3035_s5 = inlined_call_operand.vmem [shape: f32[1,32], index: 5, kind: input, shape index: {}]   ;;  %s3036_s6 = inlined_call_operand.vmem [shape: f32[1,32], index: 6, kind: input, shape index: {}]   ;;  %s3037_s7 = inlined_call_operand.hbm [shape: f32[1,32], index: 7, kind: input, shape index: {}]   ;;  %s3038_s8 = inlined_call_operand.hbm [shape: bf16[32,32], index: 8, kind: input, shape index: {}]   ;;  %s3039_s9 = inlined_call_operand.hbm [shape: f32[1,32], index: 9, kind: input, shape index: {}]   ;;  %s3040_s10 = inlined_call_operand.vmem [shape: f32[1,32], index: 10, kind: input, shape index: {}]   ;;  %s3041_s11 = inlined_call_operand.vmem [shape: f32[1,32], index: 11, kind: input, shape index: {}]   ;;  %s3042_s12 = inlined_call_operand.vmem [shape: bf16[32,128], index: 12, kind: input, shape index: {}]   ;;  %s3043_s13 = inlined_call_operand.vmem [shape: f32[1,128], index: 13, kind: input, shape index: {}]   ;;  %s3044_s14 = inlined_call_operand.vmem [shape: bf16[128,32], index: 14, kind: input, shape index: {}]   ;;  %s3045_s15 = inlined_call_operand.vmem [shape: f32[1,32], index: 15, kind: input, shape index: {}]   ;;  %s3046_s16 = inlined_call_operand.vmem [shape: f32[1,32], index: 16, kind: input, shape index: {}]   ;;  %s3047_s17 = inlined_call_operand.vmem [shape: f32[1,32], index: 17, kind: input, shape index: {}]   ;;  %s3048_s18 = inlined_call_operand.hbm [shape: f32[2,16,32], index: 18, kind: output, shape index: {}]  }
   0x1   :  { %3066 = sst [smem:[#allocation29_spill]] %s3030_s0 }
   0x2   :  { %3067 = sst [smem:[#allocation30_spill]] %s3031_s1 }
   0x3   :  { %3068 = sst [smem:[#allocation31_spill]] %s3032_s2 }
   0x4   :  { %3069 = sst [smem:[#allocation32_spill]] %s3034_s4 }
   0x5   :  { %3070 = sst [smem:[#allocation33_spill]] %s3041_s11 }
   0x6   :  { %3071 = sst [smem:[#allocation34_spill]] %s3043_s13 }
   0x7   :  { %3072 = sst [smem:[#allocation35_spill]] %s3045_s15 }
   0x8   :  { %3073 = sst [smem:[#allocation36_spill]] %s3046_s16 }
   0x9   :  { %3074 = sst [smem:[#allocation37_spill]] %s3047_s17 }
   0xa   :  { %3075 = sst [smem:[#allocation38_spill]] %s3048_s18 }
   0xb   :  { %23 = vsyncpa [#allocation6], 0 }
   0xc   :  { %24 = vsyncpa [#allocation9], 0 }
   0xd   :  { %25 = vsyncpa [#allocation12], 0 }
   0xe   :  { %26 = vsyncpa [#allocation7], 0 }
   0xf   :  { %28 = vsyncpa [#allocation7 + $0x1], 0  ;;  %s2588_s27 = smov 0   ;;  %s2590_s28 = smov 0  }
  0x10   :  { %s2592_s29 = smov 0   ;;  %s2594_s30 = smov 0  }
  0x11   :  { %s2596_s0 = smov 0   ;;  %s2598_s19 = smov 0  }
  0x12   :  { %s2600_s1 = smov 0   ;;  %s2602_s20 = smov 0  }
  0x13 LB: > { %3076 = sst [smem:[#allocation19_spill]] %s2445_s27  ;;  %s1833_s21 = sadd.s32 4294967295, %s2473_s20   ;;  %s2473_s20 = sphi %s2602_s20, %s34_s20   ;;  %s2469_s1 = sphi %s2600_s1, %s3115_s1   ;;  %s2465_s19 = sphi %s2598_s19, %s3114_s19   ;;  %s2461_s0 = sphi %s2596_s0, %s3113_s0   ;;  %s2457_s30 = sphi %s2594_s30, %s3112_s30   ;;  %s2453_s29 = sphi %s2592_s29, %s3111_s29   ;;  %s2449_s28 = sphi %s2590_s28, %s3117_s28   ;;  %s2445_s27 = sphi %s2588_s27, %s3116_s27  }
  0x14   : > { %3077 = sst [smem:[#allocation20_spill]] %s2453_s29  ;;  %s1834_s22 = sadd.s32 4294967294, %s2473_s20  }
  0x15   : > { %3078 = sst [smem:[#allocation21_spill]] %s2465_s19  ;;  %s43_s2 = sadd.s32 1, %s2465_s19 }
  0x16   : > { %3079 = sst [smem:[#allocation22_spill]] %s2469_s1  ;;  %s46_s23 = sadd.s32 1, %s2469_s1 }
  0x17   : > { %3080 = sst [smem:[#allocation23_spill]] %s2473_s20  ;;  %p44_p0 = scmp.ge.s32.totalorder %s43_s2, 2 }
  0x18   : > { %s445_s24 = sadd.s32 1, %s2453_s29  ;;  %p455_p1 = scmp.ne.s32.totalorder %s2453_s29, %s2449_s28 }
  0x19   : > { %p456_p2 = scmp.eq.s32.totalorder %s1833_s21, 3  ;;  %s3119_s2 = smov (%p44_p0, %s43_s2), 0 }
  0x1a   : > { %3081 = sst [smem:[#allocation24_spill]] %s3119_s2  ;;  %s3121_s23 = smov (!%p44_p0, %s46_s23), %s2469_s1 }
  0x1b   : > { %s441_s25 = ssub.s32 %s2465_s19, %s3119_s2  ;;  %p2640_p3 = por %p456_p2, %p455_p1 }
  0x1c   : > { %p48_p4 = scmp.ge.s32.totalorder %s3121_s23, 2  ;;  %p461_p5 = scmp.ne.s32.totalorder %s2449_s28, %s2445_s27 }
  0x1d   : > { %s3082_s26 = scalar_select %p2640_p3, 1, 0 }
  0x1e   : > { %p462_p6 = scmp.eq.s32.totalorder %s1834_s22, 3  ;;  %p1835_p7 = scmp.ge.s32.totalorder %s2473_s20, 1 }
  0x1f   : > { %3083 = sst [smem:[#allocation25_spill]] %s3082_s26  ;;  %s3123_s23 = smov (%p48_p4, %s3121_s23), 0 }
  0x20   : > { %3084 = sst [smem:[#allocation26_spill]] %s3123_s23  ;;  %p2649_p8 = por %p462_p6, %p461_p5 }
  0x21   : > { %p469_p9 = scmp.lt.s32.totalorder %s2473_s20, 5  ;;  %s440_s17 = ssub.s32 %s2469_s1, %s3123_s23 }
  0x22   : > { %s3085_s18 = scalar_select %p2649_p8, 1, 0 }
  0x23   : > { %s442_s16 = sor.u32 %s441_s25, %s440_s17  ;;  %p2656_p10 = pnand %p1835_p7, %p469_p9 }
  0x24   : > { %3086 = sst [smem:[#allocation27_spill]] %s3085_s18  ;;  %p443_p11 = scmp.eq.s32.totalorder %s442_s16, 0 }
  0x25   : > { %s3087_s2 = scalar_select %p2656_p10, 1, 0 }
  0x26   : > { %p2660_p12 = scmp.eq.s32.totalorder %s1833_s21, 0  ;;  %p2077_p13 = pneg %p2656_p10 }
  0x27   : > { %s2667_s22 = scalar_select %p443_p11, %s2453_s29, %s445_s24  }
  0x28   : > { %s3088_s19 = scalar_select %p2660_p12, 1, 0 }
  0x29   : > { %3089 = sst [smem:[#allocation28_spill]] %s2667_s22  ;;  %p2671_p0 = pnand %p2660_p12, %p2077_p13 }
  0x2a   : > { %s2475_s17 = smov [#allocation8]   ;;  %s2476_s23 = smov [#allocation11]  }
  0x2b   : > { %s497_s25 = sshll.u32 %s2475_s17, 4  ;;  %s527_s16 = sshll.u32 %s2476_s23, 4  ;;  %s498_s25 = int_to_ptr.vmem [resolvable:$true] %s497_s25  ;;  %s528_s16 = int_to_ptr.vmem [resolvable:$true] %s527_s16 }
  0x2c   : > { %s3091_s4 = sld [smem:[#allocation32_spill]]  ;;  %p2683_p2 = pneg %p2671_p0 }
  0x32   : > { %s2227_s27 = scalar_lea.hbm %s3091_s4, 256 }
  0x33   : > { %p2228_p1 = scmp.ne.s32.totalorder %s3091_s4, %s2227_s27  ;;  %p2234_p6 = scmp.lt.u32.totalorder %s2227_s27, %s3091_s4 }
  0x35   : > { %p2230_p4 = pnand %p2683_p2, %p2228_p1 }
  0x37   : > { %p2231_p5 = pneg %p2230_p4 }
  0x39   : > { %p2236_p7 = pnand %p2234_p6, %p2231_p5 }
  0x3b   : > { %2239 = shalt.err (!%p2236_p7)
}
  0x3c   : > { %s2240_s1 = scalar_lea.vmem %s498_s25, 256  ;;  %p2248_p8 = scmp.lt.s32.totalorder %s498_s25, %s498_s25 }
  0x3d   : > { %p2241_p9 = scmp.ne.s32.totalorder %s498_s25, %s2240_s1  ;;  %p2249_p3 = scmp.lt.s32.totalorder %s2240_s1, %s2240_s1 }
  0x3f   : > { %p2243_p11 = pnand %p2241_p9, %p2683_p2  ;;  %p2250_p12 = por %p2249_p3, %p2248_p8 }
  0x41   : > { %p2244_p13 = pneg %p2243_p11 }
  0x43   : > { %p2251_p10 = pnand %p2250_p12, %p2244_p13 }
  0x45   : > { %2254 = shalt.err (!%p2251_p10)
}
  0x46   : > { %s2477_s20 = smov 64   ;;  %s2478_s23 = smov 4  }
  0x47   : > { %2083 = dma.hbm_to_vmem [thread:$0]  (!%p2671_p0), %s3091_s4, 256, %s498_s25, [#allocation9], %s2477_s20, %s2477_s20, %s2478_s23  }
  0x48   : > { %s2255_s17 = scalar_lea.hbm %s3038_s8, 256 }
  0x49   : > { %p2256_p3 = scmp.ne.s32.totalorder %s3038_s8, %s2255_s17  ;;  %p2262_p12 = scmp.lt.u32.totalorder %s2255_s17, %s3038_s8 }
  0x4b   : > { %p2258_p8 = pnand %p2256_p3, %p2683_p2 }
  0x4d   : > { %p2259_p10 = pneg %p2258_p8 }
  0x4f   : > { %p2264_p1 = pnand %p2262_p12, %p2259_p10 }
  0x51   : > { %2267 = shalt.err (!%p2264_p1)
}
  0x52   : > { %s2268_s27 = scalar_lea.vmem %s528_s16, 256  ;;  %p2276_p7 = scmp.lt.s32.totalorder %s528_s16, %s528_s16 }
  0x53   : > { %p2269_p4 = scmp.ne.s32.totalorder %s528_s16, %s2268_s27  ;;  %p2277_p9 = scmp.lt.s32.totalorder %s2268_s27, %s2268_s27 }
  0x55   : > { %p2271_p5 = pnand %p2269_p4, %p2683_p2  ;;  %p2278_p11 = por %p2277_p9, %p2276_p7 }
  0x57   : > { %p2272_p6 = pneg %p2271_p5 }
  0x59   : > { %p2279_p13 = pnand %p2278_p11, %p2272_p6 }
  0x5b   : > { %2282 = shalt.err (!%p2279_p13)
}
  0x5c   : > { %2089 = dma.hbm_to_vmem [thread:$0]  (!%p2671_p0), %s3038_s8, 256, %s528_s16, [#allocation12], %s2477_s20, %s2477_s20, %s2478_s23  }
  0x5d   : > { %s2479_s29 = smov [#allocation5]   ;;  %s2480_s26 = smov [#allocation10]  }
  0x5e   : > { %s484_s25 = sshll.u32 %s2479_s29, 4  ;;  %s517_s22 = sshll.u32 %s2480_s26, 4  ;;  %s485_s25 = int_to_ptr.vmem [resolvable:$true] %s484_s25  ;;  %s518_s22 = int_to_ptr.vmem [resolvable:$true] %s517_s22 }
  0x5f   : > { %s2283_s1 = scalar_lea.hbm %s3033_s3, 256 }
  0x60   : > { %p2284_p3 = scmp.ne.s32.totalorder %s3033_s3, %s2283_s1  ;;  %p2290_p12 = scmp.lt.u32.totalorder %s2283_s1, %s3033_s3 }
  0x62   : > { %p2286_p8 = pnand %p2284_p3, %p2683_p2 }
  0x64   : > { %p2287_p10 = pneg %p2286_p8 }
  0x66   : > { %p2292_p1 = pnand %p2290_p12, %p2287_p10 }
  0x68   : > { %2295 = shalt.err (!%p2292_p1)
}
  0x69   : > { %s2296_s16 = scalar_lea.vmem %s485_s25, 256  ;;  %p2304_p7 = scmp.lt.s32.totalorder %s485_s25, %s485_s25 }
  0x6a   : > { %p2297_p4 = scmp.ne.s32.totalorder %s485_s25, %s2296_s16  ;;  %p2305_p9 = scmp.lt.s32.totalorder %s2296_s16, %s2296_s16 }
  0x6c   : > { %p2299_p5 = pnand %p2297_p4, %p2683_p2  ;;  %p2306_p11 = por %p2305_p9, %p2304_p7 }
  0x6e   : > { %p2300_p6 = pneg %p2299_p5 }
  0x70   : > { %p2307_p13 = pnand %p2306_p11, %p2300_p6 }
  0x72   : > { %2310 = shalt.err (!%p2307_p13)
}
  0x73   : > { %2080 = dma.hbm_to_vmem [thread:$0]  (!%p2671_p0), %s3033_s3, 256, %s485_s25, [#allocation6], %s2477_s20, %s2477_s20, %s2478_s23  }
  0x74   : > { %s2311_s26 = scalar_lea.hbm %s3037_s7, 16 }
  0x75   : > { %p2312_p3 = scmp.ne.s32.totalorder %s3037_s7, %s2311_s26  ;;  %p2318_p12 = scmp.lt.u32.totalorder %s2311_s26, %s3037_s7 }
  0x77   : > { %p2314_p8 = pnand %p2312_p3, %p2683_p2 }
  0x79   : > { %p2315_p10 = pneg %p2314_p8 }
  0x7b   : > { %p2320_p1 = pnand %p2318_p12, %p2315_p10 }
  0x7d   : > { %2323 = shalt.err (!%p2320_p1)
}
  0x7e   : > { %s2324_s13 = scalar_lea.vmem %s518_s22, 16  ;;  %s2331_s20 = scalar_lea.vmem %s518_s22, 32 }
  0x7f   : > { %p2325_p4 = scmp.ne.s32.totalorder %s518_s22, %s2324_s13  ;;  %p2332_p7 = scmp.lt.s32.totalorder %s518_s22, %s518_s22 }
  0x80   : > { %p2333_p9 = scmp.lt.s32.totalorder %s2331_s20, %s2324_s13 }
  0x81   : > { %p2327_p5 = pnand %p2325_p4, %p2683_p2 }
  0x82   : > { %p2334_p11 = por %p2333_p9, %p2332_p7 }
  0x83   : > { %p2328_p6 = pneg %p2327_p5 }
  0x85   : > { %p2335_p13 = pnand %p2334_p11, %p2328_p6 }
  0x87   : > { %2338 = shalt.err (!%p2335_p13)
}
  0x88   : > { %2086 = dma.hbm_to_vmem [thread:$0]  (!%p2671_p0), %s3037_s7, 16, %s518_s22, [#allocation9]  }
  0x89   : > { %s2481_s16 = smov [#allocation13]   ;;  %s2339_s29 = scalar_lea.hbm %s3039_s9, 16 }
  0x8a   : > { %s541_s4 = sshll.u32 %s2481_s16, 4  ;;  %p2340_p3 = scmp.ne.s32.totalorder %s3039_s9, %s2339_s29  ;;  %s542_s4 = int_to_ptr.vmem [resolvable:$true] %s541_s4 }
  0x8b   : > { %p2346_p12 = scmp.lt.u32.totalorder %s2339_s29, %s3039_s9 }
  0x8c   : > { %p2342_p8 = pnand %p2340_p3, %p2683_p2 }
  0x8e   : > { %p2343_p10 = pneg %p2342_p8 }
  0x90   : > { %p2348_p1 = pnand %p2346_p12, %p2343_p10 }
  0x92   : > { %2351 = shalt.err (!%p2348_p1)
}
  0x93   : > { %s2352_s22 = scalar_lea.vmem %s542_s4, 16  ;;  %s2359_s27 = scalar_lea.vmem %s542_s4, 32 }
  0x94   : > { %p2353_p4 = scmp.ne.s32.totalorder %s542_s4, %s2352_s22  ;;  %p2360_p7 = scmp.lt.s32.totalorder %s542_s4, %s542_s4 }
  0x95   : > { %p2361_p9 = scmp.lt.s32.totalorder %s2359_s27, %s2352_s22 }
  0x96   : > { %p2355_p5 = pnand %p2353_p4, %p2683_p2 }
  0x97   : > { %p2362_p11 = por %p2361_p9, %p2360_p7 }
  0x98   : > { %p2356_p6 = pneg %p2355_p5 }
  0x9a   : > { %p2363_p13 = pnand %p2362_p11, %p2356_p6 }
  0x9c   : > { %2366 = shalt.err (!%p2363_p13)
}
  0x9d   : > { %2092 = dma.hbm_to_vmem [thread:$0]  (!%p2671_p0), %s3039_s9, 16, %s542_s4, [#allocation12]  }
  0x9e   : > { %p3093_p3 = scmp.ne.s32.totalorder %s3087_s2, 0 }
  0x9f   : > { %p3094_p8 = scmp.ne.s32.totalorder (!%p3093_p3), %s3088_s19, 0 }
  0xa0   : > { %597 = sbr.rel (%p3093_p3) target bundleno = 2641 (0xa51), region = 92 }
  0xa7   : > { %2428 = dma.done.wait (%p3094_p8), [#allocation6], 256  }
  0xa8   : > { %2430 = vsyncadd (%p3094_p8), [#allocation6], 4294967040 }
  0xa9   : > { %2432 = dma.done.wait (%p3094_p8), [#allocation9], 272  }
  0xaa   : > { %2434 = vsyncadd (%p3094_p8), [#allocation9], 4294967024 }
  0xab   : > { %2436 = dma.done.wait (%p3094_p8), [#allocation12], 272  }
  0xac   : > { %2438 = vsyncadd (%p3094_p8), [#allocation12], 4294967024  ;;  %s672_s18 = sand.u32 1, %s2449_s28   ;;  %p675_p0 = scmp.lt.s32.totalorder %s2461_s0, 1 }
  0xad   : > { %s2798_s2 = sshll.u32 %s672_s18, 3  ;;  %p682_p2 = scmp.lt.s32.totalorder %s2457_s30, 1 }
  0xae   : > { %s676_s24 = scalar_select %p675_p0, %s2461_s0, 1 }
  0xaf   : > { %s683_s23 = scalar_select %p682_p2, %s2457_s30, 1 }
  0xb0   : > { %s1903_s25 = sshll.u32 %s676_s24, 4  ;;  %s1851_s16 = sshll.u32 %s676_s24, 1 }
  0xb1   : > { %s3095_s11 = sld [smem:[#allocation29_spill]]  ;;  %s685_s29 = sadd.s32 %s1851_s16, %s683_s23 }
  0xb2   : > { %s1852_s26 = sshll.u32 %s685_s29, 3  ;;  %s3096_s1 = sld [smem:[#allocation30_spill]] }
  0xb3   : > { %s674_s27 = scalar_lea.vmem [#allocation14], %s2798_s2  ;;  %p1853_p10 = scmp.ne.s32.totalorder %s2457_s30, 0 }
  0xb4   : > { %v2189_v0 = vld [vmem:[#allocation5] sm:$0xff] (!%p1853_p10)   ;;  %v2482_v1 = vmov (!%p1853_p10), 0.0   ;;  %v2190_v2 = vld [vmem:[#allocation8] sm:$0xff] (!%p1853_p10)   ;;  %v2191_v3 = vld [vmem:[#allocation5 + $0x8] sm:$0xff] (!%p1853_p10)   ;;  %vm2483_vm0 = vmmov (!%p1853_p10), 0   ;;  %vm719_vm1 = vcmask (!%p1853_p10), 261120  }
  0xb5   : > { %692 = sbr.rel (%p1853_p10) target bundleno = 409 (0x199), region = 116  ;;  %1947 = vmatprep.subr.bf16.mxu0 (!%p1853_p10), %v2482_v1  ;;  %1955 = vmatprep.subr.bf16.mxu1 (!%p1853_p10), %v2482_v1  ;;  %v2192_v4 = vld [vmem:[#allocation8 + $0x8] sm:$0xff] (!%p1853_p10)   ;;  %v1854_v8 = vld [vmem:[%s3036_s6] ss:$0 sm:$0xff] (!%p1853_p10)  ;;  %v1858_v10 = vld [vmem:[#allocation10] ss:$0 sm:$0xff] (!%p1853_p10) }
  0xb6   : > { %1948 = vmatpush3.bf16.msra.mxu0 (!%p1853_p10), %v2189_v0  ;;  %1951 = vmatprep.mubr.msk.bf16.mxu0 (!%p1853_p10), %vm2483_vm0, %v2482_v1 }
  0xb7   : > { %s679_s15 = scalar_lea.vmem %s3095_s11, %s1903_s25  ;;  %1956 = vmatpush3.bf16.msra.mxu1 (!%p1853_p10), %v2190_v2  ;;  %1949 = vmatprep.subr.bf16.mxu0 (!%p1853_p10), %v2482_v1 }
  0xb8   : > { %s2809_s22 = scalar_lea.vmem %s3096_s1, %s1852_s26  ;;  %1957 = vmatprep.subr.bf16.mxu1 (!%p1853_p10), %v2482_v1  ;;  %1959 = vmatprep.mubr.msk.bf16.mxu1 (!%p1853_p10), %vm2483_vm0, %v2482_v1  ;;  %v693_v5 = vld [vmem:[%s679_s15] sm:$0xff] (!%p1853_p10)  ;;  %v694_v6 = vld [vmem:[%s679_s15 + $0x8] sm:$0xff] (!%p1853_p10) }
  0xb9   : > { %v695_v7 = vpack.c.bf16 (!%p1853_p10), %v694_v6, %v693_v5 }
  0xba   : > { %1950 = vmatpush3.bf16.msra.mxu0 (!%p1853_p10), %v2191_v3 }
  0xbb   : > { %1958 = vmatpush3.bf16.msra.mxu1 (!%p1853_p10), %v2192_v4 }
  0xbd   : > { %1952 = vmatmul.mubr.msk.bf16.vlgmr.msra.gmra.mrb[0].mxu0 %vm719_vm1, %v695_v7 }
  0xbe   : > { %1960 = vmatmul.mubr.msk.bf16.vlgmr.msra.gmra.mrb[0].mxu1 %vm719_vm1, %v695_v7 }
 0x190   : > { %v757_v9 = vpop.f32.mrb[0].mxu0 }
 0x191   : > { %v821_v11 = vpop.f32.mrb[0].mxu1  ;;  %v1953_v12 = vpop.f32.mrb[1].mxu0  ;;  %v758_v15 = vadd.f32 %v1854_v8, %v757_v9 }
 0x192   : > { %v1961_v13 = vpop.f32.mrb[1].mxu1  ;;  %v760_v14 = vpop.f32.mrb[2].mxu0  ;;  %v822_v19 = vadd.f32 %v1858_v10, %v821_v11 }
 0x193   : > { %v761_v16 = vadd.f32 %v1854_v8, %v760_v14  ;;  %v824_v17 = vpop.f32.mrb[2].mxu1  ;;  %v1954_v18 = vpop.f32.mrb[3].mxu0 }
 0x194   : > { %v825_v20 = vadd.f32 %v1858_v10, %v824_v17  ;;  %v1962_v21 = vpop.f32.mrb[3].mxu1 }
 0x195   : > { %v828_v22 = vpack.c.bf16 %v761_v16, %v758_v15 }
 0x196   : > { %v830_v23 = vpack.c.bf16 %v825_v20, %v822_v19 }
 0x197   : > { %829 = vst.msk [vmem:[#allocation2] sm:$0xff] %vm719_vm1, %v828_v22 }
 0x198   : > { %831 = vst.msk [vmem:[#allocation3] sm:$0xff] %vm719_vm1, %v830_v23 }
 0x199 PF: > { %s3097_s25 = sld [smem:[#allocation31_spill]]  ;;  %v2484_v25 = vmov 0.0   ;;  %vm2485_vm2 = vmmov 0   ;;  %v2831_v27 = vld [vmem:[%s2809_s22] sm:$0xff]  ;;  %vm857_vm3 = vcmask 261120   ;;  %s2486_s19 = smov 120  }
 0x19a   : > { %1963 = vmatprep.subr.bf16.mxu0 %v2484_v25  ;;  %1983 = vmatprep.subr.bf16.mxu1 %v2484_v25  ;;  %v833_v29 = vpack.c.bf16 %v2831_v27, %v2831_v27  ;;  %vm905_vm4 = vcmask 64512   ;;  %s2487_s11 = smov 112   ;;  %v1862_v33 = vld [vmem:[%s3035_s5] ss:$0 sm:$0xff]  ;;  %s2488_s26 = smov 104   ;;  %vm952_vm5 = vcmask 130048  }
 0x19b   : > { %1967 = vmatprep.mubr.msk.bf16.mxu0 %vm2485_vm2, %v2484_v25  ;;  %1985 = vmatprep.mubr.msk.bf16.mxu1 %vm2485_vm2, %v2484_v25  ;;  %vm1009_vm6 = vcmask 60416   ;;  %s2489_s21 = smov 8   ;;  %s2490_s17 = smov 16   ;;  %vm1129_vm7 = vcmask 126016   ;;  %vm1246_vm8 = vcmask 191616   ;;  %vm1363_vm9 = vcmask 257216  }
 0x19c   : > { %s2491_s1 = smov 24   ;;  %s3098_s16 = sld [smem:[#allocation33_spill]] }
 0x19d   : > { %s3100_s22 = sld [smem:[#allocation35_spill]]  ;;  %s1899_s13 = sshll.u32 %s2461_s0, 1 }
 0x19e   : > { %v903_v28 = vld [vmem:[#allocation2] sm:$0xff]  ;;  %s3101_s20 = sld [smem:[#allocation25_spill]]  ;;  %s1689_s24 = sadd.s32 %s2457_s30, %s1899_s13 }
 0x19f   : > { %v2193_v24 = vld [vmem:[%s3097_s25] sm:$0xff]   ;;  %v2194_v26 = vld [vmem:[%s3097_s25 + $0x8] sm:$0xff]   ;;  %1015 = vrot.lane.b32.xlu0 %v903_v28, %s2486_s19  ;;  %v910_v30 = vsel %vm905_vm4, %v903_v28, 0  ;;  %1133 = vrot.lane.b32.xlu1 %v903_v28, %s2487_s11  ;;  %s3102_s4 = sld [smem:[#allocation36_spill]]  ;;  %s3103_s15 = sld [smem:[#allocation37_spill]] }
 0x1a0   : > { %1964 = vmatpush3.bf16.msra.mxu0 %v2193_v24  ;;  %v904_v53 = vld [vmem:[#allocation3] sm:$0xff]  ;;  %s1900_s29 = sshll.u32 %s1689_s24, 7  ;;  %s1678_s30 = scalar_lea.sflag [#allocation7], %s672_s18 }
 0x1a1   : > { %1965 = vmatprep.subr.bf16.mxu0 %v2484_v25  ;;  %s2492_s13 = smov [#allocation14]  }
 0x1a2   : > { %s2371_s24 = sshll.u32 %s2492_s13, 4  ;;  %s2372_s24 = int_to_ptr.vmem [resolvable:$false] %s2371_s24 }
 0x1a3   : > { %s2373_s23 = scalar_lea.vmem %s2372_s24, 256 }
 0x1a4   : > { %1966 = vmatpush3.bf16.msra.mxu0 %v2194_v26  ;;  %p3105_p1 = scmp.ne.s32.totalorder %s3101_s20, 0 }
 0x1a5   : > { %1971 = vmatprep.subr.bf16.mxu0 %v2484_v25 }
 0x1a7   : > { %1968 = vmatmul.mubr.msk.bf16.vlgmr.msra.gmra.mrb[0].mxu0 %vm857_vm3, %v833_v29 }
 0x1a8   : > { %1973 = vmatprep.mubr.msk.bf16.mxu0 %vm2485_vm2, %v2484_v25 }
 0x1ad   : > { %1972 = vmatpush3.bf16.xpose.msra.mxu0 %v910_v30 }
 0x1ae   : > { %1977 = vmatprep.subr.bf16.mxu0 %v2484_v25 }
 0x211   : > { %v1016_v31 = vpop.permute.xlu0 %1015  ;;  %v1134_v41 = vpop.permute.xlu1 %1133 }
 0x212   : > { %v1021_v32 = vsel %vm905_vm4, %v1016_v31, 0  ;;  %v1139_v42 = vsel %vm905_vm4, %v1134_v41, 0 }
 0x213   : > { %1984 = vmatpush3.bf16.xpose.msra.mxu1 %v1021_v32 }
 0x214   : > { %1995 = vmatprep.subr.bf16.mxu1 %v2484_v25 }
 0x27a   : > { %v895_v34 = vpop.f32.mrb[0].mxu0 }
 0x27b   : > { %v896_v35 = vadd.f32 %v1862_v33, %v895_v34  ;;  %v1969_v36 = vpop.f32.mrb[1].mxu0 }
 0x27c   : > { %v898_v37 = vpop.f32.mrb[2].mxu0 }
 0x27d   : > { %v901_v38 = vmul.f32 0.35355338, %v896_v35  ;;  %v1970_v39 = vpop.f32.mrb[3].mxu0 }
 0x27f   : > { %v902_v40 = vpack.c.bf16 %v901_v38, %v901_v38 }
 0x281   : > { %1131 = vrot.lane.b32.xlu1 %v902_v40, %s2487_s11  ;;  %1012 = vrot.lane.b32.xlu0 %v902_v40, %s2486_s19 }
 0x282   : > { %1974 = vmatmul.mubr.msk.bf16.vlgmr.msra.gmra.mrb[4].mxu0 %vm905_vm4, %v902_v40 }
 0x283   : > { %1979 = vmatprep.mubr.msk.bf16.mxu0 %vm2485_vm2, %v2484_v25  ;;  %1978 = vmatpush3.bf16.msra.mxu0 %v904_v53 }
 0x284   : > { %1989 = vmatprep.subr.bf16.mxu0 %v2484_v25 }
 0x285   : > { %1248 = vrot.lane.b32.xlu1 %v902_v40, %s2488_s26  ;;  %1250 = vrot.lane.b32.xlu0 %v903_v28, %s2488_s26 }
 0x2f3   : > { %v1013_v43 = vpop.permute.xlu0 %1012  ;;  %v1132_v46 = vpop.permute.xlu1 %1131 }
 0x2f4   : > { %1986 = vmatmul.mubr.msk.bf16.vlgmr.msra.gmra.mrb[0].mxu1 %vm905_vm4, %v1013_v43 }
 0x2f5   : > { %1996 = vmatpush3.bf16.xpose.msra.mxu1 %v1139_v42  ;;  %1997 = vmatprep.mubr.msk.bf16.mxu1 %vm2485_vm2, %v2484_v25 }
 0x2f6   : > { %2007 = vmatprep.subr.bf16.mxu1 %v2484_v25 }
 0x2f7   : > { %v1251_v44 = vpop.permute.xlu0 %1250  ;;  %v1249_v47 = vpop.permute.xlu1 %1248 }
 0x2f8   : > { %v1256_v45 = vsel %vm905_vm4, %v1251_v44, 0 }
 0x2fc   : > { %1998 = vmatmul.mubr.msk.bf16.vlgmr.msra.gmra.mrb[4].mxu1 %vm905_vm4, %v1132_v46 }
 0x2fd   : > { %2008 = vmatpush3.bf16.xpose.msra.mxu1 %v1256_v45  ;;  %2009 = vmatprep.mubr.msk.bf16.mxu1 %vm2485_vm2, %v2484_v25 }
 0x2fe   : > { %2019 = vmatprep.subr.bf16.mxu1 %v2484_v25 }
 0x304   : > { %2010 = vmatmul.mubr.msk.bf16.vlgmr.msra.gmra.mrb[8].mxu1 %vm905_vm4, %v1249_v47 }
 0x305   : > { %2023 = vmatprep.mubr.msk.bf16.mxu1 %vm2485_vm2, %v2484_v25 }
 0x355   : > { %v946_v48 = vpop.f32.mrb[4].mxu0 }
 0x356   : > { %v1975_v49 = vpop.f32.mrb[5].mxu0  ;;  %v953_v50 = vsel %vm952_vm5, %v946_v48, -inf }
 0x357   : > { %954 = vmax.xlane.f32.xlu0 %v953_v50  ;;  %v949_v51 = vpop.f32.mrb[6].mxu0 }
 0x358   : > { %v1976_v52 = vpop.f32.mrb[7].mxu0 }
 0x3c7   : > { %v1057_v54 = vpop.f32.mrb[0].mxu1 }
 0x3c8   : > { %v1987_v55 = vpop.f32.mrb[1].mxu1  ;;  %v1063_v56 = vsel %vm952_vm5, %v1057_v54, -inf }
 0x3c9   : > { %1064 = vmax.xlane.f32.xlu1 %v1063_v56  ;;  %v1060_v57 = vpop.f32.mrb[2].mxu1  ;;  %v2195_v56 = vld [vmem:[#allocation11] sm:$0xff]  }
 0x3ca   : > { %v1988_v58 = vpop.f32.mrb[3].mxu1  ;;  %2020 = vmatpush3.bf16.msra.mxu1 %v2195_v56 }
 0x3cb   : > { %v2196_v58 = vld [vmem:[#allocation11 + $0x8] sm:$0xff]   ;;  %2021 = vmatprep.subr.bf16.mxu1 %v2484_v25 }
 0x3ce   : > { %2022 = vmatpush3.bf16.msra.mxu1 %v2196_v58 }
 0x3cf   : > { %v1175_v59 = vpop.f32.mrb[4].mxu1  ;;  %2035 = vmatprep.subr.bf16.mxu1 %v2484_v25 }
 0x3d0   : > { %v1999_v60 = vpop.f32.mrb[5].mxu1  ;;  %v1181_v61 = vsel %vm952_vm5, %v1175_v59, -inf }
 0x3d1   : > { %v1178_v62 = vpop.f32.mrb[6].mxu1  ;;  %1182 = vmax.xlane.f32.xlu0 %v1181_v61 }
 0x3d2   : > { %v2000_v63 = vpop.f32.mrb[7].mxu1 }
 0x3d7   : > { %v1292_v0 = vpop.f32.mrb[8].mxu1 }
 0x3d8   : > { %v2011_v1 = vpop.f32.mrb[9].mxu1  ;;  %v1298_v2 = vsel %vm952_vm5, %v1292_v0, -inf }
 0x3d9   : > { %v1295_v3 = vpop.f32.mrb[10].mxu1  ;;  %1299 = vmax.xlane.f32.xlu0 %v1298_v2 }
 0x3da   : > { %v2012_v4 = vpop.f32.mrb[11].mxu1 }
 0x3e4   : > { %v955_v5 = vpop.xlane.xlu0 %954 }
 0x3e5   : > { %v956_v6 = vsub.f32 %v946_v48, %v955_v5 }
 0x3e7   : > { %v957_v7 = vmul.f32 1.442695, %v956_v6 }
 0x3e9   : > { %2207 = vpow2.f32 %v957_v7 }
 0x3f3   : > { %v2208_v8 = vpop.eup %2207 }
 0x3f4   : > { %v959_v9 = vsel %vm952_vm5, %v2208_v8, 0.0 }
 0x3f5   : > { %960 = vadd.xlane.f32.xlu1 %v959_v9 }
 0x406   : > { %1076 = vrot.lane.b32.xlu1 %v904_v53, %s2486_s19 }
 0x456   : > { %v1065_v10 = vpop.xlane.xlu1 %1064 }
 0x457   : > { %v1066_v11 = vsub.f32 %v1057_v54, %v1065_v10 }
 0x459   : > { %v1067_v12 = vmul.f32 1.442695, %v1066_v11 }
 0x45b   : > { %2209 = vpow2.f32 %v1067_v12 }
 0x45e   : > { %v1183_v13 = vpop.xlane.xlu0 %1182 }
 0x45f   : > { %v1184_v14 = vsub.f32 %v1175_v59, %v1183_v13 }
 0x461   : > { %v1185_v15 = vmul.f32 1.442695, %v1184_v14 }
 0x463   : > { %2211 = vpow2.f32 %v1185_v15 }
 0x465   : > { %v2210_v16 = vpop.eup %2209 }
 0x466   : > { %v1300_v17 = vpop.xlane.xlu0 %1299  ;;  %v1069_v18 = vsel %vm952_vm5, %v2210_v16, 0.0 }
 0x467   : > { %v1301_v19 = vsub.f32 %v1292_v0, %v1300_v17  ;;  %1070 = vadd.xlane.f32.xlu0 %v1069_v18  ;;  %v2197_v18 = vld [vmem:[%s3042_s12] sm:$0xff]  }
 0x469   : > { %v1302_v20 = vmul.f32 1.442695, %v1301_v19  ;;  %v2198_v19 = vld [vmem:[%s3042_s12 + $0x8] sm:$0xff]  }
 0x46b   : > { %2213 = vpow2.f32 %v1302_v20  ;;  %v2200_v20 = vld [vmem:[%s3044_s14 + $0x8] sm:$0xff]  }
 0x46d   : > { %v2212_v21 = vpop.eup %2211 }
 0x46e   : > { %v1187_v22 = vsel %vm952_vm5, %v2212_v21, 0.0 }
 0x46f   : > { %1188 = vadd.xlane.f32.xlu1 %v1187_v22  ;;  %v2202_v22 = vld [vmem:[%s3044_s14 + $0x18] sm:$0xff]  }
 0x475   : > { %v2214_v23 = vpop.eup %2213 }
 0x476   : > { %v1304_v24 = vsel %vm952_vm5, %v2214_v23, 0.0 }
 0x477   : > { %1305 = vadd.xlane.f32.xlu0 %v1304_v24  ;;  %v2204_v24 = vld [vmem:[%s3044_s14 + $0x28] sm:$0xff]  }
 0x480   : > { %1310 = vrot.lane.b32.xlu1 %v904_v53, %s2488_s26  ;;  %s1693_s26 = sshll.u32 %s674_s27, 4  ;;  %s2974_s26 = int_to_ptr.vmem [resolvable:$true] %s1693_s26 }
 0x481   : > { %p2374_p6 = scmp.lt.s32.totalorder %s2974_s26, %s2372_s24 }
 0x482   : > { %v961_v26 = vpop.xlane.xlu1 %960 }
 0x483   : > { %2215 = vrcp.f32 %v961_v26 }
 0x486   : > { %v1077_v31 = vpop.permute.xlu1 %1076 }
 0x48d   : > { %v2216_v28 = vpop.eup %2215  ;;  %1193 = vrot.lane.b32.xlu0 %v904_v53, %s2487_s11 }
 0x48e   : > { %v963_v29 = vmul.f32 %v2216_v28, %v2208_v8  ;;  %v1877_v8 = vld [vmem:[#allocation13] ss:$0 sm:$0xff] }
 0x490   : > { %v964_v30 = vpack.c.bf16 %v963_v29, %v963_v29 }
 0x492   : > { %1980 = vmatmul.mubr.msk.bf16.vlgmr.msra.gmra.mrb[8].mxu0 %vm952_vm5, %v964_v30 }
 0x493   : > { %1990 = vmatpush3.bf16.msra.mxu0 %v1077_v31  ;;  %1991 = vmatprep.mubr.msk.bf16.mxu0 %vm2485_vm2, %v2484_v25 }
 0x494   : > { %2001 = vmatprep.subr.bf16.mxu0 %v2484_v25 }
 0x4f4   : > { %v1071_v32 = vpop.xlane.xlu0 %1070 }
 0x4f5   : > { %2217 = vrcp.f32 %v1071_v32 }
 0x4fc   : > { %v1189_v33 = vpop.xlane.xlu1 %1188 }
 0x4fd   : > { %2219 = vrcp.f32 %v1189_v33 }
 0x4ff   : > { %v2218_v34 = vpop.eup %2217 }
 0x500   : > { %v1073_v35 = vmul.f32 %v2218_v34, %v2210_v16  ;;  %v1311_v42 = vpop.permute.xlu1 %1310 }
 0x502   : > { %v1074_v36 = vpack.c.bf16 %v1073_v35, %v1073_v35 }
 0x504   : > { %1992 = vmatmul.mubr.msk.bf16.vlgmr.msra.gmra.mrb[12].mxu0 %vm952_vm5, %v1074_v36  ;;  %v1306_v37 = vpop.xlane.xlu0 %1305  ;;  %v1881_v36 = vld [vmem:[%s3040_s10] ss:$0 sm:$0xff] }
 0x505   : > { %2221 = vrcp.f32 %v1306_v37  ;;  %2003 = vmatprep.mubr.msk.bf16.mxu0 %vm2485_vm2, %v2484_v25 }
 0x507   : > { %v2220_v38 = vpop.eup %2219 }
 0x508   : > { %v1191_v39 = vmul.f32 %v2220_v38, %v2212_v21  ;;  %v1194_v40 = vpop.permute.xlu0 %1193  ;;  %v2201_v21 = vld [vmem:[%s3044_s14 + $0x10] sm:$0xff]   ;;  %v1882_v38 = vld [vmem:[%s3098_s16] ss:$0 sm:$0xff] }
 0x509   : > { %2002 = vmatpush3.bf16.msra.mxu0 %v1194_v40 }
 0x50a   : > { %v1192_v41 = vpack.c.bf16 %v1191_v39, %v1191_v39  ;;  %2013 = vmatprep.subr.bf16.mxu0 %v2484_v25 }
 0x50c   : > { %2004 = vmatmul.mubr.msk.bf16.vlgmr.msra.gmra.mrb[16].mxu0 %vm952_vm5, %v1192_v41 }
 0x50d   : > { %2014 = vmatpush3.bf16.msra.mxu0 %v1311_v42  ;;  %2015 = vmatprep.mubr.msk.bf16.mxu0 %vm2485_vm2, %v2484_v25  ;;  %v2205_v42 = vld [vmem:[%s3044_s14 + $0x30] sm:$0xff]  }
 0x50e   : > { %2027 = vmatprep.subr.bf16.mxu0 %v2484_v25 }
 0x50f   : > { %v2222_v43 = vpop.eup %2221 }
 0x510   : > { %v1308_v44 = vmul.f32 %v2222_v43, %v2214_v23  ;;  %v2203_v23 = vld [vmem:[%s3044_s14 + $0x20] sm:$0xff]   ;;  %v2206_v43 = vld [vmem:[%s3044_s14 + $0x38] sm:$0xff]  }
 0x512   : > { %v1309_v45 = vpack.c.bf16 %v1308_v44, %v1308_v44 }
 0x514   : > { %2016 = vmatmul.mubr.msk.bf16.vlgmr.msra.gmra.mrb[20].mxu0 %vm952_vm5, %v1309_v45 }
 0x515   : > { %2031 = vmatprep.mubr.msk.bf16.mxu0 %vm2485_vm2, %v2484_v25  ;;  %2028 = vmatpush3.bf16.msra.mxu0 %v2197_v18 }
 0x516   : > { %2029 = vmatprep.subr.bf16.mxu0 %v2484_v25 }
 0x519   : > { %2030 = vmatpush3.bf16.msra.mxu0 %v2198_v19 }
 0x565   : > { %v1002_v46 = vpop.f32.mrb[8].mxu0 }
 0x566   : > { %v1008_v47 = vpack.c.bf16 %v1002_v46, %v1002_v46  ;;  %v1981_v48 = vpop.f32.mrb[9].mxu0 }
 0x567   : > { %v1005_v49 = vpop.f32.mrb[10].mxu0 }
 0x568   : > { %1010 = vst.msk [vmem:[#allocation4] sm:$0xf] %vm1009_vm6, %v1008_v47  ;;  %v1982_v50 = vpop.f32.mrb[11].mxu0 }
 0x5d7   : > { %v1116_v51 = vpop.f32.mrb[12].mxu0 }
 0x5d8   : > { %v1904_v52 = vpack.c.bf16 %v1116_v51, %v1116_v51  ;;  %v1993_v53 = vpop.f32.mrb[13].mxu0 }
 0x5d9   : > { %v1119_v54 = vpop.f32.mrb[14].mxu0 }
 0x5da   : > { %1126 = vrot.lane.b32.xlu1 %v1904_v52, %s2489_s21  ;;  %v1994_v55 = vpop.f32.mrb[15].mxu0  ;;  %s3099_s21 = sld [smem:[#allocation34_spill]] }
 0x5df   : > { %v1233_v57 = vpop.f32.mrb[16].mxu0 }
 0x5e0   : > { %v1905_v59 = vpack.c.bf16 %v1233_v57, %v1233_v57  ;;  %v2005_v60 = vpop.f32.mrb[17].mxu0  ;;  %v1883_v44 = vld [vmem:[%s3099_s21] ss:$0 sm:$0xff] }
 0x5e1   : > { %v1236_v61 = vpop.f32.mrb[18].mxu0 }
 0x5e2   : > { %1243 = vrot.lane.b32.xlu0 %v1905_v59, %s2490_s17  ;;  %v2006_v62 = vpop.f32.mrb[19].mxu0  ;;  %s3104_s17 = sld [smem:[#allocation38_spill]] }
 0x5e7   : > { %v1350_v63 = vpop.f32.mrb[20].mxu0 }
 0x5e8   : > { %v1906_v0 = vpack.c.bf16 %v1350_v63, %v1350_v63  ;;  %v2017_v1 = vpop.f32.mrb[21].mxu0 }
 0x5e9   : > { %v1353_v2 = vpop.f32.mrb[22].mxu0 }
 0x5ea   : > { %1360 = vrot.lane.b32.xlu1 %v1906_v0, %s2491_s1  ;;  %v2018_v3 = vpop.f32.mrb[23].mxu0  ;;  %s2972_s1 = scalar_lea.hbm %s3104_s17, %s1900_s29 }
 0x64c   : > { %v1127_v4 = vpop.permute.xlu1 %1126 }
 0x64d   : > { %1130 = vst.msk [vmem:[#allocation4] sm:$0xf] %vm1129_vm7, %v1127_v4 }
 0x654   : > { %v1244_v5 = vpop.permute.xlu0 %1243 }
 0x655   : > { %1247 = vst.msk [vmem:[#allocation4] sm:$0xf] %vm1246_vm8, %v1244_v5 }
 0x65c   : > { %v1361_v6 = vpop.permute.xlu1 %1360 }
 0x65d   : > { %1364 = vst.msk [vmem:[#allocation4] sm:$0xf] %vm1363_vm9, %v1361_v6  ;;  %v1896_v6 = vld [vmem:[%s3102_s4] ss:$0 sm:$0xff] }
 0x664   : > { %v1365_v7 = vld [vmem:[#allocation4] sm:$0xf] }
 0x665   : > { %2024 = vmatmul.mubr.msk.bf16.vlgmr.msra.gmra.mrb[12].mxu1 %vm857_vm3, %v1365_v7 }
 0x666   : > { %2051 = vmatprep.mubr.msk.bf16.mxu1 %vm2485_vm2, %v2484_v25 }
 0x738   : > { %v1426_v9 = vpop.f32.mrb[12].mxu1 }
 0x739   : > { %v1427_v10 = vadd.f32 %v1877_v8, %v1426_v9  ;;  %v2025_v11 = vpop.f32.mrb[13].mxu1  ;;  %v1897_v8 = vld [vmem:[%s3103_s15] ss:$0 sm:$0xff] }
 0x73a   : > { %v1429_v12 = vpop.f32.mrb[14].mxu1 }
 0x73b   : > { %v1432_v13 = vadd.f32 %v1427_v10, %v2831_v27  ;;  %v2026_v14 = vpop.f32.mrb[15].mxu1  ;;  %v2199_v27 = vld [vmem:[%s3044_s14] sm:$0xff]  }
 0x73c   : > { %2036 = vmatpush3.bf16.msra.mxu1 %v2199_v27 }
 0x73d   : > { %v1435_v15 = vsel %vm857_vm3, %v1432_v13, 0.0  ;;  %v1438_v16 = vmul.f32 %v1432_v13, %v1432_v13  ;;  %2037 = vmatprep.subr.bf16.mxu1 %v2484_v25 }
 0x73e   : > { %1436 = vadd.xlane.f32.xlu0 %v1435_v15 }
 0x73f   : > { %v1439_v17 = vsel %vm857_vm3, %v1438_v16, 0.0 }
 0x740   : > { %1440 = vadd.xlane.f32.xlu1 %v1439_v17  ;;  %2038 = vmatpush3.bf16.msra.mxu1 %v2200_v20 }
 0x741   : > { %2039 = vmatprep.subr.bf16.mxu1 %v2484_v25 }
 0x744   : > { %2040 = vmatpush3.bf16.msra.mxu1 %v2201_v21 }
 0x745   : > { %2041 = vmatprep.subr.bf16.mxu1 %v2484_v25 }
 0x748   : > { %2042 = vmatpush3.bf16.msra.mxu1 %v2202_v22 }
 0x749   : > { %2043 = vmatprep.subr.bf16.mxu1 %v2484_v25 }
 0x74c   : > { %2044 = vmatpush3.bf16.msra.mxu1 %v2203_v23 }
 0x74d   : > { %2045 = vmatprep.subr.bf16.mxu1 %v2484_v25 }
 0x750   : > { %2046 = vmatpush3.bf16.msra.mxu1 %v2204_v24 }
 0x751   : > { %2047 = vmatprep.subr.bf16.mxu1 %v2484_v25 }
 0x754   : > { %2048 = vmatpush3.bf16.msra.mxu1 %v2205_v42 }
 0x755   : > { %2049 = vmatprep.subr.bf16.mxu1 %v2484_v25  ;;  %v1887_v25 = vld [vmem:[%s3100_s22] ss:$0 sm:$0xff]  ;;  %s2367_s22 = scalar_lea.vmem %s2974_s26, 128 }
 0x756   : > { %p2368_p12 = scmp.ne.s32.totalorder %s2974_s26, %s2367_s22  ;;  %p2375_p7 = scmp.lt.s32.totalorder %s2373_s23, %s2367_s22 }
 0x758   : > { %2050 = vmatpush3.bf16.msra.mxu1 %v2206_v43  ;;  %p2369_p4 = pnand %p2368_p12, %p3105_p1  ;;  %p2376_p9 = por %p2375_p7, %p2374_p6 }
 0x75a   : > { %p2370_p5 = pneg %p2369_p4 }
 0x75c   : > { %p2377_p11 = pnand %p2376_p9, %p2370_p5 }
 0x7cb   : > { %v1437_v26 = vpop.xlane.xlu0 %1436 }
 0x7cc   : > { %v1442_v28 = vmul.f32 0.03125, %v1437_v26 }
 0x7cd   : > { %v1441_v29 = vpop.xlane.xlu1 %1440 }
 0x7ce   : > { %v1444_v30 = vmul.f32 %v1442_v28, %v1442_v28  ;;  %v1443_v31 = vmul.f32 0.03125, %v1441_v29  ;;  %v1446_v34 = vsub.f32 %v1432_v13, %v1442_v28 }
 0x7d0   : > { %v1445_v32 = vsub.f32 %v1443_v31, %v1444_v30 }
 0x7d2   : > { %v1447_v33 = vadd.f32 1e-05, %v1445_v32 }
 0x7d4   : > { %2223 = vrsqrt.f32 %v1447_v33 }
 0x7de   : > { %v2224_v35 = vpop.eup %2223 }
 0x7df   : > { %v1449_v37 = vmul.f32 %v2224_v35, %v1446_v34 }
 0x7e1   : > { %v1456_v39 = vmul.f32 %v1881_v36, %v1449_v37 }
 0x7e3   : > { %v1463_v40 = vadd.f32 %v1882_v38, %v1456_v39 }
 0x7e5   : > { %v1464_v41 = vpack.c.bf16 %v1463_v40, %v1463_v40 }
 0x7e7   : > { %2032 = vmatmul.mubr.msk.bf16.vlgmr.msra.gmra.mrb[24].mxu0 %vm857_vm3, %v1464_v41 }
 0x8ba   : > { %v1525_v45 = vpop.f32.mrb[24].mxu0 }
 0x8bb   : > { %v1526_v46 = vadd.f32 %v1883_v44, %v1525_v45  ;;  %v2033_v47 = vpop.f32.mrb[25].mxu0 }
 0x8bc   : > { %v1528_v48 = vpop.f32.mrb[26].mxu0 }
 0x8bd   : > { %v1531_v49 = vmax.f32 %v1526_v46, 0.0  ;;  %v2034_v50 = vpop.f32.mrb[27].mxu0 }
 0x8bf   : > { %v1532_v51 = vpack.c.bf16 %v1531_v49, %v1531_v49 }
 0x8c1   : > { %2052 = vmatmul.mubr.bf16.vlgmr.msra.gmra.mrb[16].mxu1 %v1532_v51 }
 0x994   : > { %v1638_v52 = vpop.f32.mrb[16].mxu1 }
 0x995   : > { %v1639_v53 = vadd.f32 %v1887_v25, %v1638_v52  ;;  %v2053_v54 = vpop.f32.mrb[17].mxu1 }
 0x996   : > { %v1641_v55 = vpop.f32.mrb[18].mxu1 }
 0x997   : > { %v1644_v56 = vadd.f32 %v1639_v53, %v1463_v40  ;;  %v2054_v57 = vpop.f32.mrb[19].mxu1 }
 0x999   : > { %v1647_v58 = vsel %vm857_vm3, %v1644_v56, 0.0  ;;  %v1650_v59 = vmul.f32 %v1644_v56, %v1644_v56 }
 0x99a   : > { %1648 = vadd.xlane.f32.xlu0 %v1647_v58 }
 0x99b   : > { %v1651_v60 = vsel %vm857_vm3, %v1650_v59, 0.0 }
 0x99e   : > { %1652 = vadd.xlane.f32.xlu0 %v1651_v60 }
 0xa27   : > { %v1649_v61 = vpop.xlane.xlu0 %1648 }
 0xa28   : > { %v1654_v62 = vmul.f32 0.03125, %v1649_v61 }
 0xa2a   : > { %v1656_v0 = vmul.f32 %v1654_v62, %v1654_v62  ;;  %v1658_v4 = vsub.f32 %v1644_v56, %v1654_v62 }
 0xa2b   : > { %v1653_v63 = vpop.xlane.xlu0 %1652 }
 0xa2c   : > { %v1655_v1 = vmul.f32 0.03125, %v1653_v63 }
 0xa2e   : > { %v1657_v2 = vsub.f32 %v1655_v1, %v1656_v0 }
 0xa30   : > { %v1659_v3 = vadd.f32 1e-05, %v1657_v2 }
 0xa32   : > { %2225 = vrsqrt.f32 %v1659_v3 }
 0xa3c   : > { %v2226_v5 = vpop.eup %2225 }
 0xa3d   : > { %v1661_v7 = vmul.f32 %v2226_v5, %v1658_v4 }
 0xa3f   : > { %v1668_v9 = vmul.f32 %v1896_v6, %v1661_v7 }
 0xa41   : > { %v1675_v10 = vadd.f32 %v1897_v8, %v1668_v9 }
 0xa43   : > { %1676 = vst.msk [vmem:[%s674_s27] sm:$0xff] %vm857_vm3, %v1675_v10 }
 0xa44   : > { %2380 = shalt.err (!%p2377_p11)
}
 0xa45   : > { %s2381_s18 = scalar_lea.hbm %s2972_s1, 128  ;;  %s2385_s16 = scalar_lea.hbm %s3104_s17, 512 }
 0xa46   : > { %p2382_p13 = scmp.ne.s32.totalorder %s2972_s1, %s2381_s18  ;;  %p2386_p0 = scmp.lt.u32.totalorder %s2972_s1, %s3104_s17 }
 0xa47   : > { %p2387_p2 = scmp.lt.u32.totalorder %s2385_s16, %s2381_s18  ;;  %p2389_p12 = scmp.lt.u32.totalorder %s2381_s18, %s2972_s1 }
 0xa48   : > { %p2383_p3 = pnand %p2382_p13, %p3105_p1 }
 0xa49   : > { %p2388_p10 = por %p2387_p2, %p2386_p0 }
 0xa4a   : > { %p2384_p8 = pneg %p2383_p3 }
 0xa4b   : > { %p2390_p4 = por %p2389_p12, %p2388_p10 }
 0xa4d   : > { %p2391_p5 = pnand %p2390_p4, %p2384_p8 }
 0xa4f   : > { %2394 = shalt.err (!%p2391_p5)
}
 0xa50   : > { %2075 = dma.vmem_to_hbm [thread:$0]  (%p3105_p1), %s2974_s26, 128, %s2972_s1, %s1678_s30  }
 0xa51 PF: > { %s3106_s11 = sld [smem:[#allocation23_spill]]  ;;  %s3107_s15 = sld [smem:[#allocation19_spill]] }
 0xa52   : > { %s3108_s29 = sld [smem:[#allocation27_spill]] }
 0xa57   : > { %p2107_p6 = scmp.ge.s32.totalorder %s3106_s11, 2  ;;  %s1705_s21 = sand.u32 1, %s3107_s15  }
 0xa58   : > { %p3109_p7 = scmp.ne.s32.totalorder %s3108_s29, 0  ;;  %s1706_s0 = scalar_lea.sflag [#allocation7], %s1705_s21 }
 0xa5a   : > { %p2094_p9 = pnand %p2107_p6, %p3109_p7 }
 0xa5c   : > { %2440 = dma.done.wait (!%p2094_p9), %s1706_s0, 128  }
 0xa5d   : > { %2442 = vsyncadd (!%p2094_p9), %s1706_s0, 4294967168  ;;  %s34_s20 = sadd.s32 1, %s3106_s11   ;;  %s3110_s22 = sld [smem:[#allocation20_spill]] }
 0xa5e   : > { %p31_p11 = scmp.ge.s32.totalorder %s34_s20, 6   ;;  %s3111_s29 = sld [smem:[#allocation28_spill]] }
 0xa5f   : > { %s3112_s30 = sld [smem:[#allocation21_spill]]  ;;  %s3113_s0 = sld [smem:[#allocation22_spill]] }
 0xa60   : > { %s3114_s19 = sld [smem:[#allocation24_spill]]  ;;  %s3115_s1 = sld [smem:[#allocation26_spill]] }
 0xa61   : > { %s3116_s27 = smov %s2449_s28  ;;  %33 = sbr.rel (!%p31_p11) target bundleno = 19 (0x13), region = 155 }
 0xa63   : > { %s3117_s28 = smov %s3110_s22 }
 0xa68   :  { %1711 = vsyncpa [#allocation6], 1 }
 0xa69   :  { %1713 = vsyncpa [#allocation6 + $0x1], 1 }
 0xa6a   :  { %1714 = vsyncpa [#allocation9], 1 }
 0xa6b   :  { %1715 = vsyncpa [#allocation12], 1 }
 0xa6c   :  { %1716 = vsyncpa [#allocation7], 1 }
 0xa6d   :  { %1718 = vsyncpa [#allocation7 + $0x1], 1 }

</bundles_post_ra>
